<compile_context>
chip_gen: v7x
topology: tpu7x:2x2x1
jax: 0.10.0
libtpu: 0.0.40
codegen_flags: <defaults>
</compile_context>

<pallas_src>
import functools

import jax
import jax.numpy as jnp
from jax.experimental import pallas as pl
from jax.experimental.pallas import tpu as pltpu

EPS = 1e-5
LANE = 128
VMEM_LIMIT = 32 * 1024 * 1024


# ---------------------------------------------------------------------------
# Helpers
# ---------------------------------------------------------------------------
def _round_up(x, m):
    return ((x + m - 1) // m) * m


def _pick_divisor(n, candidates):
    for c in candidates:
        if n % c == 0:
            return c
    return n


def _merge_rows(a):
    """(R, W, C) -> (R*W, C); plain reshape when W is sublane aligned."""
    R, W, C = a.shape
    if W % 8 == 0:
        return a.reshape(R * W, C)
    return jnp.concatenate([a[r] for r in range(R)], axis=0)


# ---------------------------------------------------------------------------
# Kernel 1a: fused 3x3 conv (stride 1) + per-block BN statistics.
#   grid = (n over images, j over cout tiles) -- both "parallel".
# ---------------------------------------------------------------------------
def _conv3x3_s1_kernel(x_ref, w_ref, y_ref, st_ref, *, Ho, Wo):
    # x_ref : (1, Ho+2, Wo+2, Cp) bf16   zero-padded input image
    # w_ref : (9, Cp, tn)         bf16   (di,dj)-major tap weights
    # y_ref : (Ho*Wo, tn)         bf16   conv output block
    # st_ref: (8, tn)             f32    rows 0/1 = sum / sum-of-squares
    tn = y_ref.shape[-1]
    # Slice / merge in f32 (clean (8,128) layouts), cast back to bf16 for MXU.
    x = x_ref[0].astype(jnp.float32)
    acc = jnp.zeros((Ho * Wo, tn), jnp.float32)
    for di in range(3):
        for dj in range(3):
            a = _merge_rows(x[di:di + Ho, dj:dj + Wo, :]).astype(jnp.bfloat16)
            acc = acc + jnp.dot(a, w_ref[di * 3 + dj],
                                preferred_element_type=jnp.float32)
    y_ref[...] = acc.astype(y_ref.dtype)
    s = jnp.sum(acc, axis=0, keepdims=True)
    ss = jnp.sum(acc * acc, axis=0, keepdims=True)
    st_ref[...] = jnp.concatenate(
        [s, ss, jnp.zeros((6, tn), jnp.float32)], axis=0)


# ---------------------------------------------------------------------------
# Kernel 1b: fused 3x3 conv (stride > 1) + per-block BN statistics.
# The wrapper pre-splits the padded input into the three dj column phases so
# the kernel only ever gathers whole (Wo, Cp) row slabs (no strided vector ops).
# ---------------------------------------------------------------------------
def _conv3x3_strided_kernel(x0_ref, x1_ref, x2_ref, w_ref, y_ref, st_ref, *,
                            Ho, Wo, stride):
    tn = y_ref.shape[-1]
    acc = jnp.zeros((Ho * Wo, tn), jnp.float32)
    phases = (x0_ref, x1_ref, x2_ref)
    for dj in range(3):
        x = phases[dj][0].astype(jnp.float32)              # (Hp, Wo, Cp)
        for di in range(3):
            rows = [x[di + t * stride] for t in range(Ho)]  # (Wo, Cp) each
            a = jnp.concatenate(rows, axis=0).astype(jnp.bfloat16)
            acc = acc + jnp.dot(a, w_ref[di * 3 + dj],
                                preferred_element_type=jnp.float32)
    y_ref[...] = acc.astype(y_ref.dtype)
    s = jnp.sum(acc, axis=0, keepdims=True)
    ss = jnp.sum(acc * acc, axis=0, keepdims=True)
    st_ref[...] = jnp.concatenate(
        [s, ss, jnp.zeros((6, tn), jnp.float32)], axis=0)


def conv3x3_bn_stats(x_nhwc, w_oihw, stride, Np, tn):
    """x_nhwc: [N, H, W, Cp] bf16 (channels lane-padded).
    Returns y [N*Ho*Wo, Np] bf16, partial stats [N*8, Np] f32, Ho, Wo."""
    N, H, W, Cp = x_nhwc.shape
    C_out, C_in = w_oihw.shape[0], w_oihw.shape[1]
    Ho = (H - 1) // stride + 1
    Wo = (W - 1) // stride + 1
    M = N * Ho * Wo
    Hp, Wp = H + 2, W + 2

    # tap-major weight matrix [9, Cp, Np]: w_taps[di*3+dj, ci, co] = w[co,ci,di,dj]
    w = jnp.transpose(w_oihw.astype(jnp.float32), (2, 3, 1, 0)).reshape(
        9, C_in, C_out)
    w = jnp.pad(w, ((0, 0), (0, Cp - C_in), (0, Np - C_out))).astype(jnp.bfloat16)

    x_p = jnp.pad(x_nhwc, ((0, 0), (1, 1), (1, 1), (0, 0)))
    nj = Np // tn

    out_shape = (jax.ShapeDtypeStruct((M, Np), jnp.bfloat16),
                 jax.ShapeDtypeStruct((N * 8, Np), jnp.float32))
    out_specs = (pl.BlockSpec((Ho * Wo, tn), lambda n, j: (n, j)),
                 pl.BlockSpec((8, tn), lambda n, j: (n, j)))
    cparams = pltpu.CompilerParams(
        dimension_semantics=("parallel", "parallel"),
        vmem_limit_bytes=VMEM_LIMIT)
    cost = pl.CostEstimate(
        flops=2 * M * 9 * Cp * Np, transcendentals=0,
        bytes_accessed=N * Hp * Wp * Cp * 2 + 9 * Cp * Np * 2
        + M * Np * 2 + N * 8 * Np * 4)

    if stride == 1:
        kern = functools.partial(_conv3x3_s1_kernel, Ho=Ho, Wo=Wo)
        y, st = pl.pallas_call(
            kern, out_shape=out_shape, grid=(N, nj),
            in_specs=[pl.BlockSpec((1, Hp, Wp, Cp), lambda n, j: (n, 0, 0, 0)),
                      pl.BlockSpec((9, Cp, tn), lambda n, j: (0, 0, j))],
            out_specs=out_specs, compiler_params=cparams, cost_estimate=cost,
        )(x_p, w)
    else:
        # dj column phases: phase[dj][n, h, w, c] == x_p[n, h, dj + w*stride, c]
        phases = [x_p[:, :, dj::stride, :][:, :, :Wo, :] for dj in range(3)]
        kern = functools.partial(_conv3x3_strided_kernel, Ho=Ho, Wo=Wo,
                                 stride=stride)
        xspec = pl.BlockSpec((1, Hp, Wo, Cp), lambda n, j: (n, 0, 0, 0))
        y, st = pl.pallas_call(
            kern, out_shape=out_shape, grid=(N, nj),
            in_specs=[xspec, xspec, xspec,
                      pl.BlockSpec((9, Cp, tn), lambda n, j: (0, 0, j))],
            out_specs=out_specs, compiler_params=cparams, cost_estimate=cost,
        )(phases[0], phases[1], phases[2], w)
    return y, st, Ho, Wo


# ---------------------------------------------------------------------------
# Kernel 2: 1x1 projection shortcut as a tiled matmul + per-block BN stats.
# ---------------------------------------------------------------------------
def _mm_stats_kernel(a_ref, b_ref, y_ref, st_ref):
    acc = jnp.dot(a_ref[...], b_ref[...], preferred_element_type=jnp.float32)
    y_ref[...] = acc.astype(y_ref.dtype)
    s = jnp.sum(acc, axis=0, keepdims=True)
    ss = jnp.sum(acc * acc, axis=0, keepdims=True)
    st_ref[...] = jnp.concatenate(
        [s, ss, jnp.zeros((6, acc.shape[-1]), jnp.float32)], axis=0)


def matmul_bn_stats(a, b, *, tm, tn):
    """a: [Mp, K] bf16 (rows beyond the real M are zero), b: [K, Np] bf16."""
    Mp, K = a.shape
    _, Np = b.shape
    nm, nj = Mp // tm, Np // tn
    y, st = pl.pallas_call(
        _mm_stats_kernel,
        out_shape=(jax.ShapeDtypeStruct((Mp, Np), jnp.bfloat16),
                   jax.ShapeDtypeStruct((nm * 8, Np), jnp.float32)),
        grid=(nm, nj),
        in_specs=[pl.BlockSpec((tm, K), lambda m, j: (m, 0)),
                  pl.BlockSpec((K, tn), lambda m, j: (0, j))],
        out_specs=(pl.BlockSpec((tm, tn), lambda m, j: (m, j)),
                   pl.BlockSpec((8, tn), lambda m, j: (m, j))),
        compiler_params=pltpu.CompilerParams(
            dimension_semantics=("parallel", "parallel"),
            vmem_limit_bytes=VMEM_LIMIT),
        cost_estimate=pl.CostEstimate(
            flops=2 * Mp * K * Np, transcendentals=0,
            bytes_accessed=Mp * K * 2 + K * Np * 2 + Mp * Np * 2
            + nm * 8 * Np * 4),
    )(a, b)
    return y, st, nm


# ---------------------------------------------------------------------------
# Kernel 3: tiled normalize / add / ReLU epilogues (bf16 in, f32 math).
# ---------------------------------------------------------------------------
def _bn_relu_kernel(y_ref, sc_ref, sh_ref, o_ref):
    z = y_ref[...].astype(jnp.float32) * sc_ref[...] + sh_ref[...]
    o_ref[...] = jnp.maximum(z, 0.0).astype(o_ref.dtype)


def _bn_add_bn_relu_kernel(y2_ref, sc2_ref, sh2_ref, ys_ref, scs_ref, shs_ref,
                           o_ref):
    a = y2_ref[...].astype(jnp.float32) * sc2_ref[...] + sh2_ref[...]
    b = ys_ref[...].astype(jnp.float32) * scs_ref[...] + shs_ref[...]
    o_ref[...] = jnp.maximum(a + b, 0.0).astype(o_ref.dtype)


def _bn_add_res_relu_kernel(y2_ref, sc2_ref, sh2_ref, r_ref, o_ref):
    a = y2_ref[...].astype(jnp.float32) * sc2_ref[...] + sh2_ref[...]
    o_ref[...] = jnp.maximum(a + r_ref[...].astype(jnp.float32),
                             0.0).astype(o_ref.dtype)


def _ew_specs(tm, tnc):
    big = pl.BlockSpec((tm, tnc), lambda m, c: (m, c))
    vec = pl.BlockSpec((1, tnc), lambda m, c: (0, c))
    return big, vec


def _ew_params():
    return pltpu.CompilerParams(dimension_semantics=("parallel", "parallel"),
                                vmem_limit_bytes=VMEM_LIMIT)


def pallas_bn_relu(y, scale, shift, *, out_dtype, tm, tnc):
    M, Np = y.shape
    big, vec = _ew_specs(tm, tnc)
    return pl.pallas_call(
        _bn_relu_kernel, out_shape=jax.ShapeDtypeStruct((M, Np), out_dtype),
        grid=(M // tm, Np // tnc), in_specs=[big, vec, vec], out_specs=big,
        compiler_params=_ew_params(),
    )(y, scale, shift)


def pallas_bn_add_bn_relu(y2, sc2, sh2, ys, scs, shs, *, tm, tnc):
    M, Np = y2.shape
    big, vec = _ew_specs(tm, tnc)
    return pl.pallas_call(
        _bn_add_bn_relu_kernel,
        out_shape=jax.ShapeDtypeStruct((M, Np), jnp.float32),
        grid=(M // tm, Np // tnc),
        in_specs=[big, vec, vec, big, vec, vec], out_specs=big,
        compiler_params=_ew_params(),
    )(y2, sc2, sh2, ys, scs, shs)


def pallas_bn_add_res_relu(y2, sc2, sh2, res, *, tm, tnc):
    M, Np = y2.shape
    big, vec = _ew_specs(tm, tnc)
    return pl.pallas_call(
        _bn_add_res_relu_kernel,
        out_shape=jax.ShapeDtypeStruct((M, Np), jnp.float32),
        grid=(M // tm, Np // tnc),
        in_specs=[big, vec, vec, big], out_specs=big,
        compiler_params=_ew_params(),
    )(y2, sc2, sh2, res)


# ---------------------------------------------------------------------------
# Per-channel scale/shift from the reduced partial statistics (tiny, in XLA).
# ---------------------------------------------------------------------------
def _scale_shift_from_stats(st_raw, nb, Np, gamma, beta, count):
    st = st_raw.reshape(nb, 8, Np)
    s = jnp.sum(st[:, 0, :], axis=0)
    ss = jnp.sum(st[:, 1, :], axis=0)
    mean = s / count
    # clamp: single-pass E[x^2]-E[x]^2 can dip slightly below 0 in f32
    var = jnp.maximum(ss / count - mean * mean, 0.0)
    g = jnp.pad(gamma.astype(jnp.float32), (0, Np - gamma.shape[0]))
    b = jnp.pad(beta.astype(jnp.float32), (0, Np - beta.shape[0]))
    scale = g * jax.lax.rsqrt(var + EPS)
    shift = b - mean * scale
    return scale.reshape(1, Np), shift.reshape(1, Np)


# ---------------------------------------------------------------------------
# ResBlock forward (Pallas-backed)
# ---------------------------------------------------------------------------
def resblock_forward(x_nchw, params, stride):
    N, C_in, H, W = x_nchw.shape
    C_out = params["w1"].shape[0]
    Ci_p = _round_up(C_in, LANE)
    Co_p = _round_up(C_out, LANE)
    tn = 256 if Co_p % 256 == 0 else 128

    # NHWC + lane-padded channels, bf16 (MXU operand dtype) at the boundary.
    x_nhwc = jnp.transpose(x_nchw, (0, 2, 3, 1))
    x_bf = jnp.pad(x_nhwc, ((0, 0), (0, 0), (0, 0), (0, Ci_p - C_in))
                   ).astype(jnp.bfloat16)

    # ---- conv1 (3x3, stride, pad=1): fused shifted-window matmuls + stats ---
    y1, st1, Ho, Wo = conv3x3_bn_stats(x_bf, params["w1"], stride, Co_p, tn)
    M = N * Ho * Wo
    sc1, sh1 = _scale_shift_from_stats(st1, N, Co_p,
                                       params["g1"], params["b1"], M)

    tm_e = _pick_divisor(M, (1024, 512, 256, 128, 64, 32, 16, 8))
    tnc = _pick_divisor(Co_p, (512, 256, 128))

    # ---- bn1 + relu (bf16 out, feeds conv2 directly) -------------------------
    z1 = pallas_bn_relu(y1, sc1, sh1, out_dtype=jnp.bfloat16, tm=tm_e, tnc=tnc)

    # ---- conv2 (3x3, stride 1, pad=1): fused + stats --------------------------
    z1_nhwc = z1.reshape(N, Ho, Wo, Co_p)
    y2, st2, _, _ = conv3x3_bn_stats(z1_nhwc, params["w2"], 1, Co_p, tn)
    sc2, sh2 = _scale_shift_from_stats(st2, N, Co_p,
                                       params["g2"], params["b2"], M)

    # ---- shortcut + bn2 + add + relu (single fused epilogue) -----------------
    if "ws" in params:
        xs = x_bf[:, ::stride, ::stride, :].reshape(M, Ci_p)
        Mp = _round_up(M, 8)
        tm_s = _pick_divisor(Mp, (1024, 512, 256, 128, 64, 32, 16, 8))
        xs = jnp.pad(xs, ((0, Mp - M), (0, 0)))
        ws = jnp.transpose(params["ws"].reshape(C_out, C_in), (1, 0))
        ws = jnp.pad(ws, ((0, Ci_p - C_in), (0, Co_p - C_out))
                     ).astype(jnp.bfloat16)
        ys, sts, nbs = matmul_bn_stats(xs, ws, tm=tm_s, tn=tn)
        scs, shs = _scale_shift_from_stats(sts, nbs, Co_p,
                                           params["gs"], params["bs"], M)
        out = pallas_bn_add_bn_relu(y2, sc2, sh2, ys[:M], scs, shs,
                                    tm=tm_e, tnc=tnc)
    else:
        # identity shortcut: residual passed as bf16, upcast inside the kernel
        res = x_bf.reshape(M, Ci_p)
        out = pallas_bn_add_res_relu(y2, sc2, sh2, res, tm=tm_e, tnc=tnc)

    out = out[:, :C_out].reshape(N, Ho, Wo, C_out)
    return jnp.transpose(out, (0, 3, 1, 2))


resblock_fwd = jax.jit(resblock_forward, static_argnums=(2,))


# ---------------------------------------------------------------------------
# Pure-JAX reference (conv operands cast to bf16 to match the kernel's compute
# dtype; accumulation and BN in float32).  The Pallas path additionally stores
# intermediate activations in bf16, hence the slightly looser tolerance below.
# ---------------------------------------------------------------------------
def _conv_ref(x, w, stride, pad):
    return jax.lax.conv_general_dilated(
        x.astype(jnp.bfloat16), w.astype(jnp.bfloat16),
        window_strides=(stride, stride), padding=((pad, pad), (pad, pad)),
        dimension_numbers=("NCHW", "OIHW", "NCHW"),
        preferred_element_type=jnp.float32)


def _bn_ref(x_nchw, gamma, beta):
    mean = jnp.mean(x_nchw, axis=(0, 2, 3), keepdims=True)
    var = jnp.mean((x_nchw - mean) ** 2, axis=(0, 2, 3), keepdims=True)
    return ((x_nchw - mean) * jax.lax.rsqrt(var + EPS)
            * gamma.reshape(1, -1, 1, 1) + beta.reshape(1, -1, 1, 1))


def resblock_ref(x, params, stride):
    out = _conv_ref(x, params["w1"], stride, 1)
    out = jnp.maximum(_bn_ref(out, params["g1"], params["b1"]), 0.0)
    out = _conv_ref(out, params["w2"], 1, 1)
    out = _bn_ref(out, params["g2"], params["b2"])
    if "ws" in params:
        sc = _conv_ref(x, params["ws"], stride, 0)
        sc = _bn_ref(sc, params["gs"], params["bs"])
    else:
        sc = x
    return jnp.maximum(out + sc, 0.0)


# ---------------------------------------------------------------------------
if __name__ == "__main__":
    key = jax.random.PRNGKey(0)
    k1, k2, k3, k4, k5, kx1, kx2 = jax.random.split(key, 7)

    # --- Test 1: projection shortcut (stride=2, C_in != C_out) ---------------
    N, C_in, C_out, H, W, stride = 2, 4, 8, 16, 16, 2
    params = {
        "w1": jax.random.normal(k1, (C_out, C_in, 3, 3), jnp.float32)
              * (2.0 / (9 * C_in)) ** 0.5,
        "g1": 1.0 + 0.1 * jax.random.normal(k5, (C_out,), jnp.float32),
        "b1": 0.05 * jnp.arange(C_out, dtype=jnp.float32),
        "w2": jax.random.normal(k2, (C_out, C_out, 3, 3), jnp.float32)
              * (2.0 / (9 * C_out)) ** 0.5,
        "g2": jnp.full((C_out,), 0.9, jnp.float32),
        "b2": jnp.full((C_out,), 0.1, jnp.float32),
        "ws": jax.random.normal(k3, (C_out, C_in, 1, 1), jnp.float32)
              * (2.0 / C_in) ** 0.5,
        "gs": jnp.ones((C_out,), jnp.float32),
        "bs": jnp.zeros((C_out,), jnp.float32),
    }
    x = jax.random.normal(kx1, (N, C_in, H, W), jnp.float32)

    out = jax.block_until_ready(resblock_fwd(x, params, stride))
    ref = jax.block_until_ready(resblock_ref(x, params, stride))
    assert out.shape == ref.shape == (N, C_out, H // stride, W // stride)
    err = float(jnp.max(jnp.abs(out - ref)))
    assert jnp.allclose(out, ref, atol=3e-2, rtol=3e-2), \
        f"projection-shortcut max abs err {err}"

    # --- Test 2: identity shortcut (stride=1, C_in == C_out) -----------------
    C2 = 8
    params_id = {
        "w1": jax.random.normal(k1, (C2, C2, 3, 3), jnp.float32)
              * (2.0 / (9 * C2)) ** 0.5,
        "g1": jnp.ones((C2,), jnp.float32),
        "b1": jnp.zeros((C2,), jnp.float32),
        "w2": jax.random.normal(k4, (C2, C2, 3, 3), jnp.float32)
              * (2.0 / (9 * C2)) ** 0.5,
        "g2": jnp.ones((C2,), jnp.float32),
        "b2": jnp.zeros((C2,), jnp.float32),
    }
    x2 = jax.random.normal(kx2, (N, C2, H, W), jnp.float32)

    out2 = jax.block_until_ready(resblock_fwd(x2, params_id, 1))
    ref2 = jax.block_until_ready(resblock_ref(x2, params_id, 1))
    assert out2.shape == ref2.shape == (N, C2, H, W)
    err2 = float(jnp.max(jnp.abs(out2 - ref2)))
    assert jnp.allclose(out2, ref2, atol=3e-2, rtol=3e-2), \
        f"identity-shortcut max abs err {err2}"

    print("KERNEL_OK")
</pallas_src>

<mosaic_0001>
module attributes {stable_mosaic.version = 11 : i64} {
  func.func @_conv3x3_strided_kernel(%arg0: i32, %arg1: i32, %arg2: memref<1x18x8x128xbf16, #tpu.memory_space<vmem>>, %arg3: memref<1x18x8x128xbf16, #tpu.memory_space<vmem>>, %arg4: memref<1x18x8x128xbf16, #tpu.memory_space<vmem>>, %arg5: memref<9x128x128xbf16, #tpu.memory_space<vmem>>, %arg6: memref<64x128xbf16, #tpu.memory_space<vmem>>, %arg7: memref<8x128xf32, #tpu.memory_space<vmem>>) attributes {dimension_semantics = [#tpu.dimension_semantics<parallel>, #tpu.dimension_semantics<parallel>], iteration_bounds = array<i64: 2, 1>, scalar_prefetch = 0 : i64, scratch_operands = 0 : i64, tpu.core_type = #tpu.core_type<tc>, window_params = [{transform_indices = @transform_0, window_bounds = array<i64: 1, 18, 8, 128>}, {transform_indices = @transform_1, window_bounds = array<i64: 1, 18, 8, 128>}, {transform_indices = @transform_2, window_bounds = array<i64: 1, 18, 8, 128>}, {transform_indices = @transform_3, window_bounds = array<i64: 9, 128, 128>}, {transform_indices = @transform_4, window_bounds = array<i64: 64, 128>}, {transform_indices = @transform_5, window_bounds = array<i64: 8, 128>}]} {
    %cst = arith.constant 0.000000e+00 : f32
    %0 = vector.broadcast %cst : f32 to vector<64x128xf32>
    %c0 = arith.constant 0 : index
    %c0_0 = arith.constant 0 : index
    %c0_1 = arith.constant 0 : index
    %c0_2 = arith.constant 0 : index
    %1 = vector.load %arg2[%c0, %c0_0, %c0_1, %c0_2] : memref<1x18x8x128xbf16, #tpu.memory_space<vmem>>, vector<1x18x8x128xbf16>
    %2 = vector.shape_cast %1 : vector<1x18x8x128xbf16> to vector<18x8x128xbf16>
    %3 = arith.extf %2 : vector<18x8x128xbf16> to vector<18x8x128xf32>
    %4 = vector.extract_strided_slice %3 {offsets = [0, 0, 0], sizes = [1, 8, 128], strides = [1, 1, 1]} : vector<18x8x128xf32> to vector<1x8x128xf32>
    %5 = vector.shape_cast %4 : vector<1x8x128xf32> to vector<8x128xf32>
    %6 = vector.extract_strided_slice %3 {offsets = [2, 0, 0], sizes = [1, 8, 128], strides = [1, 1, 1]} : vector<18x8x128xf32> to vector<1x8x128xf32>
    %7 = vector.shape_cast %6 : vector<1x8x128xf32> to vector<8x128xf32>
    %8 = vector.extract_strided_slice %3 {offsets = [4, 0, 0], sizes = [1, 8, 128], strides = [1, 1, 1]} : vector<18x8x128xf32> to vector<1x8x128xf32>
    %9 = vector.shape_cast %8 : vector<1x8x128xf32> to vector<8x128xf32>
    %10 = vector.extract_strided_slice %3 {offsets = [6, 0, 0], sizes = [1, 8, 128], strides = [1, 1, 1]} : vector<18x8x128xf32> to vector<1x8x128xf32>
    %11 = vector.shape_cast %10 : vector<1x8x128xf32> to vector<8x128xf32>
    %12 = vector.extract_strided_slice %3 {offsets = [8, 0, 0], sizes = [1, 8, 128], strides = [1, 1, 1]} : vector<18x8x128xf32> to vector<1x8x128xf32>
    %13 = vector.shape_cast %12 : vector<1x8x128xf32> to vector<8x128xf32>
    %14 = vector.extract_strided_slice %3 {offsets = [10, 0, 0], sizes = [1, 8, 128], strides = [1, 1, 1]} : vector<18x8x128xf32> to vector<1x8x128xf32>
    %15 = vector.shape_cast %14 : vector<1x8x128xf32> to vector<8x128xf32>
    %16 = vector.extract_strided_slice %3 {offsets = [12, 0, 0], sizes = [1, 8, 128], strides = [1, 1, 1]} : vector<18x8x128xf32> to vector<1x8x128xf32>
    %17 = vector.shape_cast %16 : vector<1x8x128xf32> to vector<8x128xf32>
    %18 = vector.extract_strided_slice %3 {offsets = [14, 0, 0], sizes = [1, 8, 128], strides = [1, 1, 1]} : vector<18x8x128xf32> to vector<1x8x128xf32>
    %19 = vector.shape_cast %18 : vector<1x8x128xf32> to vector<8x128xf32>
    %20 = tpu.concatenate %5, %7, %9, %11, %13, %15, %17, %19 in 0 : vector<8x128xf32>, vector<8x128xf32>, vector<8x128xf32>, vector<8x128xf32>, vector<8x128xf32>, vector<8x128xf32>, vector<8x128xf32>, vector<8x128xf32> -> vector<64x128xf32>
    %21 = arith.truncf %20 : vector<64x128xf32> to vector<64x128xbf16>
    %c0_3 = arith.constant 0 : index
    %c0_4 = arith.constant 0 : index
    %c0_5 = arith.constant 0 : index
    %22 = vector.load %arg5[%c0_3, %c0_4, %c0_5] : memref<9x128x128xbf16, #tpu.memory_space<vmem>>, vector<1x128x128xbf16>
    %23 = vector.shape_cast %22 : vector<1x128x128xbf16> to vector<128x128xbf16>
    %cst_6 = arith.constant dense<0.000000e+00> : vector<64x128xf32>
    %24 = tpu.matmul %21, %23, %cst_6 {dimension_numbers = #tpu.dot_dimension_numbers<[1], [0], [0], [1], [0, 0, 1, 1], [], []>} : vector<64x128xbf16>, vector<128x128xbf16>, vector<64x128xf32> -> vector<64x128xf32>
    %25 = arith.addf %0, %24 : vector<64x128xf32>
    %26 = vector.extract_strided_slice %3 {offsets = [1, 0, 0], sizes = [1, 8, 128], strides = [1, 1, 1]} : vector<18x8x128xf32> to vector<1x8x128xf32>
    %27 = vector.shape_cast %26 : vector<1x8x128xf32> to vector<8x128xf32>
    %28 = vector.extract_strided_slice %3 {offsets = [3, 0, 0], sizes = [1, 8, 128], strides = [1, 1, 1]} : vector<18x8x128xf32> to vector<1x8x128xf32>
    %29 = vector.shape_cast %28 : vector<1x8x128xf32> to vector<8x128xf32>
    %30 = vector.extract_strided_slice %3 {offsets = [5, 0, 0], sizes = [1, 8, 128], strides = [1, 1, 1]} : vector<18x8x128xf32> to vector<1x8x128xf32>
    %31 = vector.shape_cast %30 : vector<1x8x128xf32> to vector<8x128xf32>
    %32 = vector.extract_strided_slice %3 {offsets = [7, 0, 0], sizes = [1, 8, 128], strides = [1, 1, 1]} : vector<18x8x128xf32> to vector<1x8x128xf32>
    %33 = vector.shape_cast %32 : vector<1x8x128xf32> to vector<8x128xf32>
    %34 = vector.extract_strided_slice %3 {offsets = [9, 0, 0], sizes = [1, 8, 128], strides = [1, 1, 1]} : vector<18x8x128xf32> to vector<1x8x128xf32>
    %35 = vector.shape_cast %34 : vector<1x8x128xf32> to vector<8x128xf32>
    %36 = vector.extract_strided_slice %3 {offsets = [11, 0, 0], sizes = [1, 8, 128], strides = [1, 1, 1]} : vector<18x8x128xf32> to vector<1x8x128xf32>
    %37 = vector.shape_cast %36 : vector<1x8x128xf32> to vector<8x128xf32>
    %38 = vector.extract_strided_slice %3 {offsets = [13, 0, 0], sizes = [1, 8, 128], strides = [1, 1, 1]} : vector<18x8x128xf32> to vector<1x8x128xf32>
    %39 = vector.shape_cast %38 : vector<1x8x128xf32> to vector<8x128xf32>
    %40 = vector.extract_strided_slice %3 {offsets = [15, 0, 0], sizes = [1, 8, 128], strides = [1, 1, 1]} : vector<18x8x128xf32> to vector<1x8x128xf32>
    %41 = vector.shape_cast %40 : vector<1x8x128xf32> to vector<8x128xf32>
    %42 = tpu.concatenate %27, %29, %31, %33, %35, %37, %39, %41 in 0 : vector<8x128xf32>, vector<8x128xf32>, vector<8x128xf32>, vector<8x128xf32>, vector<8x128xf32>, vector<8x128xf32>, vector<8x128xf32>, vector<8x128xf32> -> vector<64x128xf32>
    %43 = arith.truncf %42 : vector<64x128xf32> to vector<64x128xbf16>
    %c3 = arith.constant 3 : index
    %c0_7 = arith.constant 0 : index
    %c0_8 = arith.constant 0 : index
    %44 = vector.load %arg5[%c3, %c0_7, %c0_8] : memref<9x128x128xbf16, #tpu.memory_space<vmem>>, vector<1x128x128xbf16>
    %45 = vector.shape_cast %44 : vector<1x128x128xbf16> to vector<128x128xbf16>
    %cst_9 = arith.constant dense<0.000000e+00> : vector<64x128xf32>
    %46 = tpu.matmul %43, %45, %cst_9 {dimension_numbers = #tpu.dot_dimension_numbers<[1], [0], [0], [1], [0, 0, 1, 1], [], []>} : vector<64x128xbf16>, vector<128x128xbf16>, vector<64x128xf32> -> vector<64x128xf32>
    %47 = arith.addf %25, %46 : vector<64x128xf32>
    %48 = vector.extract_strided_slice %3 {offsets = [2, 0, 0], sizes = [1, 8, 128], strides = [1, 1, 1]} : vector<18x8x128xf32> to vector<1x8x128xf32>
    %49 = vector.shape_cast %48 : vector<1x8x128xf32> to vector<8x128xf32>
    %50 = vector.extract_strided_slice %3 {offsets = [4, 0, 0], sizes = [1, 8, 128], strides = [1, 1, 1]} : vector<18x8x128xf32> to vector<1x8x128xf32>
    %51 = vector.shape_cast %50 : vector<1x8x128xf32> to vector<8x128xf32>
    %52 = vector.extract_strided_slice %3 {offsets = [6, 0, 0], sizes = [1, 8, 128], strides = [1, 1, 1]} : vector<18x8x128xf32> to vector<1x8x128xf32>
    %53 = vector.shape_cast %52 : vector<1x8x128xf32> to vector<8x128xf32>
    %54 = vector.extract_strided_slice %3 {offsets = [8, 0, 0], sizes = [1, 8, 128], strides = [1, 1, 1]} : vector<18x8x128xf32> to vector<1x8x128xf32>
    %55 = vector.shape_cast %54 : vector<1x8x128xf32> to vector<8x128xf32>
    %56 = vector.extract_strided_slice %3 {offsets = [10, 0, 0], sizes = [1, 8, 128], strides = [1, 1, 1]} : vector<18x8x128xf32> to vector<1x8x128xf32>
    %57 = vector.shape_cast %56 : vector<1x8x128xf32> to vector<8x128xf32>
    %58 = vector.extract_strided_slice %3 {offsets = [12, 0, 0], sizes = [1, 8, 128], strides = [1, 1, 1]} : vector<18x8x128xf32> to vector<1x8x128xf32>
    %59 = vector.shape_cast %58 : vector<1x8x128xf32> to vector<8x128xf32>
    %60 = vector.extract_strided_slice %3 {offsets = [14, 0, 0], sizes = [1, 8, 128], strides = [1, 1, 1]} : vector<18x8x128xf32> to vector<1x8x128xf32>
    %61 = vector.shape_cast %60 : vector<1x8x128xf32> to vector<8x128xf32>
    %62 = vector.extract_strided_slice %3 {offsets = [16, 0, 0], sizes = [1, 8, 128], strides = [1, 1, 1]} : vector<18x8x128xf32> to vector<1x8x128xf32>
    %63 = vector.shape_cast %62 : vector<1x8x128xf32> to vector<8x128xf32>
    %64 = tpu.concatenate %49, %51, %53, %55, %57, %59, %61, %63 in 0 : vector<8x128xf32>, vector<8x128xf32>, vector<8x128xf32>, vector<8x128xf32>, vector<8x128xf32>, vector<8x128xf32>, vector<8x128xf32>, vector<8x128xf32> -> vector<64x128xf32>
    %65 = arith.truncf %64 : vector<64x128xf32> to vector<64x128xbf16>
    %c6 = arith.constant 6 : index
    %c0_10 = arith.constant 0 : index
    %c0_11 = arith.constant 0 : index
    %66 = vector.load %arg5[%c6, %c0_10, %c0_11] : memref<9x128x128xbf16, #tpu.memory_space<vmem>>, vector<1x128x128xbf16>
    %67 = vector.shape_cast %66 : vector<1x128x128xbf16> to vector<128x128xbf16>
    %cst_12 = arith.constant dense<0.000000e+00> : vector<64x128xf32>
    %68 = tpu.matmul %65, %67, %cst_12 {dimension_numbers = #tpu.dot_dimension_numbers<[1], [0], [0], [1], [0, 0, 1, 1], [], []>} : vector<64x128xbf16>, vector<128x128xbf16>, vector<64x128xf32> -> vector<64x128xf32>
    %69 = arith.addf %47, %68 : vector<64x128xf32>
    %c0_13 = arith.constant 0 : index
    %c0_14 = arith.constant 0 : index
    %c0_15 = arith.constant 0 : index
    %c0_16 = arith.constant 0 : index
    %70 = vector.load %arg3[%c0_13, %c0_14, %c0_15, %c0_16] : memref<1x18x8x128xbf16, #tpu.memory_space<vmem>>, vector<1x18x8x128xbf16>
    %71 = vector.shape_cast %70 : vector<1x18x8x128xbf16> to vector<18x8x128xbf16>
    %72 = arith.extf %71 : vector<18x8x128xbf16> to vector<18x8x128xf32>
    %73 = vector.extract_strided_slice %72 {offsets = [0, 0, 0], sizes = [1, 8, 128], strides = [1, 1, 1]} : vector<18x8x128xf32> to vector<1x8x128xf32>
    %74 = vector.shape_cast %73 : vector<1x8x128xf32> to vector<8x128xf32>
    %75 = vector.extract_strided_slice %72 {offsets = [2, 0, 0], sizes = [1, 8, 128], strides = [1, 1, 1]} : vector<18x8x128xf32> to vector<1x8x128xf32>
    %76 = vector.shape_cast %75 : vector<1x8x128xf32> to vector<8x128xf32>
    %77 = vector.extract_strided_slice %72 {offsets = [4, 0, 0], sizes = [1, 8, 128], strides = [1, 1, 1]} : vector<18x8x128xf32> to vector<1x8x128xf32>
    %78 = vector.shape_cast %77 : vector<1x8x128xf32> to vector<8x128xf32>
    %79 = vector.extract_strided_slice %72 {offsets = [6, 0, 0], sizes = [1, 8, 128], strides = [1, 1, 1]} : vector<18x8x128xf32> to vector<1x8x128xf32>
    %80 = vector.shape_cast %79 : vector<1x8x128xf32> to vector<8x128xf32>
    %81 = vector.extract_strided_slice %72 {offsets = [8, 0, 0], sizes = [1, 8, 128], strides = [1, 1, 1]} : vector<18x8x128xf32> to vector<1x8x128xf32>
    %82 = vector.shape_cast %81 : vector<1x8x128xf32> to vector<8x128xf32>
    %83 = vector.extract_strided_slice %72 {offsets = [10, 0, 0], sizes = [1, 8, 128], strides = [1, 1, 1]} : vector<18x8x128xf32> to vector<1x8x128xf32>
    %84 = vector.shape_cast %83 : vector<1x8x128xf32> to vector<8x128xf32>
    %85 = vector.extract_strided_slice %72 {offsets = [12, 0, 0], sizes = [1, 8, 128], strides = [1, 1, 1]} : vector<18x8x128xf32> to vector<1x8x128xf32>
    %86 = vector.shape_cast %85 : vector<1x8x128xf32> to vector<8x128xf32>
    %87 = vector.extract_strided_slice %72 {offsets = [14, 0, 0], sizes = [1, 8, 128], strides = [1, 1, 1]} : vector<18x8x128xf32> to vector<1x8x128xf32>
    %88 = vector.shape_cast %87 : vector<1x8x128xf32> to vector<8x128xf32>
    %89 = tpu.concatenate %74, %76, %78, %80, %82, %84, %86, %88 in 0 : vector<8x128xf32>, vector<8x128xf32>, vector<8x128xf32>, vector<8x128xf32>, vector<8x128xf32>, vector<8x128xf32>, vector<8x128xf32>, vector<8x128xf32> -> vector<64x128xf32>
    %90 = arith.truncf %89 : vector<64x128xf32> to vector<64x128xbf16>
    %c1 = arith.constant 1 : index
    %c0_17 = arith.constant 0 : index
    %c0_18 = arith.constant 0 : index
    %91 = vector.load %arg5[%c1, %c0_17, %c0_18] : memref<9x128x128xbf16, #tpu.memory_space<vmem>>, vector<1x128x128xbf16>
    %92 = vector.shape_cast %91 : vector<1x128x128xbf16> to vector<128x128xbf16>
    %cst_19 = arith.constant dense<0.000000e+00> : vector<64x128xf32>
    %93 = tpu.matmul %90, %92, %cst_19 {dimension_numbers = #tpu.dot_dimension_numbers<[1], [0], [0], [1], [0, 0, 1, 1], [], []>} : vector<64x128xbf16>, vector<128x128xbf16>, vector<64x128xf32> -> vector<64x128xf32>
    %94 = arith.addf %69, %93 : vector<64x128xf32>
    %95 = vector.extract_strided_slice %72 {offsets = [1, 0, 0], sizes = [1, 8, 128], strides = [1, 1, 1]} : vector<18x8x128xf32> to vector<1x8x128xf32>
    %96 = vector.shape_cast %95 : vector<1x8x128xf32> to vector<8x128xf32>
    %97 = vector.extract_strided_slice %72 {offsets = [3, 0, 0], sizes = [1, 8, 128], strides = [1, 1, 1]} : vector<18x8x128xf32> to vector<1x8x128xf32>
    %98 = vector.shape_cast %97 : vector<1x8x128xf32> to vector<8x128xf32>
    %99 = vector.extract_strided_slice %72 {offsets = [5, 0, 0], sizes = [1, 8, 128], strides = [1, 1, 1]} : vector<18x8x128xf32> to vector<1x8x128xf32>
    %100 = vector.shape_cast %99 : vector<1x8x128xf32> to vector<8x128xf32>
    %101 = vector.extract_strided_slice %72 {offsets = [7, 0, 0], sizes = [1, 8, 128], strides = [1, 1, 1]} : vector<18x8x128xf32> to vector<1x8x128xf32>
    %102 = vector.shape_cast %101 : vector<1x8x128xf32> to vector<8x128xf32>
    %103 = vector.extract_strided_slice %72 {offsets = [9, 0, 0], sizes = [1, 8, 128], strides = [1, 1, 1]} : vector<18x8x128xf32> to vector<1x8x128xf32>
    %104 = vector.shape_cast %103 : vector<1x8x128xf32> to vector<8x128xf32>
    %105 = vector.extract_strided_slice %72 {offsets = [11, 0, 0], sizes = [1, 8, 128], strides = [1, 1, 1]} : vector<18x8x128xf32> to vector<1x8x128xf32>
    %106 = vector.shape_cast %105 : vector<1x8x128xf32> to vector<8x128xf32>
    %107 = vector.extract_strided_slice %72 {offsets = [13, 0, 0], sizes = [1, 8, 128], strides = [1, 1, 1]} : vector<18x8x128xf32> to vector<1x8x128xf32>
    %108 = vector.shape_cast %107 : vector<1x8x128xf32> to vector<8x128xf32>
    %109 = vector.extract_strided_slice %72 {offsets = [15, 0, 0], sizes = [1, 8, 128], strides = [1, 1, 1]} : vector<18x8x128xf32> to vector<1x8x128xf32>
    %110 = vector.shape_cast %109 : vector<1x8x128xf32> to vector<8x128xf32>
    %111 = tpu.concatenate %96, %98, %100, %102, %104, %106, %108, %110 in 0 : vector<8x128xf32>, vector<8x128xf32>, vector<8x128xf32>, vector<8x128xf32>, vector<8x128xf32>, vector<8x128xf32>, vector<8x128xf32>, vector<8x128xf32> -> vector<64x128xf32>
    %112 = arith.truncf %111 : vector<64x128xf32> to vector<64x128xbf16>
    %c4 = arith.constant 4 : index
    %c0_20 = arith.constant 0 : index
    %c0_21 = arith.constant 0 : index
    %113 = vector.load %arg5[%c4, %c0_20, %c0_21] : memref<9x128x128xbf16, #tpu.memory_space<vmem>>, vector<1x128x128xbf16>
    %114 = vector.shape_cast %113 : vector<1x128x128xbf16> to vector<128x128xbf16>
    %cst_22 = arith.constant dense<0.000000e+00> : vector<64x128xf32>
    %115 = tpu.matmul %112, %114, %cst_22 {dimension_numbers = #tpu.dot_dimension_numbers<[1], [0], [0], [1], [0, 0, 1, 1], [], []>} : vector<64x128xbf16>, vector<128x128xbf16>, vector<64x128xf32> -> vector<64x128xf32>
    %116 = arith.addf %94, %115 : vector<64x128xf32>
    %117 = vector.extract_strided_slice %72 {offsets = [2, 0, 0], sizes = [1, 8, 128], strides = [1, 1, 1]} : vector<18x8x128xf32> to vector<1x8x128xf32>
    %118 = vector.shape_cast %117 : vector<1x8x128xf32> to vector<8x128xf32>
    %119 = vector.extract_strided_slice %72 {offsets = [4, 0, 0], sizes = [1, 8, 128], strides = [1, 1, 1]} : vector<18x8x128xf32> to vector<1x8x128xf32>
    %120 = vector.shape_cast %119 : vector<1x8x128xf32> to vector<8x128xf32>
    %121 = vector.extract_strided_slice %72 {offsets = [6, 0, 0], sizes = [1, 8, 128], strides = [1, 1, 1]} : vector<18x8x128xf32> to vector<1x8x128xf32>
    %122 = vector.shape_cast %121 : vector<1x8x128xf32> to vector<8x128xf32>
    %123 = vector.extract_strided_slice %72 {offsets = [8, 0, 0], sizes = [1, 8, 128], strides = [1, 1, 1]} : vector<18x8x128xf32> to vector<1x8x128xf32>
    %124 = vector.shape_cast %123 : vector<1x8x128xf32> to vector<8x128xf32>
    %125 = vector.extract_strided_slice %72 {offsets = [10, 0, 0], sizes = [1, 8, 128], strides = [1, 1, 1]} : vector<18x8x128xf32> to vector<1x8x128xf32>
    %126 = vector.shape_cast %125 : vector<1x8x128xf32> to vector<8x128xf32>
    %127 = vector.extract_strided_slice %72 {offsets = [12, 0, 0], sizes = [1, 8, 128], strides = [1, 1, 1]} : vector<18x8x128xf32> to vector<1x8x128xf32>
    %128 = vector.shape_cast %127 : vector<1x8x128xf32> to vector<8x128xf32>
    %129 = vector.extract_strided_slice %72 {offsets = [14, 0, 0], sizes = [1, 8, 128], strides = [1, 1, 1]} : vector<18x8x128xf32> to vector<1x8x128xf32>
    %130 = vector.shape_cast %129 : vector<1x8x128xf32> to vector<8x128xf32>
    %131 = vector.extract_strided_slice %72 {offsets = [16, 0, 0], sizes = [1, 8, 128], strides = [1, 1, 1]} : vector<18x8x128xf32> to vector<1x8x128xf32>
    %132 = vector.shape_cast %131 : vector<1x8x128xf32> to vector<8x128xf32>
    %133 = tpu.concatenate %118, %120, %122, %124, %126, %128, %130, %132 in 0 : vector<8x128xf32>, vector<8x128xf32>, vector<8x128xf32>, vector<8x128xf32>, vector<8x128xf32>, vector<8x128xf32>, vector<8x128xf32>, vector<8x128xf32> -> vector<64x128xf32>
    %134 = arith.truncf %133 : vector<64x128xf32> to vector<64x128xbf16>
    %c7 = arith.constant 7 : index
    %c0_23 = arith.constant 0 : index
    %c0_24 = arith.constant 0 : index
    %135 = vector.load %arg5[%c7, %c0_23, %c0_24] : memref<9x128x128xbf16, #tpu.memory_space<vmem>>, vector<1x128x128xbf16>
    %136 = vector.shape_cast %135 : vector<1x128x128xbf16> to vector<128x128xbf16>
    %cst_25 = arith.constant dense<0.000000e+00> : vector<64x128xf32>
    %137 = tpu.matmul %134, %136, %cst_25 {dimension_numbers = #tpu.dot_dimension_numbers<[1], [0], [0], [1], [0, 0, 1, 1], [], []>} : vector<64x128xbf16>, vector<128x128xbf16>, vector<64x128xf32> -> vector<64x128xf32>
    %138 = arith.addf %116, %137 : vector<64x128xf32>
    %c0_26 = arith.constant 0 : index
    %c0_27 = arith.constant 0 : index
    %c0_28 = arith.constant 0 : index
    %c0_29 = arith.constant 0 : index
    %139 = vector.load %arg4[%c0_26, %c0_27, %c0_28, %c0_29] : memref<1x18x8x128xbf16, #tpu.memory_space<vmem>>, vector<1x18x8x128xbf16>
    %140 = vector.shape_cast %139 : vector<1x18x8x128xbf16> to vector<18x8x128xbf16>
    %141 = arith.extf %140 : vector<18x8x128xbf16> to vector<18x8x128xf32>
    %142 = vector.extract_strided_slice %141 {offsets = [0, 0, 0], sizes = [1, 8, 128], strides = [1, 1, 1]} : vector<18x8x128xf32> to vector<1x8x128xf32>
    %143 = vector.shape_cast %142 : vector<1x8x128xf32> to vector<8x128xf32>
    %144 = vector.extract_strided_slice %141 {offsets = [2, 0, 0], sizes = [1, 8, 128], strides = [1, 1, 1]} : vector<18x8x128xf32> to vector<1x8x128xf32>
    %145 = vector.shape_cast %144 : vector<1x8x128xf32> to vector<8x128xf32>
    %146 = vector.extract_strided_slice %141 {offsets = [4, 0, 0], sizes = [1, 8, 128], strides = [1, 1, 1]} : vector<18x8x128xf32> to vector<1x8x128xf32>
    %147 = vector.shape_cast %146 : vector<1x8x128xf32> to vector<8x128xf32>
    %148 = vector.extract_strided_slice %141 {offsets = [6, 0, 0], sizes = [1, 8, 128], strides = [1, 1, 1]} : vector<18x8x128xf32> to vector<1x8x128xf32>
    %149 = vector.shape_cast %148 : vector<1x8x128xf32> to vector<8x128xf32>
    %150 = vector.extract_strided_slice %141 {offsets = [8, 0, 0], sizes = [1, 8, 128], strides = [1, 1, 1]} : vector<18x8x128xf32> to vector<1x8x128xf32>
    %151 = vector.shape_cast %150 : vector<1x8x128xf32> to vector<8x128xf32>
    %152 = vector.extract_strided_slice %141 {offsets = [10, 0, 0], sizes = [1, 8, 128], strides = [1, 1, 1]} : vector<18x8x128xf32> to vector<1x8x128xf32>
    %153 = vector.shape_cast %152 : vector<1x8x128xf32> to vector<8x128xf32>
    %154 = vector.extract_strided_slice %141 {offsets = [12, 0, 0], sizes = [1, 8, 128], strides = [1, 1, 1]} : vector<18x8x128xf32> to vector<1x8x128xf32>
    %155 = vector.shape_cast %154 : vector<1x8x128xf32> to vector<8x128xf32>
    %156 = vector.extract_strided_slice %141 {offsets = [14, 0, 0], sizes = [1, 8, 128], strides = [1, 1, 1]} : vector<18x8x128xf32> to vector<1x8x128xf32>
    %157 = vector.shape_cast %156 : vector<1x8x128xf32> to vector<8x128xf32>
    %158 = tpu.concatenate %143, %145, %147, %149, %151, %153, %155, %157 in 0 : vector<8x128xf32>, vector<8x128xf32>, vector<8x128xf32>, vector<8x128xf32>, vector<8x128xf32>, vector<8x128xf32>, vector<8x128xf32>, vector<8x128xf32> -> vector<64x128xf32>
    %159 = arith.truncf %158 : vector<64x128xf32> to vector<64x128xbf16>
    %c2 = arith.constant 2 : index
    %c0_30 = arith.constant 0 : index
    %c0_31 = arith.constant 0 : index
    %160 = vector.load %arg5[%c2, %c0_30, %c0_31] : memref<9x128x128xbf16, #tpu.memory_space<vmem>>, vector<1x128x128xbf16>
    %161 = vector.shape_cast %160 : vector<1x128x128xbf16> to vector<128x128xbf16>
    %cst_32 = arith.constant dense<0.000000e+00> : vector<64x128xf32>
    %162 = tpu.matmul %159, %161, %cst_32 {dimension_numbers = #tpu.dot_dimension_numbers<[1], [0], [0], [1], [0, 0, 1, 1], [], []>} : vector<64x128xbf16>, vector<128x128xbf16>, vector<64x128xf32> -> vector<64x128xf32>
    %163 = arith.addf %138, %162 : vector<64x128xf32>
    %164 = vector.extract_strided_slice %141 {offsets = [1, 0, 0], sizes = [1, 8, 128], strides = [1, 1, 1]} : vector<18x8x128xf32> to vector<1x8x128xf32>
    %165 = vector.shape_cast %164 : vector<1x8x128xf32> to vector<8x128xf32>
    %166 = vector.extract_strided_slice %141 {offsets = [3, 0, 0], sizes = [1, 8, 128], strides = [1, 1, 1]} : vector<18x8x128xf32> to vector<1x8x128xf32>
    %167 = vector.shape_cast %166 : vector<1x8x128xf32> to vector<8x128xf32>
    %168 = vector.extract_strided_slice %141 {offsets = [5, 0, 0], sizes = [1, 8, 128], strides = [1, 1, 1]} : vector<18x8x128xf32> to vector<1x8x128xf32>
    %169 = vector.shape_cast %168 : vector<1x8x128xf32> to vector<8x128xf32>
    %170 = vector.extract_strided_slice %141 {offsets = [7, 0, 0], sizes = [1, 8, 128], strides = [1, 1, 1]} : vector<18x8x128xf32> to vector<1x8x128xf32>
    %171 = vector.shape_cast %170 : vector<1x8x128xf32> to vector<8x128xf32>
    %172 = vector.extract_strided_slice %141 {offsets = [9, 0, 0], sizes = [1, 8, 128], strides = [1, 1, 1]} : vector<18x8x128xf32> to vector<1x8x128xf32>
    %173 = vector.shape_cast %172 : vector<1x8x128xf32> to vector<8x128xf32>
    %174 = vector.extract_strided_slice %141 {offsets = [11, 0, 0], sizes = [1, 8, 128], strides = [1, 1, 1]} : vector<18x8x128xf32> to vector<1x8x128xf32>
    %175 = vector.shape_cast %174 : vector<1x8x128xf32> to vector<8x128xf32>
    %176 = vector.extract_strided_slice %141 {offsets = [13, 0, 0], sizes = [1, 8, 128], strides = [1, 1, 1]} : vector<18x8x128xf32> to vector<1x8x128xf32>
    %177 = vector.shape_cast %176 : vector<1x8x128xf32> to vector<8x128xf32>
    %178 = vector.extract_strided_slice %141 {offsets = [15, 0, 0], sizes = [1, 8, 128], strides = [1, 1, 1]} : vector<18x8x128xf32> to vector<1x8x128xf32>
    %179 = vector.shape_cast %178 : vector<1x8x128xf32> to vector<8x128xf32>
    %180 = tpu.concatenate %165, %167, %169, %171, %173, %175, %177, %179 in 0 : vector<8x128xf32>, vector<8x128xf32>, vector<8x128xf32>, vector<8x128xf32>, vector<8x128xf32>, vector<8x128xf32>, vector<8x128xf32>, vector<8x128xf32> -> vector<64x128xf32>
    %181 = arith.truncf %180 : vector<64x128xf32> to vector<64x128xbf16>
    %c5 = arith.constant 5 : index
    %c0_33 = arith.constant 0 : index
    %c0_34 = arith.constant 0 : index
    %182 = vector.load %arg5[%c5, %c0_33, %c0_34] : memref<9x128x128xbf16, #tpu.memory_space<vmem>>, vector<1x128x128xbf16>
    %183 = vector.shape_cast %182 : vector<1x128x128xbf16> to vector<128x128xbf16>
    %cst_35 = arith.constant dense<0.000000e+00> : vector<64x128xf32>
    %184 = tpu.matmul %181, %183, %cst_35 {dimension_numbers = #tpu.dot_dimension_numbers<[1], [0], [0], [1], [0, 0, 1, 1], [], []>} : vector<64x128xbf16>, vector<128x128xbf16>, vector<64x128xf32> -> vector<64x128xf32>
    %185 = arith.addf %163, %184 : vector<64x128xf32>
    %186 = vector.extract_strided_slice %141 {offsets = [2, 0, 0], sizes = [1, 8, 128], strides = [1, 1, 1]} : vector<18x8x128xf32> to vector<1x8x128xf32>
    %187 = vector.shape_cast %186 : vector<1x8x128xf32> to vector<8x128xf32>
    %188 = vector.extract_strided_slice %141 {offsets = [4, 0, 0], sizes = [1, 8, 128], strides = [1, 1, 1]} : vector<18x8x128xf32> to vector<1x8x128xf32>
    %189 = vector.shape_cast %188 : vector<1x8x128xf32> to vector<8x128xf32>
    %190 = vector.extract_strided_slice %141 {offsets = [6, 0, 0], sizes = [1, 8, 128], strides = [1, 1, 1]} : vector<18x8x128xf32> to vector<1x8x128xf32>
    %191 = vector.shape_cast %190 : vector<1x8x128xf32> to vector<8x128xf32>
    %192 = vector.extract_strided_slice %141 {offsets = [8, 0, 0], sizes = [1, 8, 128], strides = [1, 1, 1]} : vector<18x8x128xf32> to vector<1x8x128xf32>
    %193 = vector.shape_cast %192 : vector<1x8x128xf32> to vector<8x128xf32>
    %194 = vector.extract_strided_slice %141 {offsets = [10, 0, 0], sizes = [1, 8, 128], strides = [1, 1, 1]} : vector<18x8x128xf32> to vector<1x8x128xf32>
    %195 = vector.shape_cast %194 : vector<1x8x128xf32> to vector<8x128xf32>
    %196 = vector.extract_strided_slice %141 {offsets = [12, 0, 0], sizes = [1, 8, 128], strides = [1, 1, 1]} : vector<18x8x128xf32> to vector<1x8x128xf32>
    %197 = vector.shape_cast %196 : vector<1x8x128xf32> to vector<8x128xf32>
    %198 = vector.extract_strided_slice %141 {offsets = [14, 0, 0], sizes = [1, 8, 128], strides = [1, 1, 1]} : vector<18x8x128xf32> to vector<1x8x128xf32>
    %199 = vector.shape_cast %198 : vector<1x8x128xf32> to vector<8x128xf32>
    %200 = vector.extract_strided_slice %141 {offsets = [16, 0, 0], sizes = [1, 8, 128], strides = [1, 1, 1]} : vector<18x8x128xf32> to vector<1x8x128xf32>
    %201 = vector.shape_cast %200 : vector<1x8x128xf32> to vector<8x128xf32>
    %202 = tpu.concatenate %187, %189, %191, %193, %195, %197, %199, %201 in 0 : vector<8x128xf32>, vector<8x128xf32>, vector<8x128xf32>, vector<8x128xf32>, vector<8x128xf32>, vector<8x128xf32>, vector<8x128xf32>, vector<8x128xf32> -> vector<64x128xf32>
    %203 = arith.truncf %202 : vector<64x128xf32> to vector<64x128xbf16>
    %c8 = arith.constant 8 : index
    %c0_36 = arith.constant 0 : index
    %c0_37 = arith.constant 0 : index
    %204 = vector.load %arg5[%c8, %c0_36, %c0_37] : memref<9x128x128xbf16, #tpu.memory_space<vmem>>, vector<1x128x128xbf16>
    %205 = vector.shape_cast %204 : vector<1x128x128xbf16> to vector<128x128xbf16>
    %cst_38 = arith.constant dense<0.000000e+00> : vector<64x128xf32>
    %206 = tpu.matmul %203, %205, %cst_38 {dimension_numbers = #tpu.dot_dimension_numbers<[1], [0], [0], [1], [0, 0, 1, 1], [], []>} : vector<64x128xbf16>, vector<128x128xbf16>, vector<64x128xf32> -> vector<64x128xf32>
    %207 = arith.addf %185, %206 : vector<64x128xf32>
    %208 = arith.truncf %207 : vector<64x128xf32> to vector<64x128xbf16>
    %c0_39 = arith.constant 0 : index
    %c0_40 = arith.constant 0 : index
    %209 = vector.load %arg6[%c0_39, %c0_40] : memref<64x128xbf16, #tpu.memory_space<vmem>>, vector<64x128xbf16>
    tpu.vector_store %arg6[%c0_39, %c0_40], %208 {strides = array<i32>} : memref<64x128xbf16, #tpu.memory_space<vmem>>, vector<64x128xbf16>,
    %cst_41 = arith.constant dense<0.000000e+00> : vector<128xf32>
    %210 = vector.multi_reduction <add>, %207, %cst_41 [0] : vector<64x128xf32> to vector<128xf32>
    %211 = vector.shape_cast %210 : vector<128xf32> to vector<1x128xf32>
    %212 = arith.mulf %207, %207 : vector<64x128xf32>
    %cst_42 = arith.constant dense<0.000000e+00> : vector<128xf32>
    %213 = vector.multi_reduction <add>, %212, %cst_42 [0] : vector<64x128xf32> to vector<128xf32>
    %214 = vector.shape_cast %213 : vector<128xf32> to vector<1x128xf32>
    %cst_43 = arith.constant 0.000000e+00 : f32
    %215 = vector.broadcast %cst_43 : f32 to vector<6x128xf32>
    %216 = tpu.concatenate %211, %214, %215 in 0 : vector<1x128xf32>, vector<1x128xf32>, vector<6x128xf32> -> vector<8x128xf32>
    %c0_44 = arith.constant 0 : index
    %c0_45 = arith.constant 0 : index
    %217 = vector.load %arg7[%c0_44, %c0_45] : memref<8x128xf32, #tpu.memory_space<vmem>>, vector<8x128xf32>
    tpu.vector_store %arg7[%c0_44, %c0_45], %216 {strides = array<i32>} : memref<8x128xf32, #tpu.memory_space<vmem>>, vector<8x128xf32>,
    return
  }
  func.func @transform_0(%arg0: i32, %arg1: i32) -> (i32, i32, i32, i32) {
    %c0_i32 = arith.constant 0 : i32
    %c0_i32_0 = arith.constant 0 : i32
    %c0_i32_1 = arith.constant 0 : i32
    %c0_i32_2 = arith.constant 0 : i32
    return %arg0, %c0_i32, %c0_i32_0, %c0_i32_1 : i32, i32, i32, i32
  }
  func.func @transform_1(%arg0: i32, %arg1: i32) -> (i32, i32, i32, i32) {
    %c0_i32 = arith.constant 0 : i32
    %c0_i32_0 = arith.constant 0 : i32
    %c0_i32_1 = arith.constant 0 : i32
    %c0_i32_2 = arith.constant 0 : i32
    return %arg0, %c0_i32, %c0_i32_0, %c0_i32_1 : i32, i32, i32, i32
  }
  func.func @transform_2(%arg0: i32, %arg1: i32) -> (i32, i32, i32, i32) {
    %c0_i32 = arith.constant 0 : i32
    %c0_i32_0 = arith.constant 0 : i32
    %c0_i32_1 = arith.constant 0 : i32
    %c0_i32_2 = arith.constant 0 : i32
    return %arg0, %c0_i32, %c0_i32_0, %c0_i32_1 : i32, i32, i32, i32
  }
  func.func @transform_3(%arg0: i32, %arg1: i32) -> (i32, i32, i32) {
    %c0_i32 = arith.constant 0 : i32
    %c0_i32_0 = arith.constant 0 : i32
    %c0_i32_1 = arith.constant 0 : i32
    return %c0_i32, %c0_i32_0, %arg1 : i32, i32, i32
  }
  func.func @transform_4(%arg0: i32, %arg1: i32) -> (i32, i32) {
    %c0_i32 = arith.constant 0 : i32
    return %arg0, %arg1 : i32, i32
  }
  func.func @transform_5(%arg0: i32, %arg1: i32) -> (i32, i32) {
    %c0_i32 = arith.constant 0 : i32
    return %arg0, %arg1 : i32, i32
  }
}

module attributes {stable_mosaic.version = 11 : i64} {
  func.func @_bn_relu_kernel(%arg0: i32, %arg1: i32, %arg2: memref<128x128xbf16, #tpu.memory_space<vmem>>, %arg3: memref<1x128xf32, #tpu.memory_space<vmem>>, %arg4: memref<1x128xf32, #tpu.memory_space<vmem>>, %arg5: memref<128x128xbf16, #tpu.memory_space<vmem>>) attributes {dimension_semantics = [#tpu.dimension_semantics<parallel>, #tpu.dimension_semantics<parallel>], iteration_bounds = array<i64: 1, 1>, scalar_prefetch = 0 : i64, scratch_operands = 0 : i64, tpu.core_type = #tpu.core_type<tc>, window_params = [{transform_indices = @transform_0, window_bounds = array<i64: 128, 128>}, {transform_indices = @transform_1, window_bounds = array<i64: 1, 128>}, {transform_indices = @transform_2, window_bounds = array<i64: 1, 128>}, {transform_indices = @transform_3, window_bounds = array<i64: 128, 128>}]} {
    %c0 = arith.constant 0 : index
    %c0_0 = arith.constant 0 : index
    %0 = vector.load %arg2[%c0, %c0_0] : memref<128x128xbf16, #tpu.memory_space<vmem>>, vector<128x128xbf16>
    %1 = arith.extf %0 : vector<128x128xbf16> to vector<128x128xf32>
    %c0_1 = arith.constant 0 : index
    %c0_2 = arith.constant 0 : index
    %2 = vector.load %arg3[%c0_1, %c0_2] : memref<1x128xf32, #tpu.memory_space<vmem>>, vector<1x128xf32>
    %3 = vector.broadcast %2 : vector<1x128xf32> to vector<128x128xf32>
    %4 = arith.mulf %1, %3 : vector<128x128xf32>
    %c0_3 = arith.constant 0 : index
    %c0_4 = arith.constant 0 : index
    %5 = vector.load %arg4[%c0_3, %c0_4] : memref<1x128xf32, #tpu.memory_space<vmem>>, vector<1x128xf32>
    %6 = vector.broadcast %5 : vector<1x128xf32> to vector<128x128xf32>
    %7 = arith.addf %4, %6 : vector<128x128xf32>
    %cst = arith.constant 0.000000e+00 : f32
    %8 = vector.broadcast %cst : f32 to vector<128x128xf32>
    %9 = arith.maximumf %7, %8 : vector<128x128xf32>
    %10 = arith.truncf %9 : vector<128x128xf32> to vector<128x128xbf16>
    %c0_5 = arith.constant 0 : index
    %c0_6 = arith.constant 0 : index
    %11 = vector.load %arg5[%c0_5, %c0_6] : memref<128x128xbf16, #tpu.memory_space<vmem>>, vector<128x128xbf16>
    tpu.vector_store %arg5[%c0_5, %c0_6], %10 {strides = array<i32>} : memref<128x128xbf16, #tpu.memory_space<vmem>>, vector<128x128xbf16>,
    return
  }
  func.func @transform_0(%arg0: i32, %arg1: i32) -> (i32, i32) {
    %c0_i32 = arith.constant 0 : i32
    return %arg0, %arg1 : i32, i32
  }
  func.func @transform_1(%arg0: i32, %arg1: i32) -> (i32, i32) {
    %c0_i32 = arith.constant 0 : i32
    %c0_i32_0 = arith.constant 0 : i32
    return %c0_i32, %arg1 : i32, i32
  }
  func.func @transform_2(%arg0: i32, %arg1: i32) -> (i32, i32) {
    %c0_i32 = arith.constant 0 : i32
    %c0_i32_0 = arith.constant 0 : i32
    return %c0_i32, %arg1 : i32, i32
  }
  func.func @transform_3(%arg0: i32, %arg1: i32) -> (i32, i32) {
    %c0_i32 = arith.constant 0 : i32
    return %arg0, %arg1 : i32, i32
  }
}

module attributes {stable_mosaic.version = 11 : i64} {
  func.func @_conv3x3_s1_kernel(%arg0: i32, %arg1: i32, %arg2: memref<1x10x10x128xbf16, #tpu.memory_space<vmem>>, %arg3: memref<9x128x128xbf16, #tpu.memory_space<vmem>>, %arg4: memref<64x128xbf16, #tpu.memory_space<vmem>>, %arg5: memref<8x128xf32, #tpu.memory_space<vmem>>) attributes {dimension_semantics = [#tpu.dimension_semantics<parallel>, #tpu.dimension_semantics<parallel>], iteration_bounds = array<i64: 2, 1>, scalar_prefetch = 0 : i64, scratch_operands = 0 : i64, tpu.core_type = #tpu.core_type<tc>, window_params = [{transform_indices = @transform_0, window_bounds = array<i64: 1, 10, 10, 128>}, {transform_indices = @transform_1, window_bounds = array<i64: 9, 128, 128>}, {transform_indices = @transform_2, window_bounds = array<i64: 64, 128>}, {transform_indices = @transform_3, window_bounds = array<i64: 8, 128>}]} {
    %c0 = arith.constant 0 : index
    %c0_0 = arith.constant 0 : index
    %c0_1 = arith.constant 0 : index
    %c0_2 = arith.constant 0 : index
    %0 = vector.load %arg2[%c0, %c0_0, %c0_1, %c0_2] : memref<1x10x10x128xbf16, #tpu.memory_space<vmem>>, vector<1x10x10x128xbf16>
    %1 = vector.shape_cast %0 : vector<1x10x10x128xbf16> to vector<10x10x128xbf16>
    %2 = arith.extf %1 : vector<10x10x128xbf16> to vector<10x10x128xf32>
    %cst = arith.constant 0.000000e+00 : f32
    %3 = vector.broadcast %cst : f32 to vector<64x128xf32>
    %4 = vector.extract_strided_slice %2 {offsets = [0, 0, 0], sizes = [8, 8, 128], strides = [1, 1, 1]} : vector<10x10x128xf32> to vector<8x8x128xf32>
    %5 = vector.shape_cast %4 : vector<8x8x128xf32> to vector<64x128xf32>
    %6 = arith.truncf %5 : vector<64x128xf32> to vector<64x128xbf16>
    %c0_3 = arith.constant 0 : index
    %c0_4 = arith.constant 0 : index
    %c0_5 = arith.constant 0 : index
    %7 = vector.load %arg3[%c0_3, %c0_4, %c0_5] : memref<9x128x128xbf16, #tpu.memory_space<vmem>>, vector<1x128x128xbf16>
    %8 = vector.shape_cast %7 : vector<1x128x128xbf16> to vector<128x128xbf16>
    %cst_6 = arith.constant dense<0.000000e+00> : vector<64x128xf32>
    %9 = tpu.matmul %6, %8, %cst_6 {dimension_numbers = #tpu.dot_dimension_numbers<[1], [0], [0], [1], [0, 0, 1, 1], [], []>} : vector<64x128xbf16>, vector<128x128xbf16>, vector<64x128xf32> -> vector<64x128xf32>
    %10 = arith.addf %3, %9 : vector<64x128xf32>
    %11 = vector.extract_strided_slice %2 {offsets = [0, 1, 0], sizes = [8, 8, 128], strides = [1, 1, 1]} : vector<10x10x128xf32> to vector<8x8x128xf32>
    %12 = vector.shape_cast %11 : vector<8x8x128xf32> to vector<64x128xf32>
    %13 = arith.truncf %12 : vector<64x128xf32> to vector<64x128xbf16>
    %c1 = arith.constant 1 : index
    %c0_7 = arith.constant 0 : index
    %c0_8 = arith.constant 0 : index
    %14 = vector.load %arg3[%c1, %c0_7, %c0_8] : memref<9x128x128xbf16, #tpu.memory_space<vmem>>, vector<1x128x128xbf16>
    %15 = vector.shape_cast %14 : vector<1x128x128xbf16> to vector<128x128xbf16>
    %cst_9 = arith.constant dense<0.000000e+00> : vector<64x128xf32>
    %16 = tpu.matmul %13, %15, %cst_9 {dimension_numbers = #tpu.dot_dimension_numbers<[1], [0], [0], [1], [0, 0, 1, 1], [], []>} : vector<64x128xbf16>, vector<128x128xbf16>, vector<64x128xf32> -> vector<64x128xf32>
    %17 = arith.addf %10, %16 : vector<64x128xf32>
    %18 = vector.extract_strided_slice %2 {offsets = [0, 2, 0], sizes = [8, 8, 128], strides = [1, 1, 1]} : vector<10x10x128xf32> to vector<8x8x128xf32>
    %19 = vector.shape_cast %18 : vector<8x8x128xf32> to vector<64x128xf32>
    %20 = arith.truncf %19 : vector<64x128xf32> to vector<64x128xbf16>
    %c2 = arith.constant 2 : index
    %c0_10 = arith.constant 0 : index
    %c0_11 = arith.constant 0 : index
    %21 = vector.load %arg3[%c2, %c0_10, %c0_11] : memref<9x128x128xbf16, #tpu.memory_space<vmem>>, vector<1x128x128xbf16>
    %22 = vector.shape_cast %21 : vector<1x128x128xbf16> to vector<128x128xbf16>
    %cst_12 = arith.constant dense<0.000000e+00> : vector<64x128xf32>
    %23 = tpu.matmul %20, %22, %cst_12 {dimension_numbers = #tpu.dot_dimension_numbers<[1], [0], [0], [1], [0, 0, 1, 1], [], []>} : vector<64x128xbf16>, vector<128x128xbf16>, vector<64x128xf32> -> vector<64x128xf32>
    %24 = arith.addf %17, %23 : vector<64x128xf32>
    %25 = vector.extract_strided_slice %2 {offsets = [1, 0, 0], sizes = [8, 8, 128], strides = [1, 1, 1]} : vector<10x10x128xf32> to vector<8x8x128xf32>
    %26 = vector.shape_cast %25 : vector<8x8x128xf32> to vector<64x128xf32>
    %27 = arith.truncf %26 : vector<64x128xf32> to vector<64x128xbf16>
    %c3 = arith.constant 3 : index
    %c0_13 = arith.constant 0 : index
    %c0_14 = arith.constant 0 : index
    %28 = vector.load %arg3[%c3, %c0_13, %c0_14] : memref<9x128x128xbf16, #tpu.memory_space<vmem>>, vector<1x128x128xbf16>
    %29 = vector.shape_cast %28 : vector<1x128x128xbf16> to vector<128x128xbf16>
    %cst_15 = arith.constant dense<0.000000e+00> : vector<64x128xf32>
    %30 = tpu.matmul %27, %29, %cst_15 {dimension_numbers = #tpu.dot_dimension_numbers<[1], [0], [0], [1], [0, 0, 1, 1], [], []>} : vector<64x128xbf16>, vector<128x128xbf16>, vector<64x128xf32> -> vector<64x128xf32>
    %31 = arith.addf %24, %30 : vector<64x128xf32>
    %32 = vector.extract_strided_slice %2 {offsets = [1, 1, 0], sizes = [8, 8, 128], strides = [1, 1, 1]} : vector<10x10x128xf32> to vector<8x8x128xf32>
    %33 = vector.shape_cast %32 : vector<8x8x128xf32> to vector<64x128xf32>
    %34 = arith.truncf %33 : vector<64x128xf32> to vector<64x128xbf16>
    %c4 = arith.constant 4 : index
    %c0_16 = arith.constant 0 : index
    %c0_17 = arith.constant 0 : index
    %35 = vector.load %arg3[%c4, %c0_16, %c0_17] : memref<9x128x128xbf16, #tpu.memory_space<vmem>>, vector<1x128x128xbf16>
    %36 = vector.shape_cast %35 : vector<1x128x128xbf16> to vector<128x128xbf16>
    %cst_18 = arith.constant dense<0.000000e+00> : vector<64x128xf32>
    %37 = tpu.matmul %34, %36, %cst_18 {dimension_numbers = #tpu.dot_dimension_numbers<[1], [0], [0], [1], [0, 0, 1, 1], [], []>} : vector<64x128xbf16>, vector<128x128xbf16>, vector<64x128xf32> -> vector<64x128xf32>
    %38 = arith.addf %31, %37 : vector<64x128xf32>
    %39 = vector.extract_strided_slice %2 {offsets = [1, 2, 0], sizes = [8, 8, 128], strides = [1, 1, 1]} : vector<10x10x128xf32> to vector<8x8x128xf32>
    %40 = vector.shape_cast %39 : vector<8x8x128xf32> to vector<64x128xf32>
    %41 = arith.truncf %40 : vector<64x128xf32> to vector<64x128xbf16>
    %c5 = arith.constant 5 : index
    %c0_19 = arith.constant 0 : index
    %c0_20 = arith.constant 0 : index
    %42 = vector.load %arg3[%c5, %c0_19, %c0_20] : memref<9x128x128xbf16, #tpu.memory_space<vmem>>, vector<1x128x128xbf16>
    %43 = vector.shape_cast %42 : vector<1x128x128xbf16> to vector<128x128xbf16>
    %cst_21 = arith.constant dense<0.000000e+00> : vector<64x128xf32>
    %44 = tpu.matmul %41, %43, %cst_21 {dimension_numbers = #tpu.dot_dimension_numbers<[1], [0], [0], [1], [0, 0, 1, 1], [], []>} : vector<64x128xbf16>, vector<128x128xbf16>, vector<64x128xf32> -> vector<64x128xf32>
    %45 = arith.addf %38, %44 : vector<64x128xf32>
    %46 = vector.extract_strided_slice %2 {offsets = [2, 0, 0], sizes = [8, 8, 128], strides = [1, 1, 1]} : vector<10x10x128xf32> to vector<8x8x128xf32>
    %47 = vector.shape_cast %46 : vector<8x8x128xf32> to vector<64x128xf32>
    %48 = arith.truncf %47 : vector<64x128xf32> to vector<64x128xbf16>
    %c6 = arith.constant 6 : index
    %c0_22 = arith.constant 0 : index
    %c0_23 = arith.constant 0 : index
    %49 = vector.load %arg3[%c6, %c0_22, %c0_23] : memref<9x128x128xbf16, #tpu.memory_space<vmem>>, vector<1x128x128xbf16>
    %50 = vector.shape_cast %49 : vector<1x128x128xbf16> to vector<128x128xbf16>
    %cst_24 = arith.constant dense<0.000000e+00> : vector<64x128xf32>
    %51 = tpu.matmul %48, %50, %cst_24 {dimension_numbers = #tpu.dot_dimension_numbers<[1], [0], [0], [1], [0, 0, 1, 1], [], []>} : vector<64x128xbf16>, vector<128x128xbf16>, vector<64x128xf32> -> vector<64x128xf32>
    %52 = arith.addf %45, %51 : vector<64x128xf32>
    %53 = vector.extract_strided_slice %2 {offsets = [2, 1, 0], sizes = [8, 8, 128], strides = [1, 1, 1]} : vector<10x10x128xf32> to vector<8x8x128xf32>
    %54 = vector.shape_cast %53 : vector<8x8x128xf32> to vector<64x128xf32>
    %55 = arith.truncf %54 : vector<64x128xf32> to vector<64x128xbf16>
    %c7 = arith.constant 7 : index
    %c0_25 = arith.constant 0 : index
    %c0_26 = arith.constant 0 : index
    %56 = vector.load %arg3[%c7, %c0_25, %c0_26] : memref<9x128x128xbf16, #tpu.memory_space<vmem>>, vector<1x128x128xbf16>
    %57 = vector.shape_cast %56 : vector<1x128x128xbf16> to vector<128x128xbf16>
    %cst_27 = arith.constant dense<0.000000e+00> : vector<64x128xf32>
    %58 = tpu.matmul %55, %57, %cst_27 {dimension_numbers = #tpu.dot_dimension_numbers<[1], [0], [0], [1], [0, 0, 1, 1], [], []>} : vector<64x128xbf16>, vector<128x128xbf16>, vector<64x128xf32> -> vector<64x128xf32>
    %59 = arith.addf %52, %58 : vector<64x128xf32>
    %60 = vector.extract_strided_slice %2 {offsets = [2, 2, 0], sizes = [8, 8, 128], strides = [1, 1, 1]} : vector<10x10x128xf32> to vector<8x8x128xf32>
    %61 = vector.shape_cast %60 : vector<8x8x128xf32> to vector<64x128xf32>
    %62 = arith.truncf %61 : vector<64x128xf32> to vector<64x128xbf16>
    %c8 = arith.constant 8 : index
    %c0_28 = arith.constant 0 : index
    %c0_29 = arith.constant 0 : index
    %63 = vector.load %arg3[%c8, %c0_28, %c0_29] : memref<9x128x128xbf16, #tpu.memory_space<vmem>>, vector<1x128x128xbf16>
    %64 = vector.shape_cast %63 : vector<1x128x128xbf16> to vector<128x128xbf16>
    %cst_30 = arith.constant dense<0.000000e+00> : vector<64x128xf32>
    %65 = tpu.matmul %62, %64, %cst_30 {dimension_numbers = #tpu.dot_dimension_numbers<[1], [0], [0], [1], [0, 0, 1, 1], [], []>} : vector<64x128xbf16>, vector<128x128xbf16>, vector<64x128xf32> -> vector<64x128xf32>
    %66 = arith.addf %59, %65 : vector<64x128xf32>
    %67 = arith.truncf %66 : vector<64x128xf32> to vector<64x128xbf16>
    %c0_31 = arith.constant 0 : index
    %c0_32 = arith.constant 0 : index
    %68 = vector.load %arg4[%c0_31, %c0_32] : memref<64x128xbf16, #tpu.memory_space<vmem>>, vector<64x128xbf16>
    tpu.vector_store %arg4[%c0_31, %c0_32], %67 {strides = array<i32>} : memref<64x128xbf16, #tpu.memory_space<vmem>>, vector<64x128xbf16>,
    %cst_33 = arith.constant dense<0.000000e+00> : vector<128xf32>
    %69 = vector.multi_reduction <add>, %66, %cst_33 [0] : vector<64x128xf32> to vector<128xf32>
    %70 = vector.shape_cast %69 : vector<128xf32> to vector<1x128xf32>
    %71 = arith.mulf %66, %66 : vector<64x128xf32>
    %cst_34 = arith.constant dense<0.000000e+00> : vector<128xf32>
    %72 = vector.multi_reduction <add>, %71, %cst_34 [0] : vector<64x128xf32> to vector<128xf32>
    %73 = vector.shape_cast %72 : vector<128xf32> to vector<1x128xf32>
    %cst_35 = arith.constant 0.000000e+00 : f32
    %74 = vector.broadcast %cst_35 : f32 to vector<6x128xf32>
    %75 = tpu.concatenate %70, %73, %74 in 0 : vector<1x128xf32>, vector<1x128xf32>, vector<6x128xf32> -> vector<8x128xf32>
    %c0_36 = arith.constant 0 : index
    %c0_37 = arith.constant 0 : index
    %76 = vector.load %arg5[%c0_36, %c0_37] : memref<8x128xf32, #tpu.memory_space<vmem>>, vector<8x128xf32>
    tpu.vector_store %arg5[%c0_36, %c0_37], %75 {strides = array<i32>} : memref<8x128xf32, #tpu.memory_space<vmem>>, vector<8x128xf32>,
    return
  }
  func.func @transform_0(%arg0: i32, %arg1: i32) -> (i32, i32, i32, i32) {
    %c0_i32 = arith.constant 0 : i32
    %c0_i32_0 = arith.constant 0 : i32
    %c0_i32_1 = arith.constant 0 : i32
    %c0_i32_2 = arith.constant 0 : i32
    return %arg0, %c0_i32, %c0_i32_0, %c0_i32_1 : i32, i32, i32, i32
  }
  func.func @transform_1(%arg0: i32, %arg1: i32) -> (i32, i32, i32) {
    %c0_i32 = arith.constant 0 : i32
    %c0_i32_0 = arith.constant 0 : i32
    %c0_i32_1 = arith.constant 0 : i32
    return %c0_i32, %c0_i32_0, %arg1 : i32, i32, i32
  }
  func.func @transform_2(%arg0: i32, %arg1: i32) -> (i32, i32) {
    %c0_i32 = arith.constant 0 : i32
    return %arg0, %arg1 : i32, i32
  }
  func.func @transform_3(%arg0: i32, %arg1: i32) -> (i32, i32) {
    %c0_i32 = arith.constant 0 : i32
    return %arg0, %arg1 : i32, i32
  }
}

module attributes {stable_mosaic.version = 11 : i64} {
  func.func @_mm_stats_kernel(%arg0: i32, %arg1: i32, %arg2: memref<128x128xbf16, #tpu.memory_space<vmem>>, %arg3: memref<128x128xbf16, #tpu.memory_space<vmem>>, %arg4: memref<128x128xbf16, #tpu.memory_space<vmem>>, %arg5: memref<8x128xf32, #tpu.memory_space<vmem>>) attributes {dimension_semantics = [#tpu.dimension_semantics<parallel>, #tpu.dimension_semantics<parallel>], iteration_bounds = array<i64: 1, 1>, scalar_prefetch = 0 : i64, scratch_operands = 0 : i64, tpu.core_type = #tpu.core_type<tc>, window_params = [{transform_indices = @transform_0, window_bounds = array<i64: 128, 128>}, {transform_indices = @transform_1, window_bounds = array<i64: 128, 128>}, {transform_indices = @transform_2, window_bounds = array<i64: 128, 128>}, {transform_indices = @transform_3, window_bounds = array<i64: 8, 128>}]} {
    %c0 = arith.constant 0 : index
    %c0_0 = arith.constant 0 : index
    %0 = vector.load %arg2[%c0, %c0_0] : memref<128x128xbf16, #tpu.memory_space<vmem>>, vector<128x128xbf16>
    %c0_1 = arith.constant 0 : index
    %c0_2 = arith.constant 0 : index
    %1 = vector.load %arg3[%c0_1, %c0_2] : memref<128x128xbf16, #tpu.memory_space<vmem>>, vector<128x128xbf16>
    %cst = arith.constant dense<0.000000e+00> : vector<128x128xf32>
    %2 = tpu.matmul %0, %1, %cst {dimension_numbers = #tpu.dot_dimension_numbers<[1], [0], [0], [1], [0, 0, 1, 1], [], []>} : vector<128x128xbf16>, vector<128x128xbf16>, vector<128x128xf32> -> vector<128x128xf32>
    %3 = arith.truncf %2 : vector<128x128xf32> to vector<128x128xbf16>
    %c0_3 = arith.constant 0 : index
    %c0_4 = arith.constant 0 : index
    %4 = vector.load %arg4[%c0_3, %c0_4] : memref<128x128xbf16, #tpu.memory_space<vmem>>, vector<128x128xbf16>
    tpu.vector_store %arg4[%c0_3, %c0_4], %3 {strides = array<i32>} : memref<128x128xbf16, #tpu.memory_space<vmem>>, vector<128x128xbf16>,
    %cst_5 = arith.constant dense<0.000000e+00> : vector<128xf32>
    %5 = vector.multi_reduction <add>, %2, %cst_5 [0] : vector<128x128xf32> to vector<128xf32>
    %6 = vector.shape_cast %5 : vector<128xf32> to vector<1x128xf32>
    %7 = arith.mulf %2, %2 : vector<128x128xf32>
    %cst_6 = arith.constant dense<0.000000e+00> : vector<128xf32>
    %8 = vector.multi_reduction <add>, %7, %cst_6 [0] : vector<128x128xf32> to vector<128xf32>
    %9 = vector.shape_cast %8 : vector<128xf32> to vector<1x128xf32>
    %cst_7 = arith.constant 0.000000e+00 : f32
    %10 = vector.broadcast %cst_7 : f32 to vector<6x128xf32>
    %11 = tpu.concatenate %6, %9, %10 in 0 : vector<1x128xf32>, vector<1x128xf32>, vector<6x128xf32> -> vector<8x128xf32>
    %c0_8 = arith.constant 0 : index
    %c0_9 = arith.constant 0 : index
    %12 = vector.load %arg5[%c0_8, %c0_9] : memref<8x128xf32, #tpu.memory_space<vmem>>, vector<8x128xf32>
    tpu.vector_store %arg5[%c0_8, %c0_9], %11 {strides = array<i32>} : memref<8x128xf32, #tpu.memory_space<vmem>>, vector<8x128xf32>,
    return
  }
  func.func @transform_0(%arg0: i32, %arg1: i32) -> (i32, i32) {
    %c0_i32 = arith.constant 0 : i32
    %c0_i32_0 = arith.constant 0 : i32
    return %arg0, %c0_i32 : i32, i32
  }
  func.func @transform_1(%arg0: i32, %arg1: i32) -> (i32, i32) {
    %c0_i32 = arith.constant 0 : i32
    %c0_i32_0 = arith.constant 0 : i32
    return %c0_i32, %arg1 : i32, i32
  }
  func.func @transform_2(%arg0: i32, %arg1: i32) -> (i32, i32) {
    %c0_i32 = arith.constant 0 : i32
    return %arg0, %arg1 : i32, i32
  }
  func.func @transform_3(%arg0: i32, %arg1: i32) -> (i32, i32) {
    %c0_i32 = arith.constant 0 : i32
    return %arg0, %arg1 : i32, i32
  }
}

module attributes {stable_mosaic.version = 11 : i64} {
  func.func @_bn_add_bn_relu_kernel(%arg0: i32, %arg1: i32, %arg2: memref<128x128xbf16, #tpu.memory_space<vmem>>, %arg3: memref<1x128xf32, #tpu.memory_space<vmem>>, %arg4: memref<1x128xf32, #tpu.memory_space<vmem>>, %arg5: memref<128x128xbf16, #tpu.memory_space<vmem>>, %arg6: memref<1x128xf32, #tpu.memory_space<vmem>>, %arg7: memref<1x128xf32, #tpu.memory_space<vmem>>, %arg8: memref<128x128xf32, #tpu.memory_space<vmem>>) attributes {dimension_semantics = [#tpu.dimension_semantics<parallel>, #tpu.dimension_semantics<parallel>], iteration_bounds = array<i64: 1, 1>, scalar_prefetch = 0 : i64, scratch_operands = 0 : i64, tpu.core_type = #tpu.core_type<tc>, window_params = [{transform_indices = @transform_0, window_bounds = array<i64: 128, 128>}, {transform_indices = @transform_1, window_bounds = array<i64: 1, 128>}, {transform_indices = @transform_2, window_bounds = array<i64: 1, 128>}, {transform_indices = @transform_3, window_bounds = array<i64: 128, 128>}, {transform_indices = @transform_4, window_bounds = array<i64: 1, 128>}, {transform_indices = @transform_5, window_bounds = array<i64: 1, 128>}, {transform_indices = @transform_6, window_bounds = array<i64: 128, 128>}]} {
    %c0 = arith.constant 0 : index
    %c0_0 = arith.constant 0 : index
    %0 = vector.load %arg2[%c0, %c0_0] : memref<128x128xbf16, #tpu.memory_space<vmem>>, vector<128x128xbf16>
    %1 = arith.extf %0 : vector<128x128xbf16> to vector<128x128xf32>
    %c0_1 = arith.constant 0 : index
    %c0_2 = arith.constant 0 : index
    %2 = vector.load %arg3[%c0_1, %c0_2] : memref<1x128xf32, #tpu.memory_space<vmem>>, vector<1x128xf32>
    %3 = vector.broadcast %2 : vector<1x128xf32> to vector<128x128xf32>
    %4 = arith.mulf %1, %3 : vector<128x128xf32>
    %c0_3 = arith.constant 0 : index
    %c0_4 = arith.constant 0 : index
    %5 = vector.load %arg4[%c0_3, %c0_4] : memref<1x128xf32, #tpu.memory_space<vmem>>, vector<1x128xf32>
    %6 = vector.broadcast %5 : vector<1x128xf32> to vector<128x128xf32>
    %7 = arith.addf %4, %6 : vector<128x128xf32>
    %c0_5 = arith.constant 0 : index
    %c0_6 = arith.constant 0 : index
    %8 = vector.load %arg5[%c0_5, %c0_6] : memref<128x128xbf16, #tpu.memory_space<vmem>>, vector<128x128xbf16>
    %9 = arith.extf %8 : vector<128x128xbf16> to vector<128x128xf32>
    %c0_7 = arith.constant 0 : index
    %c0_8 = arith.constant 0 : index
    %10 = vector.load %arg6[%c0_7, %c0_8] : memref<1x128xf32, #tpu.memory_space<vmem>>, vector<1x128xf32>
    %11 = vector.broadcast %10 : vector<1x128xf32> to vector<128x128xf32>
    %12 = arith.mulf %9, %11 : vector<128x128xf32>
    %c0_9 = arith.constant 0 : index
    %c0_10 = arith.constant 0 : index
    %13 = vector.load %arg7[%c0_9, %c0_10] : memref<1x128xf32, #tpu.memory_space<vmem>>, vector<1x128xf32>
    %14 = vector.broadcast %13 : vector<1x128xf32> to vector<128x128xf32>
    %15 = arith.addf %12, %14 : vector<128x128xf32>
    %16 = arith.addf %7, %15 : vector<128x128xf32>
    %cst = arith.constant 0.000000e+00 : f32
    %17 = vector.broadcast %cst : f32 to vector<128x128xf32>
    %18 = arith.maximumf %16, %17 : vector<128x128xf32>
    %c0_11 = arith.constant 0 : index
    %c0_12 = arith.constant 0 : index
    %19 = vector.load %arg8[%c0_11, %c0_12] : memref<128x128xf32, #tpu.memory_space<vmem>>, vector<128x128xf32>
    tpu.vector_store %arg8[%c0_11, %c0_12], %18 {strides = array<i32>} : memref<128x128xf32, #tpu.memory_space<vmem>>, vector<128x128xf32>,
    return
  }
  func.func @transform_0(%arg0: i32, %arg1: i32) -> (i32, i32) {
    %c0_i32 = arith.constant 0 : i32
    return %arg0, %arg1 : i32, i32
  }
  func.func @transform_1(%arg0: i32, %arg1: i32) -> (i32, i32) {
    %c0_i32 = arith.constant 0 : i32
    %c0_i32_0 = arith.constant 0 : i32
    return %c0_i32, %arg1 : i32, i32
  }
  func.func @transform_2(%arg0: i32, %arg1: i32) -> (i32, i32) {
    %c0_i32 = arith.constant 0 : i32
    %c0_i32_0 = arith.constant 0 : i32
    return %c0_i32, %arg1 : i32, i32
  }
  func.func @transform_3(%arg0: i32, %arg1: i32) -> (i32, i32) {
    %c0_i32 = arith.constant 0 : i32
    return %arg0, %arg1 : i32, i32
  }
  func.func @transform_4(%arg0: i32, %arg1: i32) -> (i32, i32) {
    %c0_i32 = arith.constant 0 : i32
    %c0_i32_0 = arith.constant 0 : i32
    return %c0_i32, %arg1 : i32, i32
  }
  func.func @transform_5(%arg0: i32, %arg1: i32) -> (i32, i32) {
    %c0_i32 = arith.constant 0 : i32
    %c0_i32_0 = arith.constant 0 : i32
    return %c0_i32, %arg1 : i32, i32
  }
  func.func @transform_6(%arg0: i32, %arg1: i32) -> (i32, i32) {
    %c0_i32 = arith.constant 0 : i32
    return %arg0, %arg1 : i32, i32
  }
}

</mosaic_0001>

<bundles_post_ra>
// kernel: resblock_forward.6
= control target key start
LH: loop header
LB: loop body
LE: loop exit
PB: predicated region body
PF: predicated region fallthrough
CT: control target
= control target key end

     0   :  { %s422_s0 = inlined_call_operand.vmem [shape: bf16[128,128], index: 0, kind: input, shape index: {}]   ;;  %s423_s1 = inlined_call_operand.vmem [shape: f32[1,128], index: 1, kind: input, shape index: {}]   ;;  %s424_s2 = inlined_call_operand.vmem [shape: f32[1,128], index: 2, kind: input, shape index: {}]   ;;  %s425_s3 = inlined_call_operand.vmem [shape: bf16[128,128], index: 3, kind: output, shape index: {}]  }
   0x1   :  { %v227_v0 = vld [vmem:[%s422_s0] sm:$0xff]   ;;  %v298_v4 = vld [vmem:[%s422_s0 + $0x8] sm:$0xff]   ;;  %v299_v5 = vld [vmem:[%s422_s0 + $0x10] sm:$0xff]  }
   0x2   :  { %v338_v1 = vld [vmem:[%s423_s1] ss:$0 sm:$0xff]  ;;  %v228_v2 = vunpack.c.l.bf16 %v227_v0  ;;  %v229_v3 = vunpack.c.h.bf16 %v227_v0  ;;  %v300_v6 = vld [vmem:[%s422_s0 + $0x18] sm:$0xff]   ;;  %v232_v8 = vunpack.c.l.bf16 %v298_v4  ;;  %v233_v9 = vunpack.c.h.bf16 %v298_v4  ;;  %v302_v33 = vld [vmem:[%s422_s0 + $0x28] sm:$0xff]  }
   0x3   :  { %v352_v7 = vld [vmem:[%s424_s2] ss:$0 sm:$0xff]  ;;  %v236_v10 = vunpack.c.l.bf16 %v299_v5  ;;  %v237_v11 = vunpack.c.h.bf16 %v299_v5  ;;  %v240_v14 = vunpack.c.l.bf16 %v300_v6  ;;  %v241_v15 = vunpack.c.h.bf16 %v300_v6  ;;  %v303_v38 = vld [vmem:[%s422_s0 + $0x30] sm:$0xff]   ;;  %v304_v43 = vld [vmem:[%s422_s0 + $0x38] sm:$0xff]  }
   0x4   :  { %v53_v12 = vmul.f32 %v228_v2, %v338_v1  ;;  %v54_v13 = vmul.f32 %v229_v3, %v338_v1  ;;  %v55_v16 = vmul.f32 %v232_v8, %v338_v1  ;;  %v56_v17 = vmul.f32 %v233_v9, %v338_v1  ;;  %v301_v28 = vld [vmem:[%s422_s0 + $0x20] sm:$0xff]  }
   0x5   :  { %v57_v18 = vmul.f32 %v236_v10, %v338_v1  ;;  %v58_v19 = vmul.f32 %v237_v11, %v338_v1  ;;  %v59_v22 = vmul.f32 %v240_v14, %v338_v1  ;;  %v60_v23 = vmul.f32 %v241_v15, %v338_v1 }
   0x6   :  { %v76_v20 = vadd.f32 %v352_v7, %v53_v12  ;;  %v77_v21 = vadd.f32 %v352_v7, %v54_v13  ;;  %v78_v24 = vadd.f32 %v352_v7, %v55_v16  ;;  %v79_v25 = vadd.f32 %v352_v7, %v56_v17 }
   0x7   :  { %v80_v26 = vadd.f32 %v352_v7, %v57_v18  ;;  %v81_v27 = vadd.f32 %v352_v7, %v58_v19  ;;  %v82_v31 = vadd.f32 %v352_v7, %v59_v22  ;;  %v83_v32 = vadd.f32 %v352_v7, %v60_v23 }
   0x8   :  { %v92_v29 = vmax.f32 %v76_v20, 0.0  ;;  %v93_v30 = vmax.f32 %v77_v21, 0.0  ;;  %v94_v34 = vmax.f32 %v78_v24, 0.0  ;;  %v95_v35 = vmax.f32 %v79_v25, 0.0 }
   0x9   :  { %v96_v36 = vmax.f32 %v80_v26, 0.0  ;;  %v97_v37 = vmax.f32 %v81_v27, 0.0  ;;  %v98_v40 = vmax.f32 %v82_v31, 0.0  ;;  %v99_v41 = vmax.f32 %v83_v32, 0.0 }
   0xa   :  { %v261_v39 = vpack.c.bf16 %v93_v30, %v92_v29  ;;  %v244_v42 = vunpack.c.l.bf16 %v301_v28  ;;  %v266_v44 = vpack.c.bf16 %v95_v35, %v94_v34  ;;  %v245_v46 = vunpack.c.h.bf16 %v301_v28 }
   0xb   :  { %v271_v45 = vpack.c.bf16 %v97_v37, %v96_v36  ;;  %v248_v47 = vunpack.c.l.bf16 %v302_v33  ;;  %v276_v48 = vpack.c.bf16 %v99_v41, %v98_v40  ;;  %v249_v50 = vunpack.c.h.bf16 %v302_v33 }
   0xc   :  { %262 = vst [vmem:[%s425_s3] sm:$0xff] %v261_v39   ;;  %v61_v49 = vmul.f32 %v244_v42, %v338_v1  ;;  %v252_v51 = vunpack.c.l.bf16 %v303_v38  ;;  %305 = vst [vmem:[%s425_s3 + $0x8] sm:$0xff] %v266_v44   ;;  %v62_v52 = vmul.f32 %v245_v46, %v338_v1  ;;  %v253_v54 = vunpack.c.h.bf16 %v303_v38 }
   0xd   :  { %306 = vst [vmem:[%s425_s3 + $0x10] sm:$0xff] %v271_v45   ;;  %v63_v53 = vmul.f32 %v248_v47, %v338_v1  ;;  %v256_v55 = vunpack.c.l.bf16 %v304_v43  ;;  %307 = vst [vmem:[%s425_s3 + $0x18] sm:$0xff] %v276_v48   ;;  %v64_v57 = vmul.f32 %v249_v50, %v338_v1  ;;  %v257_v59 = vunpack.c.h.bf16 %v304_v43 }
   0xe   :  { %v84_v56 = vadd.f32 %v352_v7, %v61_v49  ;;  %v65_v58 = vmul.f32 %v252_v51, %v338_v1  ;;  %v85_v60 = vadd.f32 %v352_v7, %v62_v52  ;;  %v66_v62 = vmul.f32 %v253_v54, %v338_v1 }
   0xf   :  { %v86_v61 = vadd.f32 %v352_v7, %v63_v53  ;;  %v67_v63 = vmul.f32 %v256_v55, %v338_v1  ;;  %v87_v2 = vadd.f32 %v352_v7, %v64_v57  ;;  %v68_v4 = vmul.f32 %v257_v59, %v338_v1 }
  0x10   :  { %v100_v0 = vmax.f32 %v84_v56, 0.0  ;;  %v88_v3 = vadd.f32 %v352_v7, %v65_v58  ;;  %v101_v5 = vmax.f32 %v85_v60, 0.0  ;;  %v89_v8 = vadd.f32 %v352_v7, %v66_v62 }
  0x11   :  { %v102_v6 = vmax.f32 %v86_v61, 0.0  ;;  %v90_v9 = vadd.f32 %v352_v7, %v67_v63  ;;  %v103_v10 = vmax.f32 %v87_v2, 0.0  ;;  %v91_v12 = vadd.f32 %v352_v7, %v68_v4 }
  0x12   :  { %v104_v11 = vmax.f32 %v88_v3, 0.0  ;;  %v281_v13 = vpack.c.bf16 %v101_v5, %v100_v0  ;;  %v105_v14 = vmax.f32 %v89_v8, 0.0 }
  0x13   :  { %v106_v15 = vmax.f32 %v90_v9, 0.0  ;;  %v286_v16 = vpack.c.bf16 %v103_v10, %v102_v6  ;;  %v107_v17 = vmax.f32 %v91_v12, 0.0 }
  0x14   :  { %308 = vst [vmem:[%s425_s3 + $0x20] sm:$0xff] %v281_v13   ;;  %v291_v1 = vpack.c.bf16 %v105_v14, %v104_v11 }
  0x15   :  { %309 = vst [vmem:[%s425_s3 + $0x28] sm:$0xff] %v286_v16   ;;  %v296_v18 = vpack.c.bf16 %v107_v17, %v106_v15 }
  0x16   :  { %310 = vst [vmem:[%s425_s3 + $0x30] sm:$0xff] %v291_v1  }
  0x17   :  { %311 = vst [vmem:[%s425_s3 + $0x38] sm:$0xff] %v296_v18  }

// kernel: resblock_forward.8
= control target key start
LH: loop header
LB: loop body
LE: loop exit
PB: predicated region body
PF: predicated region fallthrough
CT: control target
= control target key end

     0   :  { %vm377_vm0 = vcmask 1040384   ;;  %vm379_vm1 = vcmask 1041408   ;;  %s660_s1 = inlined_call_operand.vmem [shape: bf16[128,128], index: 1, kind: input, shape index: {}]   ;;  %s661_s0 = inlined_call_operand.vmem [shape: bf16[128,128], index: 0, kind: input, shape index: {}]   ;;  %s662_s2 = inlined_call_operand.vmem [shape: bf16[128,128], index: 2, kind: output, shape index: {0}]   ;;  %s663_s3 = inlined_call_operand.vmem [shape: f32[8,128], index: 3, kind: output, shape index: {1}]  }
   0x1   :  { %v549_v0 = vld [vmem:[%s660_s1] sm:$0xff]   ;;  %v550_v1 = vld [vmem:[%s660_s1 + $0x8] sm:$0xff]   ;;  %v551_v2 = vld [vmem:[%s660_s1 + $0x10] sm:$0xff]  }
   0x2   :  { %501 = vmatprep.subr.bf16.mxu0 %v549_v0  ;;  %533 = vmatprep.subr.bf16.mxu1 %v549_v0  ;;  %v552_v3 = vld [vmem:[%s660_s1 + $0x18] sm:$0xff]   ;;  %v557_v4 = vld [vmem:[%s661_s0] sm:$0xff]   ;;  %v554_v7 = vld [vmem:[%s660_s1 + $0x28] sm:$0xff]  }
   0x3   :  { %502 = vmatpush3.bf16.msra.mxu0 %v549_v0  ;;  %541 = vmatpush3.bf16.msra.mxu1 %v549_v0  ;;  %v553_v5 = vld [vmem:[%s660_s1 + $0x20] sm:$0xff]   ;;  %v555_v8 = vld [vmem:[%s660_s1 + $0x30] sm:$0xff]   ;;  %v556_v9 = vld [vmem:[%s660_s1 + $0x38] sm:$0xff]  }
   0x4   :  { %503 = vmatprep.subr.bf16.mxu0 %v550_v1  ;;  %534 = vmatprep.subr.bf16.mxu1 %v550_v1  ;;  %v561_v6 = vld [vmem:[%s661_s0 + $0x20] sm:$0xff]   ;;  %v558_v10 = vld [vmem:[%s661_s0 + $0x8] sm:$0xff]   ;;  %v559_v12 = vld [vmem:[%s661_s0 + $0x10] sm:$0xff]  }
   0x5   :  { %517 = vmatprep.mubr.bf16.mxu0 %v557_v4  ;;  %525 = vmatprep.mubr.bf16.mxu1 %v561_v6  ;;  %v562_v11 = vld [vmem:[%s661_s0 + $0x28] sm:$0xff]   ;;  %v563_v13 = vld [vmem:[%s661_s0 + $0x30] sm:$0xff]   ;;  %v560_v14 = vld [vmem:[%s661_s0 + $0x18] sm:$0xff]  }
   0x6   :  { %v564_v15 = vld [vmem:[%s661_s0 + $0x38] sm:$0xff]  }
   0x7   :  { %504 = vmatpush3.bf16.msra.mxu0 %v550_v1  ;;  %542 = vmatpush3.bf16.msra.mxu1 %v550_v1 }
   0x8   :  { %505 = vmatprep.subr.bf16.mxu0 %v551_v2  ;;  %535 = vmatprep.subr.bf16.mxu1 %v551_v2 }
   0xb   :  { %506 = vmatpush3.bf16.msra.mxu0 %v551_v2  ;;  %543 = vmatpush3.bf16.msra.mxu1 %v551_v2 }
   0xc   :  { %507 = vmatprep.subr.bf16.mxu0 %v552_v3  ;;  %536 = vmatprep.subr.bf16.mxu1 %v552_v3 }
   0xf   :  { %508 = vmatpush3.bf16.msra.mxu0 %v552_v3  ;;  %544 = vmatpush3.bf16.msra.mxu1 %v552_v3 }
  0x10   :  { %509 = vmatprep.subr.bf16.mxu0 %v553_v5  ;;  %537 = vmatprep.subr.bf16.mxu1 %v553_v5 }
  0x13   :  { %510 = vmatpush3.bf16.msra.mxu0 %v553_v5  ;;  %545 = vmatpush3.bf16.msra.mxu1 %v553_v5 }
  0x14   :  { %511 = vmatprep.subr.bf16.mxu0 %v554_v7  ;;  %538 = vmatprep.subr.bf16.mxu1 %v554_v7 }
  0x17   :  { %512 = vmatpush3.bf16.msra.mxu0 %v554_v7  ;;  %546 = vmatpush3.bf16.msra.mxu1 %v554_v7 }
  0x18   :  { %513 = vmatprep.subr.bf16.mxu0 %v555_v8  ;;  %539 = vmatprep.subr.bf16.mxu1 %v555_v8 }
  0x1b   :  { %514 = vmatpush3.bf16.msra.mxu0 %v555_v8  ;;  %547 = vmatpush3.bf16.msra.mxu1 %v555_v8 }
  0x1c   :  { %515 = vmatprep.subr.bf16.mxu0 %v556_v9  ;;  %540 = vmatprep.subr.bf16.mxu1 %v556_v9 }
  0x1f   :  { %516 = vmatpush3.bf16.msra.mxu0 %v556_v9  ;;  %548 = vmatpush3.bf16.msra.mxu1 %v556_v9 }
  0x22   :  { %518 = vmatmul.mubr.bf16.vlgmr.msra.gmra.mrb[0].mxu0 %v558_v10  ;;  %526 = vmatmul.mubr.bf16.vlgmr.msra.gmra.mrb[0].mxu1 %v562_v11 }
  0x23   :  { %521 = vmatprep.mubr.bf16.mxu0 %v559_v12  ;;  %529 = vmatprep.mubr.bf16.mxu1 %v563_v13 }
  0x2a   :  { %522 = vmatmul.mubr.bf16.gmra.mrb[4].mxu0 %v560_v14  ;;  %530 = vmatmul.mubr.bf16.gmra.mrb[4].mxu1 %v564_v15 }
  0xf5   :  { %v519_v16 = vpop.f32.mrb[0].mxu0  ;;  %v527_v17 = vpop.f32.mrb[0].mxu1 }
  0xf6   :  { %v176_v18 = vpop.f32.mrb[1].mxu0  ;;  %v208_v19 = vpop.f32.mrb[1].mxu1  ;;  %v342_v31 = vmul.f32 %v519_v16, %v519_v16  ;;  %v350_v3 = vmul.f32 %v527_v17, %v527_v17 }
  0xf7   :  { %v520_v20 = vpop.f32.mrb[2].mxu0  ;;  %v528_v21 = vpop.f32.mrb[2].mxu1  ;;  %v340_v22 = vmul.f32 %v176_v18, %v176_v18  ;;  %v348_v61 = vmul.f32 %v208_v19, %v208_v19 }
  0xf8   :  { %v446_v23 = vpack.c.bf16 %v520_v20, %v519_v16  ;;  %v179_v24 = vpop.f32.mrb[3].mxu0  ;;  %v466_v25 = vpack.c.bf16 %v528_v21, %v527_v17  ;;  %v211_v26 = vpop.f32.mrb[3].mxu1  ;;  %v343_v34 = vmul.f32 %v520_v20, %v520_v20  ;;  %v351_v6 = vmul.f32 %v528_v21, %v528_v21 }
  0xf9   :  { %v441_v27 = vpack.c.bf16 %v179_v24, %v176_v18  ;;  %v319_v28 = vadd.f32 %v179_v24, %v176_v18  ;;  %v341_v29 = vmul.f32 %v179_v24, %v179_v24  ;;  %v461_v30 = vpack.c.bf16 %v211_v26, %v208_v19 }
  0xfa   :  { %478 = vst [vmem:[%s662_s2 + $0x8] sm:$0xff] %v446_v23   ;;  %482 = vst [vmem:[%s662_s2 + $0x28] sm:$0xff] %v466_v25   ;;  %v349_v2 = vmul.f32 %v211_v26, %v211_v26 }
  0xfb   :  { %442 = vst [vmem:[%s662_s2] sm:$0xff] %v441_v27   ;;  %v320_v32 = vadd.f32 %v519_v16, %v319_v28  ;;  %v356_v33 = vadd.f32 %v341_v29, %v340_v22  ;;  %481 = vst [vmem:[%s662_s2 + $0x20] sm:$0xff] %v461_v30  }
  0xfd   :  { %v357_v35 = vadd.f32 %v356_v33, %v342_v31  ;;  %v523_v36 = vpop.f32.mrb[4].mxu0  ;;  %v321_v37 = vadd.f32 %v520_v20, %v320_v32  ;;  %v531_v38 = vpop.f32.mrb[4].mxu1 }
  0xfe   :  { %v192_v39 = vpop.f32.mrb[5].mxu0  ;;  %v224_v40 = vpop.f32.mrb[5].mxu1  ;;  %v346_v55 = vmul.f32 %v523_v36, %v523_v36  ;;  %v354_v15 = vmul.f32 %v531_v38, %v531_v38 }
  0xff   :  { %v322_v41 = vadd.f32 %v321_v37, %v192_v39  ;;  %v344_v42 = vmul.f32 %v192_v39, %v192_v39  ;;  %v358_v43 = vadd.f32 %v357_v35, %v343_v34  ;;  %v524_v44 = vpop.f32.mrb[6].mxu0  ;;  %v532_v45 = vpop.f32.mrb[6].mxu1  ;;  %v352_v9 = vmul.f32 %v224_v40, %v224_v40 }
 0x100   :  { %v456_v46 = vpack.c.bf16 %v524_v44, %v523_v36  ;;  %v195_v47 = vpop.f32.mrb[7].mxu0  ;;  %v476_v48 = vpack.c.bf16 %v532_v45, %v531_v38  ;;  %v227_v49 = vpop.f32.mrb[7].mxu1  ;;  %v347_v58 = vmul.f32 %v524_v44, %v524_v44 }
 0x101   :  { %v359_v50 = vadd.f32 %v358_v43, %v344_v42  ;;  %v451_v51 = vpack.c.bf16 %v195_v47, %v192_v39  ;;  %v323_v52 = vadd.f32 %v322_v41, %v195_v47  ;;  %v345_v53 = vmul.f32 %v195_v47, %v195_v47 }
 0x102   :  { %480 = vst [vmem:[%s662_s2 + $0x18] sm:$0xff] %v456_v46   ;;  %484 = vst [vmem:[%s662_s2 + $0x38] sm:$0xff] %v476_v48   ;;  %v471_v54 = vpack.c.bf16 %v227_v49, %v224_v40  ;;  %v353_v14 = vmul.f32 %v227_v49, %v227_v49 }
 0x103   :  { %479 = vst [vmem:[%s662_s2 + $0x10] sm:$0xff] %v451_v51   ;;  %v324_v56 = vadd.f32 %v523_v36, %v323_v52  ;;  %v360_v57 = vadd.f32 %v359_v50, %v345_v53 }
 0x104   :  { %483 = vst [vmem:[%s662_s2 + $0x30] sm:$0xff] %v471_v54  }
 0x105   :  { %v361_v59 = vadd.f32 %v360_v57, %v346_v55  ;;  %v325_v60 = vadd.f32 %v524_v44, %v324_v56 }
 0x107   :  { %v326_v62 = vadd.f32 %v325_v60, %v208_v19  ;;  %v362_v63 = vadd.f32 %v361_v59, %v347_v58  ;;  %v355_v19 = vmul.f32 %v532_v45, %v532_v45 }
 0x109   :  { %v363_v0 = vadd.f32 %v362_v63, %v348_v61  ;;  %v327_v1 = vadd.f32 %v326_v62, %v211_v26 }
 0x10b   :  { %v328_v4 = vadd.f32 %v527_v17, %v327_v1  ;;  %v364_v5 = vadd.f32 %v363_v0, %v349_v2 }
 0x10d   :  { %v365_v7 = vadd.f32 %v364_v5, %v350_v3  ;;  %v329_v8 = vadd.f32 %v528_v21, %v328_v4 }
 0x10f   :  { %v330_v10 = vadd.f32 %v329_v8, %v224_v40  ;;  %v366_v11 = vadd.f32 %v365_v7, %v351_v6 }
 0x111   :  { %v367_v12 = vadd.f32 %v366_v11, %v352_v9  ;;  %v331_v13 = vadd.f32 %v330_v10, %v227_v49 }
 0x113   :  { %v332_v16 = vadd.f32 %v531_v38, %v331_v13  ;;  %v368_v18 = vadd.f32 %v367_v12, %v353_v14 }
 0x115   :  { %v333_v20 = vadd.f32 %v532_v45, %v332_v16  ;;  %v369_v22 = vadd.f32 %v368_v18, %v354_v15 }
 0x117   :  { %v334_v23 = vrot.slane %v333_v20, 4  ;;  %v370_v24 = vadd.f32 %v369_v22, %v355_v19 }
 0x119   :  { %v335_v25 = vadd.f32 %v334_v23, %v333_v20  ;;  %v371_v17 = vrot.slane %v370_v24, 4 }
 0x11b   :  { %v336_v26 = vrot.slane %v335_v25, 2  ;;  %v372_v27 = vadd.f32 %v371_v17, %v370_v24 }
 0x11d   :  { %v337_v28 = vadd.f32 %v336_v26, %v335_v25  ;;  %v373_v21 = vrot.slane %v372_v27, 2 }
 0x11f   :  { %v338_v29 = vrot.slane %v337_v28, 1  ;;  %v374_v30 = vadd.f32 %v373_v21, %v372_v27 }
 0x121   :  { %v375_v31 = vrot.slane %v374_v30, 1  ;;  %v339_v32 = vadd.f32 %v338_v29, %v337_v28 }
 0x123   :  { %v376_v33 = vadd.f32 %v375_v31, %v374_v30 }
 0x125   :  { %v378_v34 = vsel %vm377_vm0, %v339_v32, %v376_v33 }
 0x126   :  { %v380_v35 = vsel %vm379_vm1, %v378_v34, 0.0 }
 0x127   :  { %381 = vst [vmem:[%s663_s3] sm:$0xff] %v380_v35 }

// kernel: resblock_forward.5
= control target key start
LH: loop header
LB: loop body
LE: loop exit
PB: predicated region body
PF: predicated region fallthrough
CT: control target
= control target key end

     0   :  { %s2800_s18 = smov 0   ;;  %s2802_s19 = smov 0   ;;  %s3197_s0 = inlined_call_operand.vmem [shape: bf16[2,18,8,128], index: 0, kind: input, shape index: {}]   ;;  %s3198_s1 = inlined_call_operand.vmem [shape: bf16[2,18,8,128], index: 1, kind: input, shape index: {}]   ;;  %s3199_s2 = inlined_call_operand.vmem [shape: bf16[2,18,8,128], index: 2, kind: input, shape index: {}]   ;;  %s3200_s3 = inlined_call_operand.vmem [shape: bf16[9,128,128], index: 3, kind: input, shape index: {}]   ;;  %s3201_s4 = inlined_call_operand.vmem [shape: bf16[128,128], index: 4, kind: output, shape index: {0}]   ;;  %s3202_s5 = inlined_call_operand.vmem [shape: f32[16,128], index: 5, kind: output, shape index: {1}]  }
   0x1   :  { %s2804_s20 = smov 0  }
   0x2 LB: > { %s28_s21 = sadd.s32 1, %s2764_s19  ;;  %p1925_p0 = scmp.ge.s32.totalorder %s2768_s20, 1  ;;  %s2768_s20 = sphi %s2804_s20, %s16_s20   ;;  %s2764_s19 = sphi %s2802_s19, %s3204_s19   ;;  %s2760_s18 = sphi %s2800_s18, %s3203_s18  }
   0x3   : > { %p30_p1 = scmp.ge.s32.totalorder %s28_s21, 2  ;;  %p235_p2 = scmp.lt.s32.totalorder %s2768_s20, 3 }
   0x5   : > { %s3206_s21 = smov (%p30_p1, %s28_s21), 0  ;;  %p236_p3 = pnand %p1925_p0, %p235_p2 }
   0x6   : > { %v2638_v0 = vld [vmem:[%s3200_s3 + $0xc0] sm:$0xff] (!%p236_p3)   ;;  %p287_p4 = scmp.lt.s32.totalorder (!%p236_p3), %s2760_s18, 1  ;;  %v2640_v2 = vld [vmem:[%s3200_s3 + $0xc8] sm:$0xff] (!%p236_p3)   ;;  %v2642_v4 = vld [vmem:[%s3200_s3 + $0xd0] sm:$0xff] (!%p236_p3)   ;;  %vm1760_vm0 = vcmask (!%p236_p3), 1040384   ;;  %vm1762_vm1 = vcmask (!%p236_p3), 1041408  }
   0x7   : > { %239 = sbr.rel (%p236_p3) target bundleno = 416 (0x1a0), region = 36  ;;  %v2639_v1 = vld [vmem:[%s3200_s3 + $0x100] sm:$0xff] (!%p236_p3)   ;;  %2317 = vmatprep.subr.bf16.mxu1 (!%p236_p3), %v2638_v0  ;;  %v2641_v3 = vld [vmem:[%s3200_s3 + $0x108] sm:$0xff] (!%p236_p3)   ;;  %v2643_v5 = vld [vmem:[%s3200_s3 + $0x110] sm:$0xff] (!%p236_p3)  }
   0x8   : > { %2413 = vmatprep.subr.bf16.mxu0 (!%p236_p3), %v2639_v1  ;;  %2318 = vmatpush3.bf16.msra.mxu1 (!%p236_p3), %v2638_v0  ;;  %v2644_v6 = vld [vmem:[%s3200_s3 + $0xd8] sm:$0xff] (!%p236_p3)   ;;  %v2646_v8 = vld [vmem:[%s3200_s3 + $0xe0] sm:$0xff] (!%p236_p3)   ;;  %v2648_v10 = vld [vmem:[%s3200_s3 + $0xe8] sm:$0xff] (!%p236_p3)  }
   0x9   : > { %2414 = vmatpush3.bf16.msra.mxu0 (!%p236_p3), %v2639_v1  ;;  %2319 = vmatprep.subr.bf16.mxu1 (!%p236_p3), %v2640_v2  ;;  %v2645_v7 = vld [vmem:[%s3200_s3 + $0x118] sm:$0xff] (!%p236_p3)   ;;  %v2647_v9 = vld [vmem:[%s3200_s3 + $0x120] sm:$0xff] (!%p236_p3)   ;;  %v2649_v12 = vld [vmem:[%s3200_s3 + $0x128] sm:$0xff] (!%p236_p3)  }
   0xa   : > { %2415 = vmatprep.subr.bf16.mxu0 (!%p236_p3), %v2641_v3  ;;  %v2650_v14 = vld [vmem:[%s3200_s3 + $0xf0] sm:$0xff] (!%p236_p3)   ;;  %v2652_v16 = vld [vmem:[%s3200_s3 + $0xf8] sm:$0xff] (!%p236_p3)   ;;  %v2655_v18 = vld [vmem:[%s3200_s3] sm:$0xff] (!%p236_p3)  }
   0xb   : > { %v2651_v15 = vld [vmem:[%s3200_s3 + $0x130] sm:$0xff] (!%p236_p3)   ;;  %v2653_v17 = vld [vmem:[%s3200_s3 + $0x138] sm:$0xff] (!%p236_p3)   ;;  %v2657_v19 = vld [vmem:[%s3200_s3 + $0x1c0] sm:$0xff] (!%p236_p3)  }
   0xc   : > { %2320 = vmatpush3.bf16.msra.mxu1 (!%p236_p3), %v2640_v2  ;;  %v2660_v22 = vld [vmem:[%s3200_s3 + $0x8] sm:$0xff] (!%p236_p3)   ;;  %v2662_v26 = vld [vmem:[%s3200_s3 + $0x10] sm:$0xff] (!%p236_p3)   ;;  %v2664_v28 = vld [vmem:[%s3200_s3 + $0x18] sm:$0xff] (!%p236_p3)  }
   0xd   : > { %2416 = vmatpush3.bf16.msra.mxu0 (!%p236_p3), %v2641_v3  ;;  %2321 = vmatprep.subr.bf16.mxu1 (!%p236_p3), %v2642_v4  ;;  %v2661_v23 = vld [vmem:[%s3200_s3 + $0x1c8] sm:$0xff] (!%p236_p3)   ;;  %v2663_v27 = vld [vmem:[%s3200_s3 + $0x1d0] sm:$0xff] (!%p236_p3)   ;;  %v2665_v33 = vld [vmem:[%s3200_s3 + $0x1d8] sm:$0xff] (!%p236_p3)  }
   0xe   : > { %s2840_s9 = scalar_select %p287_p4, %s2760_s18, 1  ;;  %2417 = vmatprep.subr.bf16.mxu0 %v2643_v5  ;;  %v2666_v38 = vld [vmem:[%s3200_s3 + $0x20] sm:$0xff]   ;;  %v2668_v40 = vld [vmem:[%s3200_s3 + $0x28] sm:$0xff]   ;;  %v2671_v42 = vld [vmem:[%s3200_s3 + $0x30] sm:$0xff]  }
   0xf   : > { %v2667_v39 = vld [vmem:[%s3200_s3 + $0x1e0] sm:$0xff]   ;;  %v2669_v41 = vld [vmem:[%s3200_s3 + $0x1e8] sm:$0xff]   ;;  %v2673_v43 = vld [vmem:[%s3200_s3 + $0x1f0] sm:$0xff]  }
  0x10   : > { %s2849_s14 = smul.u32 72, %s2840_s9  ;;  %2322 = vmatpush3.bf16.msra.mxu1 %v2642_v4  ;;  %v2676_v44 = vld [vmem:[%s3200_s3 + $0x38] sm:$0xff]   ;;  %v2679_v46 = vld [vmem:[%s3200_s3 + $0x180] sm:$0xff]   ;;  %v2685_v58 = vld [vmem:[%s3200_s3 + $0x188] sm:$0xff]  }
  0x11   : > { %2418 = vmatpush3.bf16.msra.mxu0 %v2643_v5  ;;  %2323 = vmatprep.subr.bf16.mxu1 %v2644_v6  ;;  %v2677_v45 = vld [vmem:[%s3200_s3 + $0x1f8] sm:$0xff]   ;;  %v2683_v51 = vld [vmem:[%s3200_s3 + $0x80] sm:$0xff]   ;;  %v2686_v59 = vld [vmem:[%s3200_s3 + $0x88] sm:$0xff]  }
  0x12   : > { %2419 = vmatprep.subr.bf16.mxu0 %v2645_v7  ;;  %s2861_s25 = scalar_lea.vmem %s3197_s0, %s2849_s14  ;;  %s2870_s30 = scalar_lea.vmem %s3198_s1, %s2849_s14  ;;  %v2687_v62 = vld [vmem:[%s3200_s3 + $0x190] sm:$0xff]  }
  0x13   : > { %v2654_v11 = vld [vmem:[%s2861_s25 + $0x4] ss:$8 sps:$4 sm:$0xff]   ;;  %v2658_v20 = vld [vmem:[%s2861_s25 + $0x14] ss:$8 sps:$4 sm:$0xff]   ;;  %v323_v31 = vld [vmem:[%s2861_s25] sm:$0xf]  ;;  %s3013_s10 = scalar_lea.vmem %s3199_s2, %s2849_s14 }
  0x14   : > { %2324 = vmatpush3.bf16.msra.mxu1 %v2644_v6  ;;  %2333 = vmatprep.mubr.bf16.mxu1 %v2654_v11  ;;  %v2656_v13 = vld [vmem:[%s2870_s30 + $0x4] ss:$8 sps:$4 sm:$0xff]   ;;  %v2659_v21 = vld [vmem:[%s2870_s30 + $0x14] ss:$8 sps:$4 sm:$0xff]   ;;  %v2918_v32 = vld [vmem:[%s2861_s25 + $0x8] sm:$0xf] }
  0x15   : > { %2420 = vmatpush3.bf16.msra.mxu0 %v2645_v7  ;;  %2325 = vmatprep.subr.bf16.mxu1 %v2646_v8  ;;  %v2670_v24 = vld [vmem:[%s2861_s25 + $0x24] ss:$8 sps:$4 sm:$0xff]   ;;  %v2674_v29 = vld [vmem:[%s2861_s25 + $0x34] ss:$8 sps:$4 sm:$0xff]   ;;  %v1932_v34 = vcombine.low %v323_v31, %v2918_v32  ;;  %v2925_v35 = vld [vmem:[%s2870_s30 + $0x8] sm:$0xf] }
  0x16   : > { %2421 = vmatprep.subr.bf16.mxu0 %v2647_v9  ;;  %2429 = vmatprep.mubr.bf16.mxu0 %v2656_v13  ;;  %v2672_v25 = vld [vmem:[%s2870_s30 + $0x24] ss:$8 sps:$4 sm:$0xff]   ;;  %v2675_v30 = vld [vmem:[%s2870_s30 + $0x34] ss:$8 sps:$4 sm:$0xff]   ;;  %v2928_v36 = vld [vmem:[%s2870_s30 + $0x10] sm:$0xf] }
  0x17   : > { %v2056_v37 = vcombine.low %v2925_v35, %v2928_v36  ;;  %v2960_v47 = vld [vmem:[%s2870_s30 + $0x18] sm:$0xf]  ;;  %v327_v48 = vld [vmem:[%s2861_s25 + $0x10] sm:$0xf]  ;;  %v2967_v50 = vld [vmem:[%s2870_s30 + $0x20] sm:$0xf] }
  0x18   : > { %2326 = vmatpush3.bf16.msra.mxu1 %v2646_v8  ;;  %v2964_v49 = vld [vmem:[%s2861_s25 + $0x18] sm:$0xf]  ;;  %v2974_v53 = vld [vmem:[%s2861_s25 + $0x20] sm:$0xf]  ;;  %v2977_v54 = vld [vmem:[%s2861_s25 + $0x28] sm:$0xf]  ;;  %v2057_v56 = vcombine.low %v2960_v47, %v2967_v50 }
  0x19   : > { %2422 = vmatpush3.bf16.msra.mxu0 %v2647_v9  ;;  %2327 = vmatprep.subr.bf16.mxu1 %v2648_v10  ;;  %v1933_v52 = vcombine.low %v327_v48, %v2964_v49  ;;  %v2980_v55 = vld [vmem:[%s2870_s30 + $0x28] sm:$0xf]  ;;  %v2985_v57 = vld [vmem:[%s2870_s30 + $0x30] sm:$0xf]  ;;  %v1934_v60 = vcombine.low %v2974_v53, %v2977_v54  ;;  %v3004_v0 = vld [vmem:[%s2861_s25 + $0x38] sm:$0xf] }
  0x1a   : > { %2423 = vmatprep.subr.bf16.mxu0 %v2649_v12  ;;  %v2996_v61 = vld [vmem:[%s2861_s25 + $0x30] sm:$0xf]  ;;  %v2058_v63 = vcombine.low %v2980_v55, %v2985_v57  ;;  %v3007_v1 = vld [vmem:[%s2870_s30 + $0x38] sm:$0xf]  ;;  %v782_v2 = vld [vmem:[%s2870_s30 + $0x40] sm:$0xf] }
  0x1b   : > { %v2688_v3 = vld [vmem:[%s3200_s3 + $0x90] sm:$0xff]   ;;  %v1935_v4 = vcombine.low %v2996_v61, %v3004_v0  ;;  %v1226_v5 = vld [vmem:[%s3013_s10] sm:$0xf]  ;;  %v2059_v6 = vcombine.low %v3007_v1, %v782_v2  ;;  %v3024_v7 = vld [vmem:[%s3013_s10 + $0x8] sm:$0xf] }
  0x1c   : > { %2328 = vmatpush3.bf16.msra.mxu1 %v2648_v10  ;;  %v2689_v8 = vld [vmem:[%s3200_s3 + $0x198] sm:$0xff]   ;;  %v1972_v10 = vcombine.low %v2918_v32, %v327_v48  ;;  %v2084_v11 = vcombine.low %v1226_v5, %v3024_v7  ;;  %v2692_v13 = vld [vmem:[%s3200_s3 + $0xa0] sm:$0xff]   ;;  %v2742_v2 = vld [vmem:[%s3200_s3 + $0x230] sm:$0xff]  }
  0x1d   : > { %2424 = vmatpush3.bf16.msra.mxu0 %v2649_v12  ;;  %2329 = vmatprep.subr.bf16.mxu1 %v2650_v14  ;;  %v2690_v9 = vld [vmem:[%s3200_s3 + $0x98] sm:$0xff]   ;;  %v2691_v12 = vld [vmem:[%s3200_s3 + $0x1a0] sm:$0xff]  }
  0x1e   : > { %2425 = vmatprep.subr.bf16.mxu0 %v2651_v15  ;;  %v339_v32 = vld [vmem:[%s2861_s25 + $0x40] sm:$0xf] }
  0x1f   : > { %v2716_v48 = vld [vmem:[%s3200_s3 + $0x160] sm:$0xff]  }
  0x20   : > { %2330 = vmatpush3.bf16.msra.mxu1 %v2650_v14  ;;  %v2693_v14 = vld [vmem:[%s3200_s3 + $0x1a8] sm:$0xff]  }
  0x21   : > { %2426 = vmatpush3.bf16.msra.mxu0 %v2651_v15  ;;  %2331 = vmatprep.subr.bf16.mxu1 %v2652_v16  ;;  %v2694_v15 = vld [vmem:[%s3200_s3 + $0xa8] sm:$0xff]  }
  0x22   : > { %2427 = vmatprep.subr.bf16.mxu0 %v2653_v17 }
  0x24   : > { %2332 = vmatpush3.bf16.msra.mxu1 %v2652_v16  ;;  %v2697_v16 = vld [vmem:[%s3200_s3 + $0x1b0] sm:$0xff]  }
  0x25   : > { %2428 = vmatpush3.bf16.msra.mxu0 %v2653_v17  ;;  %2341 = vmatprep.subr.bf16.mxu1 %v2655_v18  ;;  %v2699_v17 = vld [vmem:[%s3200_s3 + $0xb0] sm:$0xff]  }
  0x26   : > { %2437 = vmatprep.subr.bf16.mxu0 %v2657_v19 }
  0x27   : > { %2334 = vmatmul.mubr.bf16.vlgmr.msra.gmra.mrb[0].mxu1 %v2658_v20  ;;  %v2705_v20 = vld [vmem:[%s3200_s3 + $0x40] sm:$0xff]  }
  0x28   : > { %2342 = vmatpush3.bf16.msra.mxu1 %v2655_v18  ;;  %2430 = vmatmul.mubr.bf16.vlgmr.msra.gmra.mrb[0].mxu0 %v2659_v21  ;;  %v2702_v18 = vld [vmem:[%s3200_s3 + $0x1b8] sm:$0xff]   ;;  %v3062_v21 = vld [vmem:[%s3013_s10 + $0x10] sm:$0xf] }
  0x29   : > { %2438 = vmatpush3.bf16.msra.mxu0 %v2657_v19  ;;  %2343 = vmatprep.subr.bf16.mxu1 %v2660_v22  ;;  %v2703_v19 = vld [vmem:[%s3200_s3 + $0xb8] sm:$0xff]  }
  0x2a   : > { %2439 = vmatprep.subr.bf16.mxu0 %v2661_v23  ;;  %2337 = vmatprep.mubr.bf16.mxu1 %v2670_v24  ;;  %v1973_v24 = vcombine.low %v2964_v49, %v2974_v53  ;;  %v2718_v49 = vld [vmem:[%s3200_s3 + $0x168] sm:$0xff]   ;;  %v2727_v53 = vld [vmem:[%s3200_s3 + $0x78] sm:$0xff]  }
  0x2b   : > { %2433 = vmatprep.mubr.bf16.mxu0 %v2672_v25 }
  0x2c   : > { %2344 = vmatpush3.bf16.msra.mxu1 %v2660_v22  ;;  %v3065_v22 = vld [vmem:[%s3013_s10 + $0x18] sm:$0xf] }
  0x2d   : > { %2440 = vmatpush3.bf16.msra.mxu0 %v2661_v23  ;;  %2345 = vmatprep.subr.bf16.mxu1 %v2662_v26  ;;  %v2707_v23 = vld [vmem:[%s3200_s3 + $0x140] sm:$0xff]   ;;  %v2085_v25 = vcombine.low %v3062_v21, %v3065_v22 }
  0x2e   : > { %2441 = vmatprep.subr.bf16.mxu0 %v2663_v27 }
  0x2f   : > { %2338 = vmatmul.mubr.bf16.gmra.mrb[4].mxu1 %v2674_v29  ;;  %v2710_v29 = vld [vmem:[%s3200_s3 + $0x148] sm:$0xff]  }
  0x30   : > { %2346 = vmatpush3.bf16.msra.mxu1 %v2662_v26  ;;  %2434 = vmatmul.mubr.bf16.gmra.mrb[4].mxu0 %v2675_v30  ;;  %v3075_v26 = vld [vmem:[%s3013_s10 + $0x20] sm:$0xf]  ;;  %v1974_v30 = vcombine.low %v2977_v54, %v2996_v61  ;;  %v2728_v54 = vld [vmem:[%s3200_s3 + $0x178] sm:$0xff]   ;;  %v2002_v61 = vcombine.low %v2967_v50, %v2980_v55  ;;  %v2140_v55 = vcombine.low %v3024_v7, %v3062_v21 }
  0x31   : > { %2442 = vmatpush3.bf16.msra.mxu0 %v2663_v27  ;;  %2347 = vmatprep.subr.bf16.mxu1 %v2664_v28  ;;  %v3078_v27 = vld [vmem:[%s3013_s10 + $0x28] sm:$0xf]  ;;  %v2739_v50 = vld [vmem:[%s3200_s3 + $0x218] sm:$0xff]  }
  0x32   : > { %2443 = vmatprep.subr.bf16.mxu0 %v2665_v33  ;;  %2357 = vmatprep.mubr.bf16.mxu1 %v1932_v34  ;;  %v2086_v31 = vcombine.low %v3075_v26, %v3078_v27  ;;  %v3095_v34 = vld [vmem:[%s3013_s10 + $0x30] sm:$0xf] }
  0x33   : > { %2453 = vmatprep.mubr.bf16.mxu0 %v2056_v37  ;;  %v3098_v37 = vld [vmem:[%s3013_s10 + $0x38] sm:$0xf] }
  0x34   : > { %2348 = vmatpush3.bf16.msra.mxu1 %v2664_v28  ;;  %v2709_v28 = vld [vmem:[%s3200_s3 + $0x48] sm:$0xff]  }
  0x35   : > { %2444 = vmatpush3.bf16.msra.mxu0 %v2665_v33  ;;  %2349 = vmatprep.subr.bf16.mxu1 %v2666_v38  ;;  %v2711_v33 = vld [vmem:[%s3200_s3 + $0x50] sm:$0xff]  }
  0x36   : > { %2445 = vmatprep.subr.bf16.mxu0 %v2667_v39 }
  0x38   : > { %2350 = vmatpush3.bf16.msra.mxu1 %v2666_v38  ;;  %v2712_v38 = vld [vmem:[%s3200_s3 + $0x150] sm:$0xff]  }
  0x39   : > { %2446 = vmatpush3.bf16.msra.mxu0 %v2667_v39  ;;  %2351 = vmatprep.subr.bf16.mxu1 %v2668_v40  ;;  %v1975_v39 = vcombine.low %v3004_v0, %v339_v32  ;;  %v2142_v0 = vcombine.low %v3078_v27, %v3095_v34 }
  0x3a   : > { %2447 = vmatprep.subr.bf16.mxu0 %v2669_v41 }
  0x3c   : > { %2352 = vmatpush3.bf16.msra.mxu1 %v2668_v40  ;;  %v766_v40 = vld [vmem:[%s2870_s30] sm:$0xf] }
  0x3d   : > { %2448 = vmatpush3.bf16.msra.mxu0 %v2669_v41  ;;  %2353 = vmatprep.subr.bf16.mxu1 %v2671_v42  ;;  %v2087_v41 = vcombine.low %v3095_v34, %v3098_v37 }
  0x3e   : > { %2449 = vmatprep.subr.bf16.mxu0 %v2673_v43 }
  0x40   : > { %2354 = vmatpush3.bf16.msra.mxu1 %v2671_v42  ;;  %v2713_v42 = vld [vmem:[%s3200_s3 + $0x58] sm:$0xff]  }
  0x41   : > { %2450 = vmatpush3.bf16.msra.mxu0 %v2673_v43  ;;  %2355 = vmatprep.subr.bf16.mxu1 %v2676_v44  ;;  %v2714_v43 = vld [vmem:[%s3200_s3 + $0x158] sm:$0xff]  }
  0x42   : > { %2451 = vmatprep.subr.bf16.mxu0 %v2677_v45 }
  0x44   : > { %2356 = vmatpush3.bf16.msra.mxu1 %v2676_v44  ;;  %v2000_v44 = vcombine.low %v766_v40, %v2925_v35  ;;  %v2717_v35 = vld [vmem:[%s3200_s3 + $0x68] sm:$0xff]  }
  0x45   : > { %2452 = vmatpush3.bf16.msra.mxu0 %v2677_v45  ;;  %2365 = vmatprep.subr.bf16.mxu1 %v2679_v46  ;;  %v2730_v45 = vld [vmem:[%s3013_s10 + $0x4] ss:$8 sps:$4 sm:$0xff]  }
  0x46   : > { %2461 = vmatprep.subr.bf16.mxu0 %v2683_v51 }
  0x47   : > { %2358 = vmatmul.mubr.bf16.vlgmr.msra.gmra.mrb[0].mxu1 %v1933_v52  ;;  %v2726_v52 = vld [vmem:[%s3200_s3 + $0x170] sm:$0xff]  }
  0x48   : > { %2366 = vmatpush3.bf16.msra.mxu1 %v2679_v46  ;;  %2454 = vmatmul.mubr.bf16.vlgmr.msra.gmra.mrb[0].mxu0 %v2057_v56  ;;  %v2715_v46 = vld [vmem:[%s3200_s3 + $0x60] sm:$0xff]  }
  0x49   : > { %2462 = vmatpush3.bf16.msra.mxu0 %v2683_v51  ;;  %2367 = vmatprep.subr.bf16.mxu1 %v2685_v58  ;;  %v2723_v51 = vld [vmem:[%s3200_s3 + $0x70] sm:$0xff]   ;;  %v2732_v56 = vld [vmem:[%s3200_s3 + $0x200] sm:$0xff]  }
  0x4a   : > { %2463 = vmatprep.subr.bf16.mxu0 %v2686_v59  ;;  %2361 = vmatprep.mubr.bf16.mxu1 %v1934_v60  ;;  %v2733_v60 = vld [vmem:[%s3200_s3 + $0x208] sm:$0xff]  }
  0x4b   : > { %2457 = vmatprep.mubr.bf16.mxu0 %v2058_v63  ;;  %v2737_v63 = vld [vmem:[%s3013_s10 + $0x34] ss:$8 sps:$4 sm:$0xff]  }
  0x4c   : > { %2368 = vmatpush3.bf16.msra.mxu1 %v2685_v58  ;;  %v2001_v58 = vcombine.low %v2928_v36, %v2960_v47  ;;  %v2738_v36 = vld [vmem:[%s3200_s3 + $0x210] sm:$0xff]   ;;  %v2003_v47 = vcombine.low %v2985_v57, %v3007_v1  ;;  %v2740_v57 = vld [vmem:[%s3200_s3 + $0x220] sm:$0xff]   ;;  %v2741_v1 = vld [vmem:[%s3200_s3 + $0x228] sm:$0xff]  }
  0x4d   : > { %2464 = vmatpush3.bf16.msra.mxu0 %v2686_v59  ;;  %2369 = vmatprep.subr.bf16.mxu1 %v2687_v62  ;;  %v2731_v59 = vld [vmem:[%s3013_s10 + $0x14] ss:$8 sps:$4 sm:$0xff]  }
  0x4e   : > { %2465 = vmatprep.subr.bf16.mxu0 %v2688_v3 }
  0x4f   : > { %2362 = vmatmul.mubr.bf16.gmra.mrb[4].mxu1 %v1935_v4  ;;  %v1242_v4 = vld [vmem:[%s3013_s10 + $0x40] sm:$0xf] }
  0x50   : > { %2370 = vmatpush3.bf16.msra.mxu1 %v2687_v62  ;;  %2458 = vmatmul.mubr.bf16.gmra.mrb[4].mxu0 %v2059_v6  ;;  %v2735_v62 = vld [vmem:[%s3013_s10 + $0x24] ss:$8 sps:$4 sm:$0xff]   ;;  %v2143_v5 = vcombine.low %v3098_v37, %v1242_v4  ;;  %v2141_v6 = vcombine.low %v3065_v22, %v3075_v26  ;;  %s1929_s10 = sshll.u32 %s2760_s18, 3  ;;  %s1931_s18 = sshll.u32 %s2840_s9, 3 }
  0x51   : > { %2466 = vmatpush3.bf16.msra.mxu0 %v2688_v3  ;;  %2371 = vmatprep.subr.bf16.mxu1 %v2689_v8  ;;  %v2743_v3 = vld [vmem:[%s3200_s3 + $0x238] sm:$0xff]   ;;  %p307_p5 = scmp.lt.s32.totalorder %s1929_s10, 15  ;;  %s321_s30 = scalar_lea.vmem %s3202_s5, %s1931_s18 }
  0x52   : > { %2467 = vmatprep.subr.bf16.mxu0 %v2690_v9  ;;  %2381 = vmatprep.mubr.bf16.mxu1 %v1972_v10 }
  0x53   : > { %2477 = vmatprep.mubr.bf16.mxu0 %v2084_v11  ;;  %s3208_s10 = smov (!%p307_p5, %s1929_s10), 15 }
  0x54   : > { %2372 = vmatpush3.bf16.msra.mxu1 %v2689_v8  ;;  %s1930_s7 = sshll.u32 %s3208_s10, 2 }
  0x55   : > { %2468 = vmatpush3.bf16.msra.mxu0 %v2690_v9  ;;  %2373 = vmatprep.subr.bf16.mxu1 %v2691_v12  ;;  %s313_s11 = scalar_lea.vmem %s3201_s4, %s1930_s7 }
  0x56   : > { %2469 = vmatprep.subr.bf16.mxu0 %v2692_v13 }
  0x58   : > { %2374 = vmatpush3.bf16.msra.mxu1 %v2691_v12 }
  0x59   : > { %2470 = vmatpush3.bf16.msra.mxu0 %v2692_v13  ;;  %2375 = vmatprep.subr.bf16.mxu1 %v2693_v14 }
  0x5a   : > { %2471 = vmatprep.subr.bf16.mxu0 %v2694_v15 }
  0x5c   : > { %2376 = vmatpush3.bf16.msra.mxu1 %v2693_v14 }
  0x5d   : > { %2472 = vmatpush3.bf16.msra.mxu0 %v2694_v15  ;;  %2377 = vmatprep.subr.bf16.mxu1 %v2697_v16 }
  0x5e   : > { %2473 = vmatprep.subr.bf16.mxu0 %v2699_v17 }
  0x60   : > { %2378 = vmatpush3.bf16.msra.mxu1 %v2697_v16 }
  0x61   : > { %2474 = vmatpush3.bf16.msra.mxu0 %v2699_v17  ;;  %2379 = vmatprep.subr.bf16.mxu1 %v2702_v18 }
  0x62   : > { %2475 = vmatprep.subr.bf16.mxu0 %v2703_v19 }
  0x64   : > { %2380 = vmatpush3.bf16.msra.mxu1 %v2702_v18 }
  0x65   : > { %2476 = vmatpush3.bf16.msra.mxu0 %v2703_v19  ;;  %2389 = vmatprep.subr.bf16.mxu1 %v2705_v20 }
  0x66   : > { %2485 = vmatprep.subr.bf16.mxu0 %v2707_v23 }
  0x67   : > { %2382 = vmatmul.mubr.bf16.vlgmr.msra.gmra.mrb[0].mxu1 %v1973_v24 }
  0x68   : > { %2390 = vmatpush3.bf16.msra.mxu1 %v2705_v20  ;;  %2478 = vmatmul.mubr.bf16.vlgmr.msra.gmra.mrb[0].mxu0 %v2085_v25 }
  0x69   : > { %2486 = vmatpush3.bf16.msra.mxu0 %v2707_v23  ;;  %2391 = vmatprep.subr.bf16.mxu1 %v2709_v28 }
  0x6a   : > { %2487 = vmatprep.subr.bf16.mxu0 %v2710_v29  ;;  %2385 = vmatprep.mubr.bf16.mxu1 %v1974_v30 }
  0x6b   : > { %2481 = vmatprep.mubr.bf16.mxu0 %v2086_v31 }
  0x6c   : > { %2392 = vmatpush3.bf16.msra.mxu1 %v2709_v28 }
  0x6d   : > { %2488 = vmatpush3.bf16.msra.mxu0 %v2710_v29  ;;  %2393 = vmatprep.subr.bf16.mxu1 %v2711_v33 }
  0x6e   : > { %2489 = vmatprep.subr.bf16.mxu0 %v2712_v38 }
  0x6f   : > { %2386 = vmatmul.mubr.bf16.gmra.mrb[4].mxu1 %v1975_v39 }
  0x70   : > { %2394 = vmatpush3.bf16.msra.mxu1 %v2711_v33  ;;  %2482 = vmatmul.mubr.bf16.gmra.mrb[4].mxu0 %v2087_v41 }
  0x71   : > { %2490 = vmatpush3.bf16.msra.mxu0 %v2712_v38  ;;  %2395 = vmatprep.subr.bf16.mxu1 %v2713_v42 }
  0x72   : > { %2491 = vmatprep.subr.bf16.mxu0 %v2714_v43  ;;  %2405 = vmatprep.mubr.bf16.mxu1 %v2000_v44 }
  0x73   : > { %2501 = vmatprep.mubr.bf16.mxu0 %v2730_v45 }
  0x74   : > { %2396 = vmatpush3.bf16.msra.mxu1 %v2713_v42 }
  0x75   : > { %2492 = vmatpush3.bf16.msra.mxu0 %v2714_v43  ;;  %2397 = vmatprep.subr.bf16.mxu1 %v2715_v46 }
  0x76   : > { %2493 = vmatprep.subr.bf16.mxu0 %v2716_v48 }
  0x78   : > { %2398 = vmatpush3.bf16.msra.mxu1 %v2715_v46 }
  0x79   : > { %2494 = vmatpush3.bf16.msra.mxu0 %v2716_v48  ;;  %2399 = vmatprep.subr.bf16.mxu1 %v2717_v35 }
  0x7a   : > { %2495 = vmatprep.subr.bf16.mxu0 %v2718_v49 }
  0x7c   : > { %2400 = vmatpush3.bf16.msra.mxu1 %v2717_v35 }
  0x7d   : > { %2496 = vmatpush3.bf16.msra.mxu0 %v2718_v49  ;;  %2401 = vmatprep.subr.bf16.mxu1 %v2723_v51 }
  0x7e   : > { %2497 = vmatprep.subr.bf16.mxu0 %v2726_v52 }
  0x80   : > { %2402 = vmatpush3.bf16.msra.mxu1 %v2723_v51 }
  0x81   : > { %2498 = vmatpush3.bf16.msra.mxu0 %v2726_v52  ;;  %2403 = vmatprep.subr.bf16.mxu1 %v2727_v53 }
  0x82   : > { %2499 = vmatprep.subr.bf16.mxu0 %v2728_v54 }
  0x84   : > { %2404 = vmatpush3.bf16.msra.mxu1 %v2727_v53 }
  0x85   : > { %2500 = vmatpush3.bf16.msra.mxu0 %v2728_v54  ;;  %2533 = vmatprep.subr.bf16.mxu1 %v2732_v56 }
  0x86   : > { %2509 = vmatprep.subr.bf16.mxu0 %v2732_v56 }
  0x87   : > { %2406 = vmatmul.mubr.bf16.vlgmr.msra.gmra.mrb[0].mxu1 %v2001_v58 }
  0x88   : > { %2502 = vmatmul.mubr.bf16.vlgmr.msra.gmra.mrb[0].mxu0 %v2731_v59  ;;  %2541 = vmatpush3.bf16.msra.mxu1 %v2732_v56 }
  0x89   : > { %2510 = vmatpush3.bf16.msra.mxu0 %v2732_v56  ;;  %2534 = vmatprep.subr.bf16.mxu1 %v2733_v60 }
  0x8a   : > { %2511 = vmatprep.subr.bf16.mxu0 %v2733_v60  ;;  %2409 = vmatprep.mubr.bf16.mxu1 %v2002_v61 }
  0x8b   : > { %2505 = vmatprep.mubr.bf16.mxu0 %v2735_v62 }
  0x8c   : > { %2542 = vmatpush3.bf16.msra.mxu1 %v2733_v60 }
  0x8d   : > { %2512 = vmatpush3.bf16.msra.mxu0 %v2733_v60  ;;  %2535 = vmatprep.subr.bf16.mxu1 %v2738_v36 }
  0x8e   : > { %2513 = vmatprep.subr.bf16.mxu0 %v2738_v36 }
  0x8f   : > { %2410 = vmatmul.mubr.bf16.gmra.mrb[4].mxu1 %v2003_v47 }
  0x90   : > { %2506 = vmatmul.mubr.bf16.gmra.mrb[4].mxu0 %v2737_v63  ;;  %2543 = vmatpush3.bf16.msra.mxu1 %v2738_v36 }
  0x91   : > { %2514 = vmatpush3.bf16.msra.mxu0 %v2738_v36  ;;  %2536 = vmatprep.subr.bf16.mxu1 %v2739_v50 }
  0x92   : > { %2515 = vmatprep.subr.bf16.mxu0 %v2739_v50  ;;  %2525 = vmatprep.mubr.bf16.mxu0 %v2140_v55 }
  0x93   : > { %2529 = vmatprep.mubr.bf16.mxu1 %v2142_v0 }
  0x94   : > { %2544 = vmatpush3.bf16.msra.mxu1 %v2739_v50 }
  0x95   : > { %2516 = vmatpush3.bf16.msra.mxu0 %v2739_v50  ;;  %2537 = vmatprep.subr.bf16.mxu1 %v2740_v57 }
  0x96   : > { %2517 = vmatprep.subr.bf16.mxu0 %v2740_v57 }
  0x98   : > { %2545 = vmatpush3.bf16.msra.mxu1 %v2740_v57 }
  0x99   : > { %2518 = vmatpush3.bf16.msra.mxu0 %v2740_v57  ;;  %2538 = vmatprep.subr.bf16.mxu1 %v2741_v1 }
  0x9a   : > { %2519 = vmatprep.subr.bf16.mxu0 %v2741_v1 }
  0x9c   : > { %2546 = vmatpush3.bf16.msra.mxu1 %v2741_v1 }
  0x9d   : > { %2520 = vmatpush3.bf16.msra.mxu0 %v2741_v1  ;;  %2539 = vmatprep.subr.bf16.mxu1 %v2742_v2 }
  0x9e   : > { %2521 = vmatprep.subr.bf16.mxu0 %v2742_v2 }
  0xa0   : > { %2547 = vmatpush3.bf16.msra.mxu1 %v2742_v2 }
  0xa1   : > { %2522 = vmatpush3.bf16.msra.mxu0 %v2742_v2  ;;  %2540 = vmatprep.subr.bf16.mxu1 %v2743_v3 }
  0xa2   : > { %2523 = vmatprep.subr.bf16.mxu0 %v2743_v3 }
  0xa4   : > { %2548 = vmatpush3.bf16.msra.mxu1 %v2743_v3 }
  0xa5   : > { %2524 = vmatpush3.bf16.msra.mxu0 %v2743_v3 }
  0xa7   : > { %2530 = vmatmul.mubr.bf16.vlgmr.msra.gmra.mrb[8].mxu1 %v2143_v5 }
  0xa8   : > { %2526 = vmatmul.mubr.bf16.vlgmr.msra.gmra.mrb[0].mxu0 %v2141_v6 }
 0x15a   : > { %v2407_v7 = vpop.f32.mrb[0].mxu1 }
 0x15b   : > { %v903_v8 = vpop.f32.mrb[1].mxu1 }
 0x15c   : > { %v2408_v9 = vpop.f32.mrb[2].mxu1 }
 0x15d   : > { %v906_v10 = vpop.f32.mrb[3].mxu1 }
 0x162   : > { %v2411_v11 = vpop.f32.mrb[4].mxu1 }
 0x163   : > { %v2507_v12 = vpop.f32.mrb[4].mxu0  ;;  %v919_v13 = vpop.f32.mrb[5].mxu1 }
 0x164   : > { %v2553_v14 = vadd.f32 %v2507_v12, %v2411_v11  ;;  %v1521_v15 = vpop.f32.mrb[5].mxu0  ;;  %v2412_v16 = vpop.f32.mrb[6].mxu1 }
 0x165   : > { %v2555_v17 = vadd.f32 %v1521_v15, %v919_v13  ;;  %v2508_v18 = vpop.f32.mrb[6].mxu0  ;;  %v922_v19 = vpop.f32.mrb[7].mxu1 }
 0x166   : > { %v2557_v20 = vadd.f32 %v2508_v18, %v2412_v16  ;;  %v1524_v21 = vpop.f32.mrb[7].mxu0 }
 0x167   : > { %v2559_v22 = vadd.f32 %v1524_v21, %v922_v19 }
 0x17a   : > { %v2531_v23 = vpop.f32.mrb[8].mxu1 }
 0x17b   : > { %v2527_v24 = vpop.f32.mrb[0].mxu0  ;;  %v2554_v25 = vadd.f32 %v2553_v14, %v2531_v23  ;;  %v1663_v26 = vpop.f32.mrb[9].mxu1 }
 0x17c   : > { %v2549_v27 = vadd.f32 %v2527_v24, %v2407_v7  ;;  %v1647_v28 = vpop.f32.mrb[1].mxu0  ;;  %v2556_v29 = vadd.f32 %v2555_v17, %v1663_v26  ;;  %v2532_v30 = vpop.f32.mrb[10].mxu1 }
 0x17d   : > { %v2550_v31 = vadd.f32 %v1647_v28, %v903_v8  ;;  %v2528_v32 = vpop.f32.mrb[2].mxu0  ;;  %v2558_v33 = vadd.f32 %v2557_v20, %v2532_v30  ;;  %v1666_v34 = vpop.f32.mrb[11].mxu1  ;;  %v1745_v36 = vmul.f32 %v2554_v25, %v2554_v25 }
 0x17e   : > { %v2551_v37 = vadd.f32 %v2528_v32, %v2408_v9  ;;  %v1650_v38 = vpop.f32.mrb[3].mxu0  ;;  %v2560_v39 = vadd.f32 %v2559_v22, %v1666_v34  ;;  %v1741_v35 = vmul.f32 %v2549_v27, %v2549_v27  ;;  %v1743_v56 = vmul.f32 %v2556_v29, %v2556_v29 }
 0x17f   : > { %v2204_v40 = vpack.c.bf16 %v2558_v33, %v2554_v25  ;;  %v2552_v41 = vadd.f32 %v1650_v38, %v906_v10  ;;  %v1739_v44 = vmul.f32 %v2550_v31, %v2550_v31  ;;  %v1746_v50 = vmul.f32 %v2558_v33, %v2558_v33 }
 0x180   : > { %v2194_v42 = vpack.c.bf16 %v2551_v37, %v2549_v27  ;;  %v2199_v43 = vpack.c.bf16 %v2560_v39, %v2556_v29  ;;  %v1742_v52 = vmul.f32 %v2551_v37, %v2551_v37  ;;  %v1744_v61 = vmul.f32 %v2560_v39, %v2560_v39 }
 0x181   : > { %2208 = vst [vmem:[%s313_s11 + $0x18] sm:$0xff] %v2204_v40   ;;  %v2189_v45 = vpack.c.bf16 %v2552_v41, %v2550_v31  ;;  %v1726_v46 = vadd.f32 %v2552_v41, %v2550_v31  ;;  %v1740_v48 = vmul.f32 %v2552_v41, %v2552_v41 }
 0x182   : > { %2206 = vst [vmem:[%s313_s11 + $0x8] sm:$0xff] %v2194_v42   ;;  %2207 = vst [vmem:[%s313_s11 + $0x10] sm:$0xff] %v2199_v43  }
 0x183   : > { %2190 = vst [vmem:[%s313_s11] sm:$0xff] %v2189_v45   ;;  %v1727_v49 = vadd.f32 %v2549_v27, %v1726_v46  ;;  %v1747_v51 = vadd.f32 %v1740_v48, %v1739_v44 }
 0x185   : > { %v1748_v53 = vadd.f32 %v1747_v51, %v1741_v35  ;;  %v1728_v54 = vadd.f32 %v2551_v37, %v1727_v49 }
 0x187   : > { %v1729_v58 = vadd.f32 %v2556_v29, %v1728_v54  ;;  %v1749_v59 = vadd.f32 %v1748_v53, %v1742_v52 }
 0x189   : > { %v1730_v60 = vadd.f32 %v2560_v39, %v1729_v58  ;;  %v1750_v62 = vadd.f32 %v1749_v59, %v1743_v56 }
 0x18b   : > { %v1731_v47 = vadd.f32 %v2554_v25, %v1730_v60  ;;  %v1751_v63 = vadd.f32 %v1750_v62, %v1744_v61 }
 0x18d   : > { %v1732_v55 = vadd.f32 %v2558_v33, %v1731_v47  ;;  %v1752_v0 = vadd.f32 %v1751_v63, %v1745_v36 }
 0x18f   : > { %v1733_v57 = vrot.slane %v1732_v55, 4  ;;  %v1753_v1 = vadd.f32 %v1752_v0, %v1746_v50 }
 0x191   : > { %v1734_v2 = vadd.f32 %v1733_v57, %v1732_v55  ;;  %v1754_v3 = vrot.slane %v1753_v1, 4 }
 0x193   : > { %v1735_v4 = vrot.slane %v1734_v2, 2  ;;  %v1755_v5 = vadd.f32 %v1754_v3, %v1753_v1 }
 0x195   : > { %v1736_v6 = vadd.f32 %v1735_v4, %v1734_v2  ;;  %v1756_v7 = vrot.slane %v1755_v5, 2 }
 0x197   : > { %v1737_v8 = vrot.slane %v1736_v6, 1  ;;  %v1757_v9 = vadd.f32 %v1756_v7, %v1755_v5 }
 0x199   : > { %v1758_v10 = vrot.slane %v1757_v9, 1  ;;  %v1738_v11 = vadd.f32 %v1737_v8, %v1736_v6 }
 0x19b   : > { %v1759_v12 = vadd.f32 %v1758_v10, %v1757_v9 }
 0x19d   : > { %v1761_v13 = vsel %vm1760_vm0, %v1738_v11, %v1759_v12 }
 0x19e   : > { %v1763_v14 = vsel %vm1762_vm1, %v1761_v13, 0.0 }
 0x19f   : > { %1764 = vst [vmem:[%s321_s30] sm:$0xff] %v1763_v14 }
 0x1a0 PF: > { %s16_s20 = sadd.s32 1, %s2768_s20   ;;  %s3203_s18 = smov %s2764_s19 }
 0x1a1   : > { %p13_p6 = scmp.ge.s32.totalorder %s16_s20, 4   ;;  %s3204_s19 = smov %s3206_s21 }
 0x1a3   :  { %15 = sbr.rel (!%p13_p6) target bundleno = 2 (0x2), region = 95 }

// kernel: resblock_forward.7
= control target key start
LH: loop header
LB: loop body
LE: loop exit
PB: predicated region body
PF: predicated region fallthrough
CT: control target
= control target key end

     0   :  { %s2647_s12 = smov 0   ;;  %s2649_s13 = smov 0   ;;  %s3192_s0 = inlined_call_operand.vmem [shape: bf16[2,10,10,128], index: 0, kind: input, shape index: {}]   ;;  %s3193_s1 = inlined_call_operand.vmem [shape: bf16[9,128,128], index: 1, kind: input, shape index: {}]   ;;  %s3194_s2 = inlined_call_operand.vmem [shape: bf16[128,128], index: 2, kind: output, shape index: {0}]   ;;  %s3195_s3 = inlined_call_operand.vmem [shape: f32[16,128], index: 3, kind: output, shape index: {1}]  }
   0x1   :  { %s2651_s14 = smov 0  }
   0x2 LB: > { %s26_s15 = sadd.s32 1, %s2621_s13  ;;  %p1838_p0 = scmp.ge.s32.totalorder %s2625_s14, 1  ;;  %s2625_s14 = sphi %s2651_s14, %s14_s14   ;;  %s2621_s13 = sphi %s2649_s13, %s3197_s13   ;;  %s2617_s12 = sphi %s2647_s12, %s3196_s12  }
   0x3   : > { %p28_p1 = scmp.ge.s32.totalorder %s26_s15, 2  ;;  %p165_p2 = scmp.lt.s32.totalorder %s2625_s14, 3 }
   0x5   : > { %s3199_s15 = smov (%p28_p1, %s26_s15), 0  ;;  %p166_p3 = pnand %p1838_p0, %p165_p2 }
   0x6   : > { %v2522_v0 = vld [vmem:[%s3193_s1 + $0x40] sm:$0xff] (!%p166_p3)   ;;  %p203_p4 = scmp.lt.s32.totalorder (!%p166_p3), %s2617_s12, 1  ;;  %v2524_v2 = vld [vmem:[%s3193_s1 + $0x48] sm:$0xff] (!%p166_p3)   ;;  %v2526_v4 = vld [vmem:[%s3193_s1 + $0x50] sm:$0xff] (!%p166_p3)   ;;  %vm305_vm0 = vcmask (!%p166_p3), 1046528   ;;  %vm585_vm1 = vcmask (!%p166_p3), 1045504  }
   0x7   : > { %169 = sbr.rel (%p166_p3) target bundleno = 416 (0x1a0), region = 28  ;;  %v2523_v1 = vld [vmem:[%s3193_s1 + $0x100] sm:$0xff] (!%p166_p3)   ;;  %2201 = vmatprep.subr.bf16.mxu1 (!%p166_p3), %v2522_v0  ;;  %v2525_v3 = vld [vmem:[%s3193_s1 + $0x108] sm:$0xff] (!%p166_p3)   ;;  %v2527_v5 = vld [vmem:[%s3193_s1 + $0x110] sm:$0xff] (!%p166_p3)   ;;  %s1840_s8 = sshll.u32 (!%p166_p3), %s2617_s12, 3  ;;  %vm1697_vm2 = vcmask (!%p166_p3), 1040384  }
   0x8   : > { %2297 = vmatprep.subr.bf16.mxu0 (!%p166_p3), %v2523_v1  ;;  %2202 = vmatpush3.bf16.msra.mxu1 (!%p166_p3), %v2522_v0  ;;  %v2528_v6 = vld [vmem:[%s3193_s1 + $0x58] sm:$0xff] (!%p166_p3)   ;;  %v2530_v8 = vld [vmem:[%s3193_s1 + $0x60] sm:$0xff] (!%p166_p3)   ;;  %v2532_v10 = vld [vmem:[%s3193_s1 + $0x68] sm:$0xff] (!%p166_p3)   ;;  %p213_p5 = scmp.lt.s32.totalorder (!%p166_p3), %s1840_s8, 15  ;;  %vm1699_vm3 = vcmask (!%p166_p3), 1041408  }
   0x9   : > { %2298 = vmatpush3.bf16.msra.mxu0 (!%p166_p3), %v2523_v1  ;;  %2203 = vmatprep.subr.bf16.mxu1 (!%p166_p3), %v2524_v2  ;;  %v2529_v7 = vld [vmem:[%s3193_s1 + $0x118] sm:$0xff] (!%p166_p3)   ;;  %v2531_v9 = vld [vmem:[%s3193_s1 + $0x120] sm:$0xff] (!%p166_p3)   ;;  %v2533_v11 = vld [vmem:[%s3193_s1 + $0x128] sm:$0xff] (!%p166_p3)  }
   0xa   : > { %2299 = vmatprep.subr.bf16.mxu0 (!%p166_p3), %v2525_v3  ;;  %v2534_v27 = vld [vmem:[%s3193_s1 + $0x70] sm:$0xff] (!%p166_p3)   ;;  %v2536_v47 = vld [vmem:[%s3193_s1 + $0x78] sm:$0xff] (!%p166_p3)   ;;  %v2538_v54 = vld [vmem:[%s3193_s1] sm:$0xff] (!%p166_p3)  }
   0xb   : > { %v2535_v32 = vld [vmem:[%s3193_s1 + $0x130] sm:$0xff] (!%p166_p3)   ;;  %v2537_v50 = vld [vmem:[%s3193_s1 + $0x138] sm:$0xff] (!%p166_p3)   ;;  %v2539_v56 = vld [vmem:[%s3193_s1 + $0x140] sm:$0xff] (!%p166_p3)  }
   0xc   : > { %2204 = vmatpush3.bf16.msra.mxu1 (!%p166_p3), %v2524_v2  ;;  %v2540_v58 = vld [vmem:[%s3193_s1 + $0x8] sm:$0xff] (!%p166_p3)  }
   0xd   : > { %2300 = vmatpush3.bf16.msra.mxu0 (!%p166_p3), %v2525_v3  ;;  %2205 = vmatprep.subr.bf16.mxu1 (!%p166_p3), %v2526_v4  ;;  %v2541_v60 = vld [vmem:[%s3193_s1 + $0x148] sm:$0xff] (!%p166_p3)  }
   0xe   : > { %s2687_s28 = scalar_select %p203_p4, %s2617_s12, 1  ;;  %2301 = vmatprep.subr.bf16.mxu0 %v2527_v5 }
   0xf   : > { %s3201_s8 = smov (!%p213_p5, %s1840_s8), 15 }
  0x10   : > { %s2497_s6 = smul.u32 80, %s2687_s28  ;;  %2206 = vmatpush3.bf16.msra.mxu1 %v2526_v4  ;;  %s1841_s9 = sshll.u32 %s3201_s8, 2 }
  0x11   : > { %2302 = vmatpush3.bf16.msra.mxu0 %v2527_v5  ;;  %2207 = vmatprep.subr.bf16.mxu1 %v2528_v6  ;;  %s219_s16 = scalar_lea.vmem %s3194_s2, %s1841_s9  ;;  %s1842_s12 = sshll.u32 %s2687_s28, 3 }
  0x12   : > { %2303 = vmatprep.subr.bf16.mxu0 %v2529_v7  ;;  %s2705_s17 = scalar_lea.vmem %s3192_s0, %s2497_s6  ;;  %s227_s19 = scalar_lea.vmem %s3195_s3, %s1842_s12 }
  0x13   : > { %v2714_v12 = vld [vmem:[%s2705_s17] sm:$0xf]  ;;  %v2717_v13 = vld [vmem:[%s2705_s17 + $0x4] sm:$0x1]  ;;  %v2720_v14 = vld [vmem:[%s2705_s17 + $0x8] sm:$0xf] }
  0x14   : > { %2208 = vmatpush3.bf16.msra.mxu1 %v2528_v6  ;;  %v2723_v15 = vld [vmem:[%s2705_s17 + $0xc] sm:$0x1]  ;;  %v249_v16 = vunpack.c.l.bf16 %v2714_v12  ;;  %v250_v17 = vunpack.c.l.bf16 %v2717_v13  ;;  %v251_v18 = vunpack.c.l.bf16 %v2720_v14  ;;  %v2730_v20 = vld [vmem:[%s2705_s17 + $0x10] sm:$0xf]  ;;  %v2733_v21 = vld [vmem:[%s2705_s17 + $0x14] sm:$0x1] }
  0x15   : > { %2304 = vmatpush3.bf16.msra.mxu0 %v2529_v7  ;;  %2209 = vmatprep.subr.bf16.mxu1 %v2530_v8  ;;  %v252_v19 = vunpack.c.l.bf16 %v2723_v15  ;;  %v2742_v25 = vld [vmem:[%s2705_s17 + $0x18] sm:$0xf]  ;;  %v253_v26 = vunpack.c.l.bf16 %v2730_v20  ;;  %v2751_v29 = vld [vmem:[%s2705_s17 + $0x1c] sm:$0x1]  ;;  %v254_v30 = vunpack.c.l.bf16 %v2733_v21  ;;  %v2763_v36 = vld [vmem:[%s2705_s17 + $0x20] sm:$0xf]  ;;  %v1903_v37 = vcombine.low %v2720_v14, %v2730_v20 }
  0x16   : > { %2305 = vmatprep.subr.bf16.mxu0 %v2531_v9  ;;  %v306_v22 = vrot.slane %v249_v16, 1  ;;  %v307_v23 = vrot.slane %v250_v17, 1  ;;  %v309_v24 = vrot.slane %v251_v18, 1  ;;  %v255_v31 = vunpack.c.l.bf16 %v2742_v25  ;;  %v2773_v41 = vld [vmem:[%s2705_s17 + $0x24] sm:$0x1]  ;;  %v2542_v7 = vld [vmem:[%s3193_s1 + $0x10] sm:$0xff]  }
  0x17   : > { %v310_v28 = vrot.slane %v252_v19, 1  ;;  %v256_v34 = vunpack.c.l.bf16 %v2751_v29  ;;  %v312_v35 = vrot.slane %v253_v26, 1  ;;  %v313_v39 = vrot.slane %v254_v30, 1  ;;  %v2809_v61 = vld [vmem:[%s2705_s17 + $0x28] sm:$0xf] }
  0x18   : > { %2210 = vmatpush3.bf16.msra.mxu1 %v2530_v8  ;;  %v308_v33 = vsel %vm305_vm0, %v306_v22, %v307_v23  ;;  %v315_v40 = vrot.slane %v255_v31, 1  ;;  %v257_v42 = vunpack.c.l.bf16 %v2763_v36  ;;  %v258_v45 = vunpack.c.l.bf16 %v2773_v41  ;;  %v2812_v62 = vld [vmem:[%s2705_s17 + $0x2c] sm:$0x1]  ;;  %v2817_v1 = vld [vmem:[%s2705_s17 + $0x30] sm:$0xf] }
  0x19   : > { %2306 = vmatpush3.bf16.msra.mxu0 %v2531_v9  ;;  %2211 = vmatprep.subr.bf16.mxu1 %v2532_v10  ;;  %v311_v38 = vsel %vm305_vm0, %v309_v24, %v310_v28  ;;  %v316_v44 = vrot.slane %v256_v34, 1  ;;  %v1904_v46 = vcombine.low %v2742_v25, %v2763_v36  ;;  %v314_v48 = vsel %vm305_vm0, %v312_v35, %v313_v39  ;;  %v2825_v4 = vld [vmem:[%s2705_s17 + $0x34] sm:$0x1]  ;;  %v2850_v23 = vld [vmem:[%s2705_s17 + $0x40] sm:$0xf] }
  0x1a   : > { %2307 = vmatprep.subr.bf16.mxu0 %v2533_v11  ;;  %v338_v43 = vpack.c.bf16 %v311_v38, %v308_v33  ;;  %v318_v49 = vrot.slane %v257_v42, 1  ;;  %v908_v51 = vpack.c.bf16 %v314_v48, %v311_v38  ;;  %v319_v52 = vrot.slane %v258_v45, 1  ;;  %v2862_v33 = vld [vmem:[%s2705_s17 + $0x44] sm:$0x1] }
  0x1b   : > { %v317_v53 = vsel %vm305_vm0, %v315_v40, %v316_v44  ;;  %v259_v63 = vunpack.c.l.bf16 %v2809_v61  ;;  %v260_v0 = vunpack.c.l.bf16 %v2812_v62  ;;  %v589_v2 = vrot.slane %v251_v18, 2  ;;  %v2555_v62 = vld [vmem:[%s3193_s1 + $0x80] sm:$0xff]  }
  0x1c   : > { %2212 = vmatpush3.bf16.msra.mxu1 %v2532_v10  ;;  %2217 = vmatprep.mubr.bf16.mxu1 %v338_v43  ;;  %v320_v55 = vsel %vm305_vm0, %v318_v49, %v319_v52  ;;  %v2800_v57 = vpack.c.bf16 %v317_v53, %v314_v48  ;;  %v590_v3 = vrot.slane %v252_v19, 2  ;;  %v261_v5 = vunpack.c.l.bf16 %v2817_v1  ;;  %v2846_v19 = vld [vmem:[%s2705_s17 + $0x3c] sm:$0x1] }
  0x1d   : > { %2308 = vmatpush3.bf16.msra.mxu0 %v2533_v11  ;;  %2213 = vmatprep.subr.bf16.mxu1 %v2534_v27  ;;  %v909_v59 = vpack.c.bf16 %v320_v55, %v317_v53  ;;  %v1905_v6 = vcombine.low %v2809_v61, %v2817_v1  ;;  %v321_v8 = vrot.slane %v259_v63, 1  ;;  %v322_v9 = vrot.slane %v260_v0, 1  ;;  %v2839_v11 = vld [vmem:[%s2705_s17 + $0x38] sm:$0xf] }
  0x1e   : > { %2309 = vmatprep.subr.bf16.mxu0 %v2535_v32  ;;  %2313 = vmatprep.mubr.bf16.mxu0 %v908_v51  ;;  %v262_v10 = vunpack.c.l.bf16 %v2825_v4  ;;  %v592_v15 = vrot.slane %v253_v26, 2  ;;  %v324_v18 = vrot.slane %v261_v5, 1  ;;  %v263_v22 = vunpack.c.l.bf16 %v2839_v11  ;;  %v2545_v52 = vld [vmem:[%s3193_s1 + $0x158] sm:$0xff]   ;;  %v2558_v4 = vld [vmem:[%s3193_s1 + $0x88] sm:$0xff]  }
  0x1f   : > { %v593_v24 = vrot.slane %v254_v30, 2  ;;  %v323_v26 = vsel %vm305_vm0, %v321_v8, %v322_v9  ;;  %v265_v35 = vunpack.c.l.bf16 %v2850_v23  ;;  %v266_v30 = vunpack.c.l.bf16 %v2862_v33  ;;  %v2550_v8 = vld [vmem:[%s3193_s1 + $0x30] sm:$0xff]  }
  0x20   : > { %2214 = vmatpush3.bf16.msra.mxu1 %v2534_v27  ;;  %v2543_v27 = vld [vmem:[%s3193_s1 + $0x150] sm:$0xff]   ;;  %v325_v28 = vrot.slane %v262_v10, 1  ;;  %v2865_v38 = vpack.c.bf16 %v323_v26, %v320_v55  ;;  %v327_v21 = vrot.slane %v263_v22, 1  ;;  %v1906_v44 = vcombine.low %v2839_v11, %v2850_v23 }
  0x21   : > { %2310 = vmatpush3.bf16.msra.mxu0 %v2535_v32  ;;  %2215 = vmatprep.subr.bf16.mxu1 %v2536_v47  ;;  %v264_v32 = vunpack.c.l.bf16 %v2846_v19  ;;  %v904_v43 = vrot.slane %v265_v35, 1  ;;  %v905_v49 = vrot.slane %v266_v30, 1  ;;  %v2886_v51 = vsel %vm585_vm1, %v592_v15, %v593_v24  ;;  %v2551_v9 = vld [vmem:[%s3193_s1 + $0x170] sm:$0xff]  }
  0x22   : > { %2311 = vmatprep.subr.bf16.mxu0 %v2537_v50  ;;  %v326_v39 = vsel %vm305_vm0, %v324_v18, %v325_v28  ;;  %v595_v15 = vrot.slane %v255_v31, 2  ;;  %v596_v18 = vrot.slane %v256_v34, 2  ;;  %v598_v24 = vrot.slane %v257_v42, 2  ;;  %v2553_v31 = vld [vmem:[%s3193_s1 + $0x178] sm:$0xff]  }
  0x23   : > { %v328_v40 = vrot.slane %v264_v32, 1  ;;  %v910_v48 = vpack.c.bf16 %v326_v39, %v323_v26  ;;  %v2896_v55 = vsel %vm305_vm0, %v904_v43, %v905_v49  ;;  %v2552_v26 = vld [vmem:[%s3193_s1 + $0x38] sm:$0xff]   ;;  %v601_v29 = vrot.slane %v259_v63, 2  ;;  %v2556_v63 = vld [vmem:[%s3193_s1 + $0x180] sm:$0xff]  }
  0x24   : > { %2216 = vmatpush3.bf16.msra.mxu1 %v2536_v47  ;;  %v2544_v47 = vld [vmem:[%s3193_s1 + $0x18] sm:$0xff]   ;;  %v602_v34 = vrot.slane %v260_v0, 2  ;;  %v2941_v41 = vsel %vm585_vm1, %v595_v15, %v596_v18  ;;  %v605_v28 = vrot.slane %v262_v10, 2  ;;  %v1050_v43 = vrot.slane %v265_v35, 2  ;;  %v2560_v35 = vld [vmem:[%s3193_s1 + $0x90] sm:$0xff]   ;;  %v2565_v15 = vld [vmem:[%s3193_s1 + $0x1a0] sm:$0xff]  }
  0x25   : > { %2312 = vmatpush3.bf16.msra.mxu0 %v2537_v50  ;;  %2225 = vmatprep.subr.bf16.mxu1 %v2538_v54  ;;  %v2883_v50 = vsel %vm585_vm1, %v589_v2, %v590_v3  ;;  %v329_v53 = vsel %vm305_vm0, %v327_v21, %v328_v40  ;;  %v2547_v2 = vld [vmem:[%s3193_s1 + $0x160] sm:$0xff]   ;;  %v2548_v3 = vld [vmem:[%s3193_s1 + $0x28] sm:$0xff]   ;;  %v608_v40 = vrot.slane %v264_v32, 2  ;;  %v586_v32 = vrot.slane %v249_v16, 2 }
  0x26   : > { %2321 = vmatprep.subr.bf16.mxu0 %v2539_v56  ;;  %v2964_v10 = vsel %vm585_vm1, %v601_v29, %v602_v34  ;;  %v587_v33 = vrot.slane %v250_v17, 2  ;;  %v3010_v16 = vcombine.low %v2817_v1, %v2839_v11  ;;  %v2567_v34 = vld [vmem:[%s3193_s1 + $0x1a8] sm:$0xff]   ;;  %v2602_v1 = vld [vmem:[%s3193_s1 + $0x238] sm:$0xff]  }
  0x27   : > { %2218 = vmatmul.mubr.bf16.vlgmr.msra.gmra.mrb[0].mxu1 %v2800_v57 }
  0x28   : > { %2226 = vmatpush3.bf16.msra.mxu1 %v2538_v54  ;;  %2314 = vmatmul.mubr.bf16.vlgmr.msra.gmra.mrb[0].mxu0 %v909_v59  ;;  %v2893_v54 = vpack.c.bf16 %v329_v53, %v326_v39  ;;  %v1054_v59 = vpack.c.bf16 %v2886_v51, %v2883_v50  ;;  %v607_v39 = vrot.slane %v263_v22, 2  ;;  %v2982_v22 = vcombine.low %v2763_v36, %v2809_v61  ;;  %v2599_v36 = vld [vmem:[%s3193_s1 + $0x220] sm:$0xff]   ;;  %v2601_v61 = vld [vmem:[%s3193_s1 + $0x230] sm:$0xff]  }
  0x29   : > { %2322 = vmatpush3.bf16.msra.mxu0 %v2539_v56  ;;  %2227 = vmatprep.subr.bf16.mxu1 %v2540_v58  ;;  %v1843_v56 = vcombine.low %v2714_v12, %v2720_v14  ;;  %v2561_v12 = vld [vmem:[%s3193_s1 + $0x190] sm:$0xff]   ;;  %v588_v17 = vsel %vm585_vm1, %v586_v32, %v587_v33  ;;  %v2593_v32 = vld [vmem:[%s3193_s1 + $0x200] sm:$0xff]   ;;  %v2594_v33 = vld [vmem:[%s3193_s1 + $0x208] sm:$0xff]  }
  0x2a   : > { %2323 = vmatprep.subr.bf16.mxu0 %v2541_v60  ;;  %2221 = vmatprep.mubr.bf16.mxu1 %v2865_v38  ;;  %v2586_v14 = vld [vmem:[%s3193_s1 + $0xf0] sm:$0xff]  }
  0x2b   : > { %2317 = vmatprep.mubr.bf16.mxu0 %v910_v48  ;;  %v2559_v48 = vld [vmem:[%s3193_s1 + $0x188] sm:$0xff]  }
  0x2c   : > { %2228 = vmatpush3.bf16.msra.mxu1 %v2540_v58  ;;  %v911_v58 = vpack.c.bf16 %v2896_v55, %v329_v53 }
  0x2d   : > { %2324 = vmatpush3.bf16.msra.mxu0 %v2541_v60  ;;  %2229 = vmatprep.subr.bf16.mxu1 %v2542_v7  ;;  %v2546_v60 = vld [vmem:[%s3193_s1 + $0x20] sm:$0xff]  }
  0x2e   : > { %2325 = vmatprep.subr.bf16.mxu0 %v2543_v27 }
  0x2f   : > { %2222 = vmatmul.mubr.bf16.gmra.mrb[4].mxu1 %v2893_v54 }
  0x30   : > { %2230 = vmatpush3.bf16.msra.mxu1 %v2542_v7  ;;  %2318 = vmatmul.mubr.bf16.gmra.mrb[4].mxu0 %v911_v58  ;;  %v2549_v7 = vld [vmem:[%s3193_s1 + $0x168] sm:$0xff]   ;;  %v2562_v58 = vld [vmem:[%s3193_s1 + $0x98] sm:$0xff]  }
  0x31   : > { %2326 = vmatpush3.bf16.msra.mxu0 %v2543_v27  ;;  %2231 = vmatprep.subr.bf16.mxu1 %v2544_v47  ;;  %v599_v27 = vrot.slane %v258_v45, 2  ;;  %v604_v45 = vrot.slane %v261_v5, 2  ;;  %v1844_v5 = vcombine.low %v2730_v20, %v2742_v25  ;;  %v2588_v20 = vld [vmem:[%s3193_s1 + $0x1f0] sm:$0xff]   ;;  %v2598_v25 = vld [vmem:[%s3193_s1 + $0x218] sm:$0xff]  }
  0x32   : > { %2327 = vmatprep.subr.bf16.mxu0 %v2545_v52  ;;  %2241 = vmatprep.mubr.bf16.mxu1 %v1843_v56 }
  0x33   : > { %2337 = vmatprep.mubr.bf16.mxu0 %v1054_v59  ;;  %v2944_v42 = vsel %vm585_vm1, %v598_v24, %v599_v27  ;;  %v2967_v21 = vsel %vm585_vm1, %v604_v45, %v605_v28  ;;  %v2563_v59 = vld [vmem:[%s3193_s1 + $0x198] sm:$0xff]   ;;  %v2569_v45 = vld [vmem:[%s3193_s1 + $0xb0] sm:$0xff]  }
  0x34   : > { %2232 = vmatpush3.bf16.msra.mxu1 %v2544_v47  ;;  %v1055_v0 = vpack.c.bf16 %v2944_v42, %v2941_v41  ;;  %v1051_v47 = vrot.slane %v266_v30, 2  ;;  %v1056_v19 = vpack.c.bf16 %v2967_v21, %v2964_v10  ;;  %v2994_v30 = vsel %vm585_vm1, %v607_v39, %v608_v40  ;;  %v2570_v28 = vld [vmem:[%s3193_s1 + $0x1b0] sm:$0xff]   ;;  %v2576_v39 = vld [vmem:[%s3193_s1 + $0xc8] sm:$0xff]  }
  0x35   : > { %2328 = vmatpush3.bf16.msra.mxu0 %v2545_v52  ;;  %2233 = vmatprep.subr.bf16.mxu1 %v2546_v60  ;;  %v3000_v52 = vld [vmem:[%s2705_s17 + $0x48] sm:$0xf] }
  0x36   : > { %2329 = vmatprep.subr.bf16.mxu0 %v2547_v2  ;;  %v2997_v49 = vsel %vm585_vm1, %v1050_v43, %v1051_v47  ;;  %v1979_v13 = vcombine.low %v2850_v23, %v3000_v52  ;;  %v267_v56 = vunpack.c.l.bf16 %v3000_v52  ;;  %v2577_v40 = vld [vmem:[%s3193_s1 + $0x1c8] sm:$0xff]   ;;  %v3077_v43 = vpack.c.bf16 %v2964_v10, %v2944_v42  ;;  %v2580_v10 = vld [vmem:[%s3193_s1 + $0xd8] sm:$0xff]  }
  0x37   : > { %v1057_v53 = vpack.c.bf16 %v2997_v49, %v2994_v30  ;;  %v3091_v42 = vpack.c.bf16 %v2994_v30, %v2967_v21  ;;  %v2581_v47 = vld [vmem:[%s3193_s1 + $0x1d8] sm:$0xff]   ;;  %v2582_v21 = vld [vmem:[%s3193_s1 + $0xe0] sm:$0xff]  }
  0x38   : > { %2234 = vmatpush3.bf16.msra.mxu1 %v2546_v60  ;;  %v618_v60 = vpack.c.bf16 %v2883_v50, %v588_v17 }
  0x39   : > { %2330 = vmatpush3.bf16.msra.mxu0 %v2547_v2  ;;  %2235 = vmatprep.subr.bf16.mxu1 %v2548_v3  ;;  %v248_v2 = vld [vmem:[%s2705_s17 + $0x4c] sm:$0x1] }
  0x3a   : > { %2331 = vmatprep.subr.bf16.mxu0 %v2549_v7 }
  0x3c   : > { %2236 = vmatpush3.bf16.msra.mxu1 %v2548_v3  ;;  %v1337_v3 = vrot.slane %v267_v56, 1 }
  0x3d   : > { %2332 = vmatpush3.bf16.msra.mxu0 %v2549_v7  ;;  %2237 = vmatprep.subr.bf16.mxu1 %v2550_v8  ;;  %v1480_v7 = vrot.slane %v267_v56, 2 }
  0x3e   : > { %2333 = vmatprep.subr.bf16.mxu0 %v2551_v9 }
  0x40   : > { %2238 = vmatpush3.bf16.msra.mxu1 %v2550_v8  ;;  %v268_v8 = vunpack.c.l.bf16 %v248_v2 }
  0x41   : > { %2334 = vmatpush3.bf16.msra.mxu0 %v2551_v9  ;;  %2239 = vmatprep.subr.bf16.mxu1 %v2552_v26  ;;  %v2564_v9 = vld [vmem:[%s3193_s1 + $0xa0] sm:$0xff]  }
  0x42   : > { %2335 = vmatprep.subr.bf16.mxu0 %v2553_v31  ;;  %v1338_v50 = vrot.slane %v268_v8, 1  ;;  %v1481_v18 = vrot.slane %v268_v8, 2 }
  0x44   : > { %2240 = vmatpush3.bf16.msra.mxu1 %v2552_v26  ;;  %v3032_v24 = vsel %vm305_vm0, %v1337_v3, %v1338_v50  ;;  %v3035_v27 = vsel %vm585_vm1, %v1480_v7, %v1481_v18  ;;  %v2566_v26 = vld [vmem:[%s3193_s1 + $0xa8] sm:$0xff]  }
  0x45   : > { %2336 = vmatpush3.bf16.msra.mxu0 %v2553_v31  ;;  %2249 = vmatprep.subr.bf16.mxu1 %v2555_v62  ;;  %v1341_v31 = vpack.c.bf16 %v3032_v24, %v2896_v55  ;;  %v1484_v29 = vpack.c.bf16 %v3035_v27, %v2997_v49 }
  0x46   : > { %2345 = vmatprep.subr.bf16.mxu0 %v2556_v63 }
  0x47   : > { %2242 = vmatmul.mubr.bf16.vlgmr.msra.gmra.mrb[0].mxu1 %v1844_v5 }
  0x48   : > { %2250 = vmatpush3.bf16.msra.mxu1 %v2555_v62  ;;  %2338 = vmatmul.mubr.bf16.vlgmr.msra.gmra.mrb[0].mxu0 %v1055_v0  ;;  %v2572_v62 = vld [vmem:[%s3193_s1 + $0xb8] sm:$0xff]   ;;  %v2574_v0 = vld [vmem:[%s3193_s1 + $0xc0] sm:$0xff]  }
  0x49   : > { %2346 = vmatpush3.bf16.msra.mxu0 %v2556_v63  ;;  %2251 = vmatprep.subr.bf16.mxu1 %v2558_v4  ;;  %v2573_v63 = vld [vmem:[%s3193_s1 + $0x1b8] sm:$0xff]  }
  0x4a   : > { %2347 = vmatprep.subr.bf16.mxu0 %v2559_v48  ;;  %2245 = vmatprep.mubr.bf16.mxu1 %v2982_v22 }
  0x4b   : > { %2341 = vmatprep.mubr.bf16.mxu0 %v1056_v19  ;;  %v2585_v19 = vld [vmem:[%s3193_s1 + $0x1e8] sm:$0xff]  }
  0x4c   : > { %2252 = vmatpush3.bf16.msra.mxu1 %v2558_v4  ;;  %v3067_v4 = vpack.c.bf16 %v2941_v41, %v2886_v51  ;;  %v2578_v51 = vld [vmem:[%s3193_s1 + $0xd0] sm:$0xff]  }
  0x4d   : > { %2348 = vmatpush3.bf16.msra.mxu0 %v2559_v48  ;;  %2253 = vmatprep.subr.bf16.mxu1 %v2560_v35  ;;  %v2579_v41 = vld [vmem:[%s3193_s1 + $0x1d0] sm:$0xff]   ;;  %v2583_v48 = vld [vmem:[%s3193_s1 + $0x1e0] sm:$0xff]  }
  0x4e   : > { %2349 = vmatprep.subr.bf16.mxu0 %v2561_v12 }
  0x4f   : > { %2246 = vmatmul.mubr.bf16.gmra.mrb[4].mxu1 %v3010_v16 }
  0x50   : > { %2254 = vmatpush3.bf16.msra.mxu1 %v2560_v35  ;;  %2342 = vmatmul.mubr.bf16.gmra.mrb[4].mxu0 %v1057_v53  ;;  %v2597_v35 = vld [vmem:[%s3193_s1 + $0x210] sm:$0xff]  }
  0x51   : > { %2350 = vmatpush3.bf16.msra.mxu0 %v2561_v12  ;;  %2255 = vmatprep.subr.bf16.mxu1 %v2562_v58 }
  0x52   : > { %2351 = vmatprep.subr.bf16.mxu0 %v2563_v59  ;;  %2265 = vmatprep.mubr.bf16.mxu1 %v618_v60 }
  0x53   : > { %2361 = vmatprep.mubr.bf16.mxu0 %v1844_v5  ;;  %v2575_v5 = vld [vmem:[%s3193_s1 + $0x1c0] sm:$0xff]  }
  0x54   : > { %2256 = vmatpush3.bf16.msra.mxu1 %v2562_v58 }
  0x55   : > { %2352 = vmatpush3.bf16.msra.mxu0 %v2563_v59  ;;  %2257 = vmatprep.subr.bf16.mxu1 %v2564_v9 }
  0x56   : > { %2353 = vmatprep.subr.bf16.mxu0 %v2565_v15 }
  0x58   : > { %2258 = vmatpush3.bf16.msra.mxu1 %v2564_v9 }
  0x59   : > { %2354 = vmatpush3.bf16.msra.mxu0 %v2565_v15  ;;  %2259 = vmatprep.subr.bf16.mxu1 %v2566_v26 }
  0x5a   : > { %2355 = vmatprep.subr.bf16.mxu0 %v2567_v34 }
  0x5c   : > { %2260 = vmatpush3.bf16.msra.mxu1 %v2566_v26 }
  0x5d   : > { %2356 = vmatpush3.bf16.msra.mxu0 %v2567_v34  ;;  %2261 = vmatprep.subr.bf16.mxu1 %v2569_v45 }
  0x5e   : > { %2357 = vmatprep.subr.bf16.mxu0 %v2570_v28 }
  0x60   : > { %2262 = vmatpush3.bf16.msra.mxu1 %v2569_v45 }
  0x61   : > { %2358 = vmatpush3.bf16.msra.mxu0 %v2570_v28  ;;  %2263 = vmatprep.subr.bf16.mxu1 %v2572_v62 }
  0x62   : > { %2359 = vmatprep.subr.bf16.mxu0 %v2573_v63 }
  0x64   : > { %2264 = vmatpush3.bf16.msra.mxu1 %v2572_v62 }
  0x65   : > { %2360 = vmatpush3.bf16.msra.mxu0 %v2573_v63  ;;  %2273 = vmatprep.subr.bf16.mxu1 %v2574_v0 }
  0x66   : > { %2369 = vmatprep.subr.bf16.mxu0 %v2575_v5 }
  0x67   : > { %2266 = vmatmul.mubr.bf16.vlgmr.msra.gmra.mrb[0].mxu1 %v3067_v4 }
  0x68   : > { %2274 = vmatpush3.bf16.msra.mxu1 %v2574_v0  ;;  %2362 = vmatmul.mubr.bf16.vlgmr.msra.gmra.mrb[0].mxu0 %v2982_v22  ;;  %v2584_v22 = vld [vmem:[%s3193_s1 + $0xe8] sm:$0xff]  }
  0x69   : > { %2370 = vmatpush3.bf16.msra.mxu0 %v2575_v5  ;;  %2275 = vmatprep.subr.bf16.mxu1 %v2576_v39 }
  0x6a   : > { %2371 = vmatprep.subr.bf16.mxu0 %v2577_v40  ;;  %2269 = vmatprep.mubr.bf16.mxu1 %v3077_v43 }
  0x6b   : > { %2365 = vmatprep.mubr.bf16.mxu0 %v3010_v16 }
  0x6c   : > { %2276 = vmatpush3.bf16.msra.mxu1 %v2576_v39 }
  0x6d   : > { %2372 = vmatpush3.bf16.msra.mxu0 %v2577_v40  ;;  %2277 = vmatprep.subr.bf16.mxu1 %v2578_v51 }
  0x6e   : > { %2373 = vmatprep.subr.bf16.mxu0 %v2579_v41 }
  0x6f   : > { %2270 = vmatmul.mubr.bf16.gmra.mrb[4].mxu1 %v3091_v42 }
  0x70   : > { %2278 = vmatpush3.bf16.msra.mxu1 %v2578_v51  ;;  %2366 = vmatmul.mubr.bf16.gmra.mrb[4].mxu0 %v1979_v13 }
  0x71   : > { %2374 = vmatpush3.bf16.msra.mxu0 %v2579_v41  ;;  %2279 = vmatprep.subr.bf16.mxu1 %v2580_v10 }
  0x72   : > { %2375 = vmatprep.subr.bf16.mxu0 %v2581_v47  ;;  %2289 = vmatprep.mubr.bf16.mxu1 %v1903_v37  ;;  %v2589_v37 = vld [vmem:[%s3193_s1 + $0xf8] sm:$0xff]  }
  0x73   : > { %2385 = vmatprep.mubr.bf16.mxu0 %v2800_v57  ;;  %v2590_v57 = vld [vmem:[%s3193_s1 + $0x1f8] sm:$0xff]  }
  0x74   : > { %2280 = vmatpush3.bf16.msra.mxu1 %v2580_v10 }
  0x75   : > { %2376 = vmatpush3.bf16.msra.mxu0 %v2581_v47  ;;  %2281 = vmatprep.subr.bf16.mxu1 %v2582_v21 }
  0x76   : > { %2377 = vmatprep.subr.bf16.mxu0 %v2583_v48 }
  0x78   : > { %2282 = vmatpush3.bf16.msra.mxu1 %v2582_v21 }
  0x79   : > { %2378 = vmatpush3.bf16.msra.mxu0 %v2583_v48  ;;  %2283 = vmatprep.subr.bf16.mxu1 %v2584_v22 }
  0x7a   : > { %2379 = vmatprep.subr.bf16.mxu0 %v2585_v19 }
  0x7c   : > { %2284 = vmatpush3.bf16.msra.mxu1 %v2584_v22 }
  0x7d   : > { %2380 = vmatpush3.bf16.msra.mxu0 %v2585_v19  ;;  %2285 = vmatprep.subr.bf16.mxu1 %v2586_v14 }
  0x7e   : > { %2381 = vmatprep.subr.bf16.mxu0 %v2588_v20 }
  0x80   : > { %2286 = vmatpush3.bf16.msra.mxu1 %v2586_v14 }
  0x81   : > { %2382 = vmatpush3.bf16.msra.mxu0 %v2588_v20  ;;  %2287 = vmatprep.subr.bf16.mxu1 %v2589_v37 }
  0x82   : > { %2383 = vmatprep.subr.bf16.mxu0 %v2590_v57 }
  0x84   : > { %2288 = vmatpush3.bf16.msra.mxu1 %v2589_v37 }
  0x85   : > { %2384 = vmatpush3.bf16.msra.mxu0 %v2590_v57  ;;  %2417 = vmatprep.subr.bf16.mxu1 %v2593_v32 }
  0x86   : > { %2393 = vmatprep.subr.bf16.mxu0 %v2593_v32 }
  0x87   : > { %2290 = vmatmul.mubr.bf16.vlgmr.msra.gmra.mrb[0].mxu1 %v1904_v46  ;;  %v2600_v46 = vld [vmem:[%s3193_s1 + $0x228] sm:$0xff]  }
  0x88   : > { %2386 = vmatmul.mubr.bf16.vlgmr.msra.gmra.mrb[0].mxu0 %v2865_v38  ;;  %2425 = vmatpush3.bf16.msra.mxu1 %v2593_v32 }
  0x89   : > { %2394 = vmatpush3.bf16.msra.mxu0 %v2593_v32  ;;  %2418 = vmatprep.subr.bf16.mxu1 %v2594_v33 }
  0x8a   : > { %2395 = vmatprep.subr.bf16.mxu0 %v2594_v33  ;;  %2293 = vmatprep.mubr.bf16.mxu1 %v1905_v6 }
  0x8b   : > { %2389 = vmatprep.mubr.bf16.mxu0 %v2893_v54 }
  0x8c   : > { %2426 = vmatpush3.bf16.msra.mxu1 %v2594_v33 }
  0x8d   : > { %2396 = vmatpush3.bf16.msra.mxu0 %v2594_v33  ;;  %2419 = vmatprep.subr.bf16.mxu1 %v2597_v35 }
  0x8e   : > { %2397 = vmatprep.subr.bf16.mxu0 %v2597_v35 }
  0x8f   : > { %2294 = vmatmul.mubr.bf16.gmra.mrb[4].mxu1 %v1906_v44 }
  0x90   : > { %2390 = vmatmul.mubr.bf16.gmra.mrb[4].mxu0 %v1341_v31  ;;  %2427 = vmatpush3.bf16.msra.mxu1 %v2597_v35 }
  0x91   : > { %2398 = vmatpush3.bf16.msra.mxu0 %v2597_v35  ;;  %2420 = vmatprep.subr.bf16.mxu1 %v2598_v25 }
  0x92   : > { %2399 = vmatprep.subr.bf16.mxu0 %v2598_v25  ;;  %2409 = vmatprep.mubr.bf16.mxu0 %v3067_v4 }
  0x93   : > { %2413 = vmatprep.mubr.bf16.mxu1 %v3091_v42 }
  0x94   : > { %2428 = vmatpush3.bf16.msra.mxu1 %v2598_v25 }
  0x95   : > { %2400 = vmatpush3.bf16.msra.mxu0 %v2598_v25  ;;  %2421 = vmatprep.subr.bf16.mxu1 %v2599_v36 }
  0x96   : > { %2401 = vmatprep.subr.bf16.mxu0 %v2599_v36 }
  0x98   : > { %2429 = vmatpush3.bf16.msra.mxu1 %v2599_v36 }
  0x99   : > { %2402 = vmatpush3.bf16.msra.mxu0 %v2599_v36  ;;  %2422 = vmatprep.subr.bf16.mxu1 %v2600_v46 }
  0x9a   : > { %2403 = vmatprep.subr.bf16.mxu0 %v2600_v46 }
  0x9c   : > { %2430 = vmatpush3.bf16.msra.mxu1 %v2600_v46 }
  0x9d   : > { %2404 = vmatpush3.bf16.msra.mxu0 %v2600_v46  ;;  %2423 = vmatprep.subr.bf16.mxu1 %v2601_v61 }
  0x9e   : > { %2405 = vmatprep.subr.bf16.mxu0 %v2601_v61 }
  0xa0   : > { %2431 = vmatpush3.bf16.msra.mxu1 %v2601_v61 }
  0xa1   : > { %2406 = vmatpush3.bf16.msra.mxu0 %v2601_v61  ;;  %2424 = vmatprep.subr.bf16.mxu1 %v2602_v1 }
  0xa2   : > { %2407 = vmatprep.subr.bf16.mxu0 %v2602_v1 }
  0xa4   : > { %2432 = vmatpush3.bf16.msra.mxu1 %v2602_v1 }
  0xa5   : > { %2408 = vmatpush3.bf16.msra.mxu0 %v2602_v1 }
  0xa7   : > { %2414 = vmatmul.mubr.bf16.vlgmr.msra.gmra.mrb[8].mxu1 %v1484_v29 }
  0xa8   : > { %2410 = vmatmul.mubr.bf16.vlgmr.msra.gmra.mrb[0].mxu0 %v3077_v43 }
 0x15a   : > { %v2291_v6 = vpop.f32.mrb[0].mxu1 }
 0x15b   : > { %v863_v11 = vpop.f32.mrb[1].mxu1 }
 0x15c   : > { %v2292_v23 = vpop.f32.mrb[2].mxu1 }
 0x15d   : > { %v866_v38 = vpop.f32.mrb[3].mxu1 }
 0x162   : > { %v2295_v44 = vpop.f32.mrb[4].mxu1 }
 0x163   : > { %v2391_v54 = vpop.f32.mrb[4].mxu0  ;;  %v879_v55 = vpop.f32.mrb[5].mxu1 }
 0x164   : > { %v2437_v30 = vadd.f32 %v2391_v54, %v2295_v44  ;;  %v1457_v52 = vpop.f32.mrb[5].mxu0  ;;  %v2296_v12 = vpop.f32.mrb[6].mxu1 }
 0x165   : > { %v2439_v13 = vadd.f32 %v1457_v52, %v879_v55  ;;  %v2392_v16 = vpop.f32.mrb[6].mxu0  ;;  %v882_v17 = vpop.f32.mrb[7].mxu1 }
 0x166   : > { %v2441_v53 = vadd.f32 %v2392_v16, %v2296_v12  ;;  %v1460_v56 = vpop.f32.mrb[7].mxu0 }
 0x167   : > { %v2443_v49 = vadd.f32 %v1460_v56, %v882_v17 }
 0x17a   : > { %v2415_v58 = vpop.f32.mrb[8].mxu1 }
 0x17b   : > { %v2411_v59 = vpop.f32.mrb[0].mxu0  ;;  %v2438_v60 = vadd.f32 %v2437_v30, %v2415_v58  ;;  %v1600_v2 = vpop.f32.mrb[9].mxu1 }
 0x17c   : > { %v2433_v3 = vadd.f32 %v2411_v59, %v2291_v6  ;;  %v1584_v7 = vpop.f32.mrb[1].mxu0  ;;  %v2440_v8 = vadd.f32 %v2439_v13, %v1600_v2  ;;  %v2416_v9 = vpop.f32.mrb[10].mxu1 }
 0x17d   : > { %v2434_v15 = vadd.f32 %v1584_v7, %v863_v11  ;;  %v2412_v50 = vpop.f32.mrb[2].mxu0  ;;  %v2442_v18 = vadd.f32 %v2441_v53, %v2416_v9  ;;  %v1603_v24 = vpop.f32.mrb[11].mxu1  ;;  %v1682_v19 = vmul.f32 %v2438_v60, %v2438_v60 }
 0x17e   : > { %v2435_v27 = vadd.f32 %v2412_v50, %v2292_v23  ;;  %v1587_v26 = vpop.f32.mrb[3].mxu0  ;;  %v2444_v31 = vadd.f32 %v2443_v49, %v1603_v24  ;;  %v1678_v4 = vmul.f32 %v2433_v3, %v2433_v3  ;;  %v1680_v42 = vmul.f32 %v2440_v8, %v2440_v8 }
 0x17f   : > { %v2088_v29 = vpack.c.bf16 %v2442_v18, %v2438_v60  ;;  %v2436_v34 = vadd.f32 %v1587_v26, %v866_v38  ;;  %v1676_v62 = vmul.f32 %v2434_v15, %v2434_v15  ;;  %v1683_v37 = vmul.f32 %v2442_v18, %v2442_v18 }
 0x180   : > { %v2078_v45 = vpack.c.bf16 %v2435_v27, %v2433_v3  ;;  %v2083_v28 = vpack.c.bf16 %v2444_v31, %v2440_v8  ;;  %v1679_v43 = vmul.f32 %v2435_v27, %v2435_v27  ;;  %v1681_v48 = vmul.f32 %v2444_v31, %v2444_v31 }
 0x181   : > { %2092 = vst [vmem:[%s219_s16 + $0x18] sm:$0xff] %v2088_v29   ;;  %v2073_v63 = vpack.c.bf16 %v2436_v34, %v2434_v15  ;;  %v1663_v0 = vadd.f32 %v2436_v34, %v2434_v15  ;;  %v1677_v5 = vmul.f32 %v2436_v34, %v2436_v34 }
 0x182   : > { %2090 = vst [vmem:[%s219_s16 + $0x8] sm:$0xff] %v2078_v45   ;;  %2091 = vst [vmem:[%s219_s16 + $0x10] sm:$0xff] %v2083_v28  }
 0x183   : > { %2074 = vst [vmem:[%s219_s16] sm:$0xff] %v2073_v63   ;;  %v1664_v39 = vadd.f32 %v2433_v3, %v1663_v0  ;;  %v1684_v40 = vadd.f32 %v1677_v5, %v1676_v62 }
 0x185   : > { %v1685_v51 = vadd.f32 %v1684_v40, %v1678_v4  ;;  %v1665_v41 = vadd.f32 %v2435_v27, %v1664_v39 }
 0x187   : > { %v1666_v10 = vadd.f32 %v2440_v8, %v1665_v41  ;;  %v1686_v47 = vadd.f32 %v1685_v51, %v1679_v43 }
 0x189   : > { %v1667_v21 = vadd.f32 %v2444_v31, %v1666_v10  ;;  %v1687_v22 = vadd.f32 %v1686_v47, %v1680_v42 }
 0x18b   : > { %v1668_v14 = vadd.f32 %v2438_v60, %v1667_v21  ;;  %v1688_v20 = vadd.f32 %v1687_v22, %v1681_v48 }
 0x18d   : > { %v1669_v57 = vadd.f32 %v2442_v18, %v1668_v14  ;;  %v1689_v32 = vadd.f32 %v1688_v20, %v1682_v19 }
 0x18f   : > { %v1670_v33 = vrot.slane %v1669_v57, 4  ;;  %v1690_v35 = vadd.f32 %v1689_v32, %v1683_v37 }
 0x191   : > { %v1671_v25 = vadd.f32 %v1670_v33, %v1669_v57  ;;  %v1691_v36 = vrot.slane %v1690_v35, 4 }
 0x193   : > { %v1672_v46 = vrot.slane %v1671_v25, 2  ;;  %v1692_v61 = vadd.f32 %v1691_v36, %v1690_v35 }
 0x195   : > { %v1673_v1 = vadd.f32 %v1672_v46, %v1671_v25  ;;  %v1693_v6 = vrot.slane %v1692_v61, 2 }
 0x197   : > { %v1674_v11 = vrot.slane %v1673_v1, 1  ;;  %v1694_v23 = vadd.f32 %v1693_v6, %v1692_v61 }
 0x199   : > { %v1695_v38 = vrot.slane %v1694_v23, 1  ;;  %v1675_v44 = vadd.f32 %v1674_v11, %v1673_v1 }
 0x19b   : > { %v1696_v54 = vadd.f32 %v1695_v38, %v1694_v23 }
 0x19d   : > { %v1698_v55 = vsel %vm1697_vm2, %v1675_v44, %v1696_v54 }
 0x19e   : > { %v1700_v30 = vsel %vm1699_vm3, %v1698_v55, 0.0 }
 0x19f   : > { %1701 = vst [vmem:[%s227_s19] sm:$0xff] %v1700_v30 }
 0x1a0 PF: > { %s14_s14 = sadd.s32 1, %s2625_s14   ;;  %s3196_s12 = smov %s2621_s13 }
 0x1a1   : > { %p11_p6 = scmp.ge.s32.totalorder %s14_s14, 4   ;;  %s3197_s13 = smov %s3199_s15 }
 0x1a3   :  { %13 = sbr.rel (!%p11_p6) target bundleno = 2 (0x2), region = 81 }

// kernel: resblock_forward.9
= control target key start
LH: loop header
LB: loop body
LE: loop exit
PB: predicated region body
PF: predicated region fallthrough
CT: control target
= control target key end

     0   :  { %s528_s0 = inlined_call_operand.vmem [shape: bf16[128,128], index: 0, kind: input, shape index: {}]   ;;  %s529_s1 = inlined_call_operand.vmem [shape: f32[1,128], index: 1, kind: input, shape index: {}]   ;;  %s530_s2 = inlined_call_operand.vmem [shape: f32[1,128], index: 2, kind: input, shape index: {}]   ;;  %s531_s3 = inlined_call_operand.vmem [shape: bf16[128,128], index: 3, kind: input, shape index: {}]   ;;  %s532_s4 = inlined_call_operand.vmem [shape: f32[1,128], index: 4, kind: input, shape index: {}]   ;;  %s533_s5 = inlined_call_operand.vmem [shape: f32[1,128], index: 5, kind: input, shape index: {}]   ;;  %s534_s6 = inlined_call_operand.vmem [shape: f32[128,128], index: 6, kind: output, shape index: {}]  }
   0x1   :  { %v236_v0 = vld [vmem:[%s528_s0] sm:$0xff]   ;;  %v299_v9 = vld [vmem:[%s528_s0 + $0x8] sm:$0xff]   ;;  %v300_v20 = vld [vmem:[%s528_s0 + $0x10] sm:$0xff]  }
   0x2   :  { %v354_v1 = vld [vmem:[%s529_s1] ss:$0 sm:$0xff]  ;;  %v237_v2 = vunpack.c.l.bf16 %v236_v0  ;;  %v238_v5 = vunpack.c.h.bf16 %v236_v0  ;;  %v306_v10 = vld [vmem:[%s531_s3 + $0x8] sm:$0xff]   ;;  %v241_v14 = vunpack.c.l.bf16 %v299_v9  ;;  %v242_v18 = vunpack.c.h.bf16 %v299_v9  ;;  %v307_v21 = vld [vmem:[%s531_s3 + $0x10] sm:$0xff]  }
   0x3   :  { %v268_v3 = vld [vmem:[%s531_s3] sm:$0xff]   ;;  %v273_v15 = vunpack.c.l.bf16 %v306_v10  ;;  %v274_v19 = vunpack.c.h.bf16 %v306_v10  ;;  %v245_v32 = vunpack.c.l.bf16 %v300_v20  ;;  %v277_v33 = vunpack.c.l.bf16 %v307_v21  ;;  %v301_v42 = vld [vmem:[%s528_s0 + $0x18] sm:$0xff]  }
   0x4   :  { %v362_v4 = vld [vmem:[%s532_s4] ss:$0 sm:$0xff]  ;;  %v269_v7 = vunpack.c.l.bf16 %v268_v3  ;;  %v270_v8 = vunpack.c.h.bf16 %v268_v3  ;;  %v62_v11 = vmul.f32 %v237_v2, %v354_v1  ;;  %v63_v13 = vmul.f32 %v238_v5, %v354_v1  ;;  %v308_v43 = vld [vmem:[%s531_s3 + $0x18] sm:$0xff]  }
   0x5   :  { %v367_v6 = vld [vmem:[%s530_s2] ss:$0 sm:$0xff]  ;;  %v64_v24 = vmul.f32 %v241_v14, %v354_v1  ;;  %v142_v25 = vmul.f32 %v273_v15, %v362_v4  ;;  %v65_v28 = vmul.f32 %v242_v18, %v354_v1  ;;  %v143_v29 = vmul.f32 %v274_v19, %v362_v4  ;;  %v303_v14 = vld [vmem:[%s528_s0 + $0x28] sm:$0xff]  }
   0x6   :  { %v379_v12 = vld [vmem:[%s533_s5] ss:$0 sm:$0xff]  ;;  %v140_v16 = vmul.f32 %v269_v7, %v362_v4  ;;  %v141_v17 = vmul.f32 %v270_v8, %v362_v4  ;;  %v85_v22 = vadd.f32 %v367_v6, %v62_v11  ;;  %v86_v23 = vadd.f32 %v367_v6, %v63_v13  ;;  %v310_v19 = vld [vmem:[%s531_s3 + $0x28] sm:$0xff]  }
   0x7   :  { %v87_v30 = vadd.f32 %v367_v6, %v64_v24  ;;  %v165_v31 = vadd.f32 %v379_v12, %v142_v25  ;;  %v88_v36 = vadd.f32 %v367_v6, %v65_v28  ;;  %v166_v37 = vadd.f32 %v379_v12, %v143_v29  ;;  %v302_v52 = vld [vmem:[%s528_s0 + $0x20] sm:$0xff]  }
   0x8   :  { %v163_v26 = vadd.f32 %v379_v12, %v140_v16  ;;  %v164_v27 = vadd.f32 %v379_v12, %v141_v17  ;;  %v66_v39 = vmul.f32 %v245_v32, %v354_v1  ;;  %v144_v40 = vmul.f32 %v277_v33, %v362_v4  ;;  %v309_v57 = vld [vmem:[%s531_s3 + $0x20] sm:$0xff]   ;;  %v304_v32 = vld [vmem:[%s528_s0 + $0x30] sm:$0xff]  }
   0x9   :  { %v181_v38 = vadd.f32 %v165_v31, %v87_v30  ;;  %v246_v41 = vunpack.c.h.bf16 %v300_v20  ;;  %v182_v46 = vadd.f32 %v166_v37, %v88_v36  ;;  %v278_v47 = vunpack.c.h.bf16 %v307_v21  ;;  %v311_v33 = vld [vmem:[%s531_s3 + $0x30] sm:$0xff]  }
   0xa   :  { %v179_v34 = vadd.f32 %v163_v26, %v85_v22  ;;  %v180_v35 = vadd.f32 %v164_v27, %v86_v23  ;;  %v89_v49 = vadd.f32 %v367_v6, %v66_v39  ;;  %v167_v50 = vadd.f32 %v379_v12, %v144_v40 }
   0xb   :  { %v197_v48 = vmax.f32 %v181_v38, 0.0  ;;  %v67_v51 = vmul.f32 %v246_v41, %v354_v1  ;;  %v198_v53 = vmax.f32 %v182_v46, 0.0  ;;  %v145_v54 = vmul.f32 %v278_v47, %v362_v4  ;;  %v305_v46 = vld [vmem:[%s528_s0 + $0x38] sm:$0xff]  }
   0xc   :  { %v195_v44 = vmax.f32 %v179_v34, 0.0  ;;  %v196_v45 = vmax.f32 %v180_v35, 0.0  ;;  %v249_v55 = vunpack.c.l.bf16 %v301_v42  ;;  %v281_v56 = vunpack.c.l.bf16 %v308_v43 }
   0xd   :  { %213 = vst [vmem:[%s534_s6 + $0x10] sm:$0xff] %v197_v48  ;;  %v183_v58 = vadd.f32 %v167_v50, %v89_v49  ;;  %v90_v59 = vadd.f32 %v367_v6, %v67_v51  ;;  %v250_v60 = vunpack.c.h.bf16 %v301_v42  ;;  %v282_v61 = vunpack.c.h.bf16 %v308_v43  ;;  %214 = vst [vmem:[%s534_s6 + $0x18] sm:$0xff] %v198_v53 }
   0xe   :  { %211 = vst [vmem:[%s534_s6] sm:$0xff] %v195_v44  ;;  %212 = vst [vmem:[%s534_s6 + $0x8] sm:$0xff] %v196_v45  ;;  %v168_v62 = vadd.f32 %v379_v12, %v145_v54  ;;  %v68_v63 = vmul.f32 %v249_v55, %v354_v1  ;;  %v146_v0 = vmul.f32 %v281_v56, %v362_v4  ;;  %v253_v2 = vunpack.c.l.bf16 %v302_v52  ;;  %v312_v55 = vld [vmem:[%s531_s3 + $0x38] sm:$0xff]  }
   0xf   :  { %v199_v3 = vmax.f32 %v183_v58, 0.0  ;;  %v69_v5 = vmul.f32 %v250_v60, %v354_v1  ;;  %v147_v7 = vmul.f32 %v282_v61, %v362_v4  ;;  %v285_v8 = vunpack.c.l.bf16 %v309_v57 }
  0x10   :  { %v184_v9 = vadd.f32 %v168_v62, %v90_v59  ;;  %v91_v10 = vadd.f32 %v367_v6, %v68_v63  ;;  %v169_v11 = vadd.f32 %v379_v12, %v146_v0  ;;  %v70_v13 = vmul.f32 %v253_v2, %v354_v1 }
  0x11   :  { %215 = vst [vmem:[%s534_s6 + $0x20] sm:$0xff] %v199_v3  ;;  %v92_v15 = vadd.f32 %v367_v6, %v69_v5  ;;  %v170_v16 = vadd.f32 %v379_v12, %v147_v7  ;;  %v148_v17 = vmul.f32 %v285_v8, %v362_v4  ;;  %v254_v18 = vunpack.c.h.bf16 %v302_v52 }
  0x12   :  { %v200_v20 = vmax.f32 %v184_v9, 0.0  ;;  %v185_v21 = vadd.f32 %v169_v11, %v91_v10  ;;  %v93_v22 = vadd.f32 %v367_v6, %v70_v13  ;;  %v286_v23 = vunpack.c.h.bf16 %v309_v57 }
  0x13   :  { %v186_v24 = vadd.f32 %v170_v16, %v92_v15  ;;  %v171_v25 = vadd.f32 %v379_v12, %v148_v17  ;;  %v71_v26 = vmul.f32 %v254_v18, %v354_v1  ;;  %v257_v27 = vunpack.c.l.bf16 %v303_v14 }
  0x14   :  { %216 = vst [vmem:[%s534_s6 + $0x28] sm:$0xff] %v200_v20  ;;  %v201_v28 = vmax.f32 %v185_v21, 0.0  ;;  %v149_v29 = vmul.f32 %v286_v23, %v362_v4  ;;  %v289_v30 = vunpack.c.l.bf16 %v310_v19  ;;  %v258_v31 = vunpack.c.h.bf16 %v303_v14 }
  0x15   :  { %v202_v34 = vmax.f32 %v186_v24, 0.0  ;;  %v187_v35 = vadd.f32 %v171_v25, %v93_v22  ;;  %v94_v36 = vadd.f32 %v367_v6, %v71_v26  ;;  %v72_v37 = vmul.f32 %v257_v27, %v354_v1 }
  0x16   :  { %217 = vst [vmem:[%s534_s6 + $0x30] sm:$0xff] %v201_v28  ;;  %v172_v38 = vadd.f32 %v379_v12, %v149_v29  ;;  %v150_v39 = vmul.f32 %v289_v30, %v362_v4  ;;  %v73_v40 = vmul.f32 %v258_v31, %v354_v1  ;;  %v290_v41 = vunpack.c.h.bf16 %v310_v19 }
  0x17   :  { %218 = vst [vmem:[%s534_s6 + $0x38] sm:$0xff] %v202_v34  ;;  %v203_v42 = vmax.f32 %v187_v35, 0.0  ;;  %v95_v43 = vadd.f32 %v367_v6, %v72_v37  ;;  %v261_v44 = vunpack.c.l.bf16 %v304_v32  ;;  %v293_v45 = vunpack.c.l.bf16 %v311_v33 }
  0x18   :  { %v188_v47 = vadd.f32 %v172_v38, %v94_v36  ;;  %v173_v48 = vadd.f32 %v379_v12, %v150_v39  ;;  %v96_v49 = vadd.f32 %v367_v6, %v73_v40  ;;  %v151_v50 = vmul.f32 %v290_v41, %v362_v4 }
  0x19   :  { %219 = vst [vmem:[%s534_s6 + $0x40] sm:$0xff] %v203_v42  ;;  %v74_v51 = vmul.f32 %v261_v44, %v354_v1  ;;  %v152_v52 = vmul.f32 %v293_v45, %v362_v4  ;;  %v262_v53 = vunpack.c.h.bf16 %v304_v32  ;;  %v294_v54 = vunpack.c.h.bf16 %v311_v33 }
  0x1a   :  { %v204_v56 = vmax.f32 %v188_v47, 0.0  ;;  %v189_v57 = vadd.f32 %v173_v48, %v95_v43  ;;  %v174_v58 = vadd.f32 %v379_v12, %v151_v50  ;;  %v265_v59 = vunpack.c.l.bf16 %v305_v46 }
  0x1b   :  { %v97_v60 = vadd.f32 %v367_v6, %v74_v51  ;;  %v175_v61 = vadd.f32 %v379_v12, %v152_v52  ;;  %v75_v62 = vmul.f32 %v262_v53, %v354_v1  ;;  %v153_v63 = vmul.f32 %v294_v54, %v362_v4 }
  0x1c   :  { %220 = vst [vmem:[%s534_s6 + $0x48] sm:$0xff] %v204_v56  ;;  %v205_v0 = vmax.f32 %v189_v57, 0.0  ;;  %v190_v2 = vadd.f32 %v174_v58, %v96_v49  ;;  %v76_v3 = vmul.f32 %v265_v59, %v354_v1  ;;  %v297_v5 = vunpack.c.l.bf16 %v312_v55 }
  0x1d   :  { %v191_v7 = vadd.f32 %v175_v61, %v97_v60  ;;  %v98_v8 = vadd.f32 %v367_v6, %v75_v62  ;;  %v176_v9 = vadd.f32 %v379_v12, %v153_v63  ;;  %v266_v10 = vunpack.c.h.bf16 %v305_v46 }
  0x1e   :  { %221 = vst [vmem:[%s534_s6 + $0x50] sm:$0xff] %v205_v0  ;;  %v206_v11 = vmax.f32 %v190_v2, 0.0  ;;  %v99_v13 = vadd.f32 %v367_v6, %v76_v3  ;;  %v154_v14 = vmul.f32 %v297_v5, %v362_v4  ;;  %v298_v15 = vunpack.c.h.bf16 %v312_v55 }
  0x1f   :  { %v207_v16 = vmax.f32 %v191_v7, 0.0  ;;  %v192_v17 = vadd.f32 %v176_v9, %v98_v8  ;;  %v77_v18 = vmul.f32 %v266_v10, %v354_v1 }
  0x20   :  { %222 = vst [vmem:[%s534_s6 + $0x58] sm:$0xff] %v206_v11  ;;  %v177_v19 = vadd.f32 %v379_v12, %v154_v14  ;;  %v155_v20 = vmul.f32 %v298_v15, %v362_v4 }
  0x21   :  { %223 = vst [vmem:[%s534_s6 + $0x60] sm:$0xff] %v207_v16  ;;  %v208_v21 = vmax.f32 %v192_v17, 0.0  ;;  %v100_v22 = vadd.f32 %v367_v6, %v77_v18 }
  0x22   :  { %v193_v23 = vadd.f32 %v177_v19, %v99_v13  ;;  %v178_v24 = vadd.f32 %v379_v12, %v155_v20 }
  0x23   :  { %224 = vst [vmem:[%s534_s6 + $0x68] sm:$0xff] %v208_v21 }
  0x24   :  { %v209_v1 = vmax.f32 %v193_v23, 0.0  ;;  %v194_v25 = vadd.f32 %v178_v24, %v100_v22 }
  0x26   :  { %225 = vst [vmem:[%s534_s6 + $0x70] sm:$0xff] %v209_v1  ;;  %v210_v4 = vmax.f32 %v194_v25, 0.0 }
  0x28   :  { %226 = vst [vmem:[%s534_s6 + $0x78] sm:$0xff] %v210_v4 }

</bundles_post_ra>
